<compile_context>
chip_gen: v7x
topology: tpu7x:2x2x1
jax: 0.10.0
libtpu: 0.0.40
codegen_flags: <defaults>
</compile_context>

<pallas_src>
import functools

import jax
import jax.numpy as jnp
from jax.experimental import pallas as pl
from jax.experimental.pallas import tpu as pltpu

COMPUTE_DTYPE = jnp.bfloat16        # MXU operand dtype (accumulation + epilogue stay f32)
TILE_N_FALLBACK = 512               # proven-safe row tile if HW detection fails
VMEM_FALLBACK = 32 * 1024 * 1024
_EPS = 1e-5


def _round_up(a, b):
    return ((a + b - 1) // b) * b


def _tpu_budget():
    """Generation-aware (tile_n, vmem_limit_bytes).

    v5e/v6e (128 MiB VMEM): 2048-row tiles + 64 MiB scoped limit.
    v7x (64 MiB VMEM/TC):   1024-row tiles + 48 MiB.
    Detection failure:      512-row tiles + 32 MiB (previously proven config).
    """
    tile_n, vmem = TILE_N_FALLBACK, VMEM_FALLBACK
    try:
        info = pltpu.get_tpu_info()
        cap = getattr(info, "vmem_capacity_bytes", None)
        if cap:
            if cap <= 96 * 1024 * 1024:          # v7x-class part (64 MiB / TC)
                tile_n, vmem = 1024, 48 * 1024 * 1024
            else:                                # v5e / v6e class part (128 MiB)
                tile_n, vmem = 2048, 64 * 1024 * 1024
            vmem = min(vmem, int(cap) * 3 // 4)  # never request > 3/4 of physical
    except Exception:
        pass
    return tile_n, vmem


# ----------------------------------------------------------------------------
# Fused MLP-chain + global max-pool Pallas kernel (optional mid-chain "tap" out)
# ----------------------------------------------------------------------------
def _chain_kernel(*refs, num_layers, relu_flags, tap_after, n_valid, tile_n,
                  mask_rows):
    """refs = [x_ref, (w_ref, t_ref) * num_layers, (tap_ref)?, pool_ref].

    Per layer l (BN scale pre-folded into w):
        y = h @ w[l]                         (MXU, f32 accumulate)
      interior layer:  h = relu?(y + t[l])   (bias-only epilogue)
      last layer:      row-max of raw y (masked only on the boundary tile),
                       running max across tiles in pool_ref; bias (+ReLU) is
                       applied ONCE on the (1, C_last) accumulator at the final
                       tile (monotone ops commute with max).
    tap_after=i additionally stores the full activation after layer i.
    """
    x_ref = refs[0]
    n_in = 1 + 2 * num_layers
    if tap_after is not None:
        tap_ref = refs[n_in]
        pool_ref = refs[n_in + 1]
    else:
        tap_ref = None
        pool_ref = refs[n_in]

    ti = pl.program_id(1)
    h = x_ref[0]                                            # (tile_n, C0) bf16

    for l in range(num_layers):
        w = refs[1 + 2 * l][0]                              # (Cin, Cout) bf16 resident
        t = refs[2 + 2 * l][0]                              # (1, Cout)   f32
        y = jnp.dot(h.astype(w.dtype), w, preferred_element_type=jnp.float32)

        if l < num_layers - 1:
            y = y + t                                       # scale already folded into w
            if relu_flags[l]:
                y = jnp.maximum(y, 0.0)
            h = y
            if tap_after is not None and l == tap_after:
                tap_ref[...] = y[None].astype(tap_ref.dtype)
        else:
            # ---- fused global max-pool over the points axis ----
            @pl.when(ti == 0)
            def _init():
                pool_ref[...] = jnp.full(pool_ref.shape, -jnp.inf,
                                         dtype=pool_ref.dtype)

            def _accumulate(vals):
                tile_max = jnp.max(vals, axis=0, keepdims=True)[None]   # (1,1,Cout)
                pool_ref[...] = jnp.maximum(pool_ref[...], tile_max)

            if mask_rows:
                boundary = (ti + 1) * tile_n > n_valid

                @pl.when(jnp.logical_not(boundary))
                def _acc_full():
                    _accumulate(y)

                @pl.when(boundary)
                def _acc_masked():
                    rows = (jax.lax.broadcasted_iota(jnp.int32, (tile_n, 1), 0)
                            + ti * tile_n)
                    _accumulate(jnp.where(rows < n_valid, y, -jnp.inf))
            else:
                _accumulate(y)

            # Deferred epilogue on the tiny (1, 1, C_last) accumulator.
            @pl.when(ti == pl.num_programs(1) - 1)
            def _finalize():
                out = pool_ref[...] + t[None]
                if relu_flags[l]:
                    out = jnp.maximum(out, 0.0)
                pool_ref[...] = out


def fused_chain(x, layers, *, relu_flags, n_valid, tile_n, tap_after=None,
                vmem_limit_bytes=VMEM_FALLBACK, compute_dtype=COMPUTE_DTYPE):
    """x: (B, Np, C0) channels-last; layers: list of (w, t), BN scale already
    folded into w; w is (Cin, Cout) shared or (B, Cin, Cout) per-batch.  Every
    chain ends with a fused global max-pool over the (padded) points axis.
    Returns pooled (B, 1, C_last) f32 — plus the full (B, Np, C_tap) activation
    after layer `tap_after` if requested."""
    B, Np, C0 = x.shape
    assert Np % tile_n == 0
    num_tiles = Np // tile_n

    inputs = [x.astype(compute_dtype)]
    in_specs = [pl.BlockSpec((1, tile_n, C0), lambda b, t: (b, t, 0))]

    for (w, t_) in layers:
        if w.ndim == 2:
            w = w[None]
        w = w.astype(compute_dtype)                         # scale-fold done in f32; cast once
        bw, cin, cout = w.shape
        inputs += [w, t_.reshape(1, 1, cout).astype(jnp.float32)]
        if bw == 1:
            w_map = lambda b, t: (0, 0, 0)                  # shared weight: VMEM resident
        else:
            w_map = lambda b, t: (b, 0, 0)                  # per-batch folded weight
        in_specs += [pl.BlockSpec((1, cin, cout), w_map),
                     pl.BlockSpec((1, 1, cout), lambda b, t: (0, 0, 0))]

    c_last = layers[-1][0].shape[-1]
    pool_shape = jax.ShapeDtypeStruct((B, 1, c_last), jnp.float32)
    pool_spec = pl.BlockSpec((1, 1, c_last), lambda b, t: (b, 0, 0))

    if tap_after is not None:
        c_tap = layers[tap_after][0].shape[-1]
        out_shape = (jax.ShapeDtypeStruct((B, Np, c_tap), compute_dtype), pool_shape)
        out_specs = [pl.BlockSpec((1, tile_n, c_tap), lambda b, t: (b, t, 0)),
                     pool_spec]
    else:
        out_shape = pool_shape
        out_specs = pool_spec

    kernel = functools.partial(
        _chain_kernel,
        num_layers=len(layers),
        relu_flags=tuple(relu_flags),
        tap_after=tap_after,
        n_valid=n_valid,
        tile_n=tile_n,
        mask_rows=(Np != n_valid),
    )
    return pl.pallas_call(
        kernel,
        out_shape=out_shape,
        grid=(B, num_tiles),
        in_specs=in_specs,
        out_specs=out_specs,
        compiler_params=pltpu.CompilerParams(
            dimension_semantics=("parallel", "arbitrary"),
            vmem_limit_bytes=vmem_limit_bytes,
        ),
    )(*inputs)


# ----------------------------------------------------------------------------
# Deterministic parameter construction (synthetic weights, BN folded into w/t)
# ----------------------------------------------------------------------------
def _make_layer(key, cin, cout, bn=True):
    kw, kb, kg, kbt = jax.random.split(key, 4)
    w = 0.1 * jax.random.normal(kw, (cin, cout), dtype=jnp.float32)
    b = 0.1 * jax.random.normal(kb, (cout,), dtype=jnp.float32)
    if bn:
        gamma = 1.0 + 0.1 * jax.random.normal(kg, (cout,), dtype=jnp.float32)
        beta = 0.1 * jax.random.normal(kbt, (cout,), dtype=jnp.float32)
        running_mean = jnp.zeros((cout,), jnp.float32)
        running_var = jnp.ones((cout,), jnp.float32)
        s = gamma / jnp.sqrt(running_var + _EPS)
        w = w * s[None, :]                       # fold BN scale into the weight (f32)
        t = beta + (b - running_mean) * s
    else:
        t = b
    return dict(w=w, t=t)


def make_tnet_params(key, k):
    ks = jax.random.split(key, 6)
    return dict(
        conv1=_make_layer(ks[0], k, 64),
        conv2=_make_layer(ks[1], 64, 128),
        conv3=_make_layer(ks[2], 128, 1024),
        fc1=_make_layer(ks[3], 1024, 512),
        fc2=_make_layer(ks[4], 512, 256),
        fc3=_make_layer(ks[5], 256, k * k, bn=False),
    )


def make_encoder_params(key):
    ks = jax.random.split(key, 6)
    return dict(
        tnet3=make_tnet_params(ks[0], 3),
        tnet64=make_tnet_params(ks[1], 64),
        fc1=_make_layer(ks[2], 3, 64),
        fc2=_make_layer(ks[3], 64, 64),
        fc4=_make_layer(ks[4], 64, 128),
        fc5=_make_layer(ks[5], 128, 1024),
    )


# ----------------------------------------------------------------------------
# Forward pass
# ----------------------------------------------------------------------------
def _tnet_head(g, p, k):
    """Tiny (B-row) FC head of a T-Net, plain jnp (XLA): 1024 -> 512 -> 256 -> k*k."""
    h = jnp.maximum(g @ p["fc1"]["w"] + p["fc1"]["t"], 0.0)
    h = jnp.maximum(h @ p["fc2"]["w"] + p["fc2"]["t"], 0.0)
    m = h @ p["fc3"]["w"] + p["fc3"]["t"]
    return m.reshape(-1, k, k) + jnp.eye(k, dtype=m.dtype)[None]


def _layer(p):
    return (p["w"], p["t"])


def encoder_forward(x_bcn, params, *, tile_n=None, vmem_limit_bytes=None):
    """x_bcn: (B, 3, N)  ->  (B, 1024, 1)   (matches torch Encoder.forward, eval-mode BN)."""
    B, _, N = x_bcn.shape
    assert N >= 1
    if tile_n is None or vmem_limit_bytes is None:
        auto_tile, auto_vmem = _tpu_budget()
        tile_n = tile_n or auto_tile
        vmem_limit_bytes = vmem_limit_bytes or auto_vmem

    x = jnp.transpose(x_bcn, (0, 2, 1)).astype(jnp.float32)     # (B, N, 3)
    tile = min(tile_n, _round_up(N, 16))
    Np = _round_up(N, tile)
    # Pad points to a tile multiple, channels 3 -> 8 (x stream stays lane-sparse:
    # bounded waste, read only twice, counted against the VMEM budget).
    x = jnp.pad(x, ((0, 0), (0, Np - N), (0, 8 - 3))).astype(COMPUTE_DTYPE)

    chain = functools.partial(fused_chain, n_valid=N, tile_n=tile,
                              vmem_limit_bytes=vmem_limit_bytes)

    # ---- input transform (T-Net k=3): fused conv1/2/3 + max-pool, FC head in XLA ----
    t3 = params["tnet3"]
    conv1_w8 = jnp.pad(t3["conv1"]["w"], ((0, 8 - 3), (0, 0)))   # (8, 64)
    g3 = chain(
        x,
        [(conv1_w8, t3["conv1"]["t"]), _layer(t3["conv2"]), _layer(t3["conv3"])],
        relu_flags=(True, True, True))[:, 0, :]                  # (B, 1024)
    m3 = _tnet_head(g3, t3, 3)                                   # (B, 3, 3)

    # ---- fold m3 into fc1: (x @ m3) @ W1 == x @ (m3 @ W1); fuse fc1/fc2 (feat tap)
    # with the T-Net-64 conv chain + pool in ONE pallas_call (two outputs) ----
    w1p = jnp.einsum("bij,jk->bik", m3, params["fc1"]["w"])      # f32 (B, 3, 64)
    w1p = jnp.pad(w1p, ((0, 0), (0, 8 - 3), (0, 0)))             # (B, 8, 64)
    t64 = params["tnet64"]
    feat, g64 = chain(
        x,
        [(w1p, params["fc1"]["t"]), _layer(params["fc2"]),
         _layer(t64["conv1"]), _layer(t64["conv2"]), _layer(t64["conv3"])],
        relu_flags=(True, True, True, True, True),
        tap_after=1)                                             # feat: (B, Np, 64) bf16
    m64 = _tnet_head(g64[:, 0, :], t64, 64)                      # (B, 64, 64)

    # ---- fold m64 into fc4; fused fc4 -> fc5 (BN, no ReLU) + global max-pool ----
    w4p = jnp.einsum("bij,jk->bik", m64, params["fc4"]["w"])     # f32 (B, 64, 128)
    out = chain(
        feat,
        [(w4p, params["fc4"]["t"]), _layer(params["fc5"])],
        relu_flags=(True, False))                                # (B, 1, 1024)

    return jnp.transpose(out, (0, 2, 1))                         # (B, 1024, 1)


# ----------------------------------------------------------------------------
if __name__ == "__main__":
    key = jax.random.PRNGKey(0)
    k_params, k_input = jax.random.split(key)

    B, N = 2, 128
    params = make_encoder_params(k_params)
    x = jax.random.normal(k_input, (B, 3, N), dtype=jnp.float32)  # NCL like PyTorch

    fwd = jax.jit(encoder_forward)
    out = jax.block_until_ready(fwd(x, params))

    assert out.shape == (B, 1024, 1), out.shape
    assert bool(jnp.all(jnp.isfinite(out.astype(jnp.float32))))
    print("KERNEL_OK")
</pallas_src>

<mosaic_0001>
module attributes {stable_mosaic.version = 11 : i64} {
  func.func @_chain_kernel(%arg0: i32, %arg1: i32, %arg2: memref<1x128x8xbf16, #tpu.memory_space<vmem>>, %arg3: memref<1x8x64xbf16, #tpu.memory_space<vmem>>, %arg4: memref<1x1x64xf32, #tpu.memory_space<vmem>>, %arg5: memref<1x64x128xbf16, #tpu.memory_space<vmem>>, %arg6: memref<1x1x128xf32, #tpu.memory_space<vmem>>, %arg7: memref<1x128x1024xbf16, #tpu.memory_space<vmem>>, %arg8: memref<1x1x1024xf32, #tpu.memory_space<vmem>>, %arg9: memref<1x1x1024xf32, #tpu.memory_space<vmem>>) attributes {dimension_semantics = [#tpu.dimension_semantics<parallel>, #tpu.dimension_semantics<arbitrary>], iteration_bounds = array<i64: 2, 1>, scalar_prefetch = 0 : i64, scratch_operands = 0 : i64, tpu.core_type = #tpu.core_type<tc>, window_params = [{transform_indices = @transform_0, window_bounds = array<i64: 1, 128, 8>}, {pipeline_mode = #tpu.pipeline_mode<synchronous>, transform_indices = @transform_1, window_bounds = array<i64: 1, 8, 64>}, {pipeline_mode = #tpu.pipeline_mode<synchronous>, transform_indices = @transform_2, window_bounds = array<i64: 1, 1, 64>}, {pipeline_mode = #tpu.pipeline_mode<synchronous>, transform_indices = @transform_3, window_bounds = array<i64: 1, 64, 128>}, {pipeline_mode = #tpu.pipeline_mode<synchronous>, transform_indices = @transform_4, window_bounds = array<i64: 1, 1, 128>}, {pipeline_mode = #tpu.pipeline_mode<synchronous>, transform_indices = @transform_5, window_bounds = array<i64: 1, 128, 1024>}, {pipeline_mode = #tpu.pipeline_mode<synchronous>, transform_indices = @transform_6, window_bounds = array<i64: 1, 1, 1024>}, {transform_indices = @transform_7, window_bounds = array<i64: 1, 1, 1024>}]} {
    %c0 = arith.constant 0 : index
    %c0_0 = arith.constant 0 : index
    %c0_1 = arith.constant 0 : index
    %0 = vector.load %arg2[%c0, %c0_0, %c0_1] : memref<1x128x8xbf16, #tpu.memory_space<vmem>>, vector<1x128x8xbf16>
    %1 = vector.shape_cast %0 : vector<1x128x8xbf16> to vector<128x8xbf16>
    %c0_2 = arith.constant 0 : index
    %c0_3 = arith.constant 0 : index
    %c0_4 = arith.constant 0 : index
    %2 = vector.load %arg3[%c0_2, %c0_3, %c0_4] : memref<1x8x64xbf16, #tpu.memory_space<vmem>>, vector<1x8x64xbf16>
    %3 = vector.shape_cast %2 : vector<1x8x64xbf16> to vector<8x64xbf16>
    %c0_5 = arith.constant 0 : index
    %c0_6 = arith.constant 0 : index
    %c0_7 = arith.constant 0 : index
    %4 = vector.load %arg4[%c0_5, %c0_6, %c0_7] : memref<1x1x64xf32, #tpu.memory_space<vmem>>, vector<1x1x64xf32>
    %5 = vector.shape_cast %4 : vector<1x1x64xf32> to vector<1x64xf32>
    %cst = arith.constant dense<0.000000e+00> : vector<128x64xf32>
    %6 = tpu.matmul %1, %3, %cst {dimension_numbers = #tpu.dot_dimension_numbers<[1], [0], [0], [1], [0, 0, 1, 1], [], []>} : vector<128x8xbf16>, vector<8x64xbf16>, vector<128x64xf32> -> vector<128x64xf32>
    %7 = vector.broadcast %5 : vector<1x64xf32> to vector<128x64xf32>
    %8 = arith.addf %6, %7 : vector<128x64xf32>
    %cst_8 = arith.constant 0.000000e+00 : f32
    %9 = vector.broadcast %cst_8 : f32 to vector<128x64xf32>
    %10 = arith.maximumf %8, %9 : vector<128x64xf32>
    %c0_9 = arith.constant 0 : index
    %c0_10 = arith.constant 0 : index
    %c0_11 = arith.constant 0 : index
    %11 = vector.load %arg5[%c0_9, %c0_10, %c0_11] : memref<1x64x128xbf16, #tpu.memory_space<vmem>>, vector<1x64x128xbf16>
    %12 = vector.shape_cast %11 : vector<1x64x128xbf16> to vector<64x128xbf16>
    %c0_12 = arith.constant 0 : index
    %c0_13 = arith.constant 0 : index
    %c0_14 = arith.constant 0 : index
    %13 = vector.load %arg6[%c0_12, %c0_13, %c0_14] : memref<1x1x128xf32, #tpu.memory_space<vmem>>, vector<1x1x128xf32>
    %14 = vector.shape_cast %13 : vector<1x1x128xf32> to vector<1x128xf32>
    %15 = arith.truncf %10 : vector<128x64xf32> to vector<128x64xbf16>
    %cst_15 = arith.constant dense<0.000000e+00> : vector<128x128xf32>
    %16 = tpu.matmul %15, %12, %cst_15 {dimension_numbers = #tpu.dot_dimension_numbers<[1], [0], [0], [1], [0, 0, 1, 1], [], []>} : vector<128x64xbf16>, vector<64x128xbf16>, vector<128x128xf32> -> vector<128x128xf32>
    %17 = vector.broadcast %14 : vector<1x128xf32> to vector<128x128xf32>
    %18 = arith.addf %16, %17 : vector<128x128xf32>
    %cst_16 = arith.constant 0.000000e+00 : f32
    %19 = vector.broadcast %cst_16 : f32 to vector<128x128xf32>
    %20 = arith.maximumf %18, %19 : vector<128x128xf32>
    %c0_17 = arith.constant 0 : index
    %c0_18 = arith.constant 0 : index
    %c0_19 = arith.constant 0 : index
    %21 = vector.load %arg7[%c0_17, %c0_18, %c0_19] : memref<1x128x1024xbf16, #tpu.memory_space<vmem>>, vector<1x128x1024xbf16>
    %22 = vector.shape_cast %21 : vector<1x128x1024xbf16> to vector<128x1024xbf16>
    %c0_20 = arith.constant 0 : index
    %c0_21 = arith.constant 0 : index
    %c0_22 = arith.constant 0 : index
    %23 = vector.load %arg8[%c0_20, %c0_21, %c0_22] : memref<1x1x1024xf32, #tpu.memory_space<vmem>>, vector<1x1x1024xf32>
    %24 = vector.shape_cast %23 : vector<1x1x1024xf32> to vector<1x1024xf32>
    %25 = arith.truncf %20 : vector<128x128xf32> to vector<128x128xbf16>
    %cst_23 = arith.constant dense<0.000000e+00> : vector<128x1024xf32>
    %26 = tpu.matmul %25, %22, %cst_23 {dimension_numbers = #tpu.dot_dimension_numbers<[1], [0], [0], [1], [0, 0, 1, 1], [], []>} : vector<128x128xbf16>, vector<128x1024xbf16>, vector<128x1024xf32> -> vector<128x1024xf32>
    %c0_i32 = arith.constant 0 : i32
    %27 = arith.cmpi eq, %arg1, %c0_i32 : i32
    %28 = arith.extui %27 : i1 to i32
    %c0_i32_24 = arith.constant 0 : i32
    %29 = arith.cmpi ne, %28, %c0_i32_24 : i32
    scf.if %29 {
      %cst_34 = arith.constant 0xFF800000 : f32
      %39 = vector.broadcast %cst_34 : f32 to vector<1x1x1024xf32>
      %c0_35 = arith.constant 0 : index
      %c0_36 = arith.constant 0 : index
      %c0_37 = arith.constant 0 : index
      %40 = vector.load %arg9[%c0_35, %c0_36, %c0_37] : memref<1x1x1024xf32, #tpu.memory_space<vmem>>, vector<1x1x1024xf32>
      tpu.vector_store %arg9[%c0_35, %c0_36, %c0_37], %39 {strides = array<i32>} : memref<1x1x1024xf32, #tpu.memory_space<vmem>>, vector<1x1x1024xf32>,
    } else {
    }
    %cst_25 = arith.constant dense<0xFF800000> : vector<1024xf32>
    %30 = vector.multi_reduction <maximumf>, %26, %cst_25 [0] : vector<128x1024xf32> to vector<1024xf32>
    %31 = vector.shape_cast %30 : vector<1024xf32> to vector<1x1024xf32>
    %32 = vector.shape_cast %31 : vector<1x1024xf32> to vector<1x1x1024xf32>
    %c0_26 = arith.constant 0 : index
    %c0_27 = arith.constant 0 : index
    %c0_28 = arith.constant 0 : index
    %33 = vector.load %arg9[%c0_26, %c0_27, %c0_28] : memref<1x1x1024xf32, #tpu.memory_space<vmem>>, vector<1x1x1024xf32>
    %34 = arith.maximumf %33, %32 : vector<1x1x1024xf32>
    %c0_29 = arith.constant 0 : index
    %c0_30 = arith.constant 0 : index
    %c0_31 = arith.constant 0 : index
    %35 = vector.load %arg9[%c0_29, %c0_30, %c0_31] : memref<1x1x1024xf32, #tpu.memory_space<vmem>>, vector<1x1x1024xf32>
    tpu.vector_store %arg9[%c0_29, %c0_30, %c0_31], %34 {strides = array<i32>} : memref<1x1x1024xf32, #tpu.memory_space<vmem>>, vector<1x1x1024xf32>,
    %c0_i32_32 = arith.constant 0 : i32
    %36 = arith.cmpi eq, %arg1, %c0_i32_32 : i32
    %37 = arith.extui %36 : i1 to i32
    %c0_i32_33 = arith.constant 0 : i32
    %38 = arith.cmpi ne, %37, %c0_i32_33 : i32
    scf.if %38 {
      %c0_34 = arith.constant 0 : index
      %c0_35 = arith.constant 0 : index
      %c0_36 = arith.constant 0 : index
      %39 = vector.load %arg9[%c0_34, %c0_35, %c0_36] : memref<1x1x1024xf32, #tpu.memory_space<vmem>>, vector<1x1x1024xf32>
      %40 = vector.shape_cast %24 : vector<1x1024xf32> to vector<1x1x1024xf32>
      %41 = arith.addf %39, %40 : vector<1x1x1024xf32>
      %cst_37 = arith.constant 0.000000e+00 : f32
      %42 = vector.broadcast %cst_37 : f32 to vector<1x1x1024xf32>
      %43 = arith.maximumf %41, %42 : vector<1x1x1024xf32>
      %c0_38 = arith.constant 0 : index
      %c0_39 = arith.constant 0 : index
      %c0_40 = arith.constant 0 : index
      %44 = vector.load %arg9[%c0_38, %c0_39, %c0_40] : memref<1x1x1024xf32, #tpu.memory_space<vmem>>, vector<1x1x1024xf32>
      tpu.vector_store %arg9[%c0_38, %c0_39, %c0_40], %43 {strides = array<i32>} : memref<1x1x1024xf32, #tpu.memory_space<vmem>>, vector<1x1x1024xf32>,
    } else {
    }
    return
  }
  func.func @transform_0(%arg0: i32, %arg1: i32) -> (i32, i32, i32) {
    %c0_i32 = arith.constant 0 : i32
    %c0_i32_0 = arith.constant 0 : i32
    return %arg0, %arg1, %c0_i32 : i32, i32, i32
  }
  func.func @transform_1(%arg0: i32, %arg1: i32) -> (i32, i32, i32) {
    %c0_i32 = arith.constant 0 : i32
    %c0_i32_0 = arith.constant 0 : i32
    %c0_i32_1 = arith.constant 0 : i32
    %c0_i32_2 = arith.constant 0 : i32
    return %c0_i32, %c0_i32_0, %c0_i32_1 : i32, i32, i32
  }
  func.func @transform_2(%arg0: i32, %arg1: i32) -> (i32, i32, i32) {
    %c0_i32 = arith.constant 0 : i32
    %c0_i32_0 = arith.constant 0 : i32
    %c0_i32_1 = arith.constant 0 : i32
    %c0_i32_2 = arith.constant 0 : i32
    return %c0_i32, %c0_i32_0, %c0_i32_1 : i32, i32, i32
  }
  func.func @transform_3(%arg0: i32, %arg1: i32) -> (i32, i32, i32) {
    %c0_i32 = arith.constant 0 : i32
    %c0_i32_0 = arith.constant 0 : i32
    %c0_i32_1 = arith.constant 0 : i32
    %c0_i32_2 = arith.constant 0 : i32
    return %c0_i32, %c0_i32_0, %c0_i32_1 : i32, i32, i32
  }
  func.func @transform_4(%arg0: i32, %arg1: i32) -> (i32, i32, i32) {
    %c0_i32 = arith.constant 0 : i32
    %c0_i32_0 = arith.constant 0 : i32
    %c0_i32_1 = arith.constant 0 : i32
    %c0_i32_2 = arith.constant 0 : i32
    return %c0_i32, %c0_i32_0, %c0_i32_1 : i32, i32, i32
  }
  func.func @transform_5(%arg0: i32, %arg1: i32) -> (i32, i32, i32) {
    %c0_i32 = arith.constant 0 : i32
    %c0_i32_0 = arith.constant 0 : i32
    %c0_i32_1 = arith.constant 0 : i32
    %c0_i32_2 = arith.constant 0 : i32
    return %c0_i32, %c0_i32_0, %c0_i32_1 : i32, i32, i32
  }
  func.func @transform_6(%arg0: i32, %arg1: i32) -> (i32, i32, i32) {
    %c0_i32 = arith.constant 0 : i32
    %c0_i32_0 = arith.constant 0 : i32
    %c0_i32_1 = arith.constant 0 : i32
    %c0_i32_2 = arith.constant 0 : i32
    return %c0_i32, %c0_i32_0, %c0_i32_1 : i32, i32, i32
  }
  func.func @transform_7(%arg0: i32, %arg1: i32) -> (i32, i32, i32) {
    %c0_i32 = arith.constant 0 : i32
    %c0_i32_0 = arith.constant 0 : i32
    %c0_i32_1 = arith.constant 0 : i32
    return %arg0, %c0_i32, %c0_i32_0 : i32, i32, i32
  }
}

module attributes {stable_mosaic.version = 11 : i64} {
  func.func @_chain_kernel(%arg0: i32, %arg1: i32, %arg2: memref<1x128x8xbf16, #tpu.memory_space<vmem>>, %arg3: memref<1x8x64xbf16, #tpu.memory_space<vmem>>, %arg4: memref<1x1x64xf32, #tpu.memory_space<vmem>>, %arg5: memref<1x64x64xbf16, #tpu.memory_space<vmem>>, %arg6: memref<1x1x64xf32, #tpu.memory_space<vmem>>, %arg7: memref<1x64x64xbf16, #tpu.memory_space<vmem>>, %arg8: memref<1x1x64xf32, #tpu.memory_space<vmem>>, %arg9: memref<1x64x128xbf16, #tpu.memory_space<vmem>>, %arg10: memref<1x1x128xf32, #tpu.memory_space<vmem>>, %arg11: memref<1x128x1024xbf16, #tpu.memory_space<vmem>>, %arg12: memref<1x1x1024xf32, #tpu.memory_space<vmem>>, %arg13: memref<1x128x64xbf16, #tpu.memory_space<vmem>>, %arg14: memref<1x1x1024xf32, #tpu.memory_space<vmem>>) attributes {dimension_semantics = [#tpu.dimension_semantics<parallel>, #tpu.dimension_semantics<arbitrary>], iteration_bounds = array<i64: 2, 1>, scalar_prefetch = 0 : i64, scratch_operands = 0 : i64, tpu.core_type = #tpu.core_type<tc>, window_params = [{transform_indices = @transform_0, window_bounds = array<i64: 1, 128, 8>}, {transform_indices = @transform_1, window_bounds = array<i64: 1, 8, 64>}, {pipeline_mode = #tpu.pipeline_mode<synchronous>, transform_indices = @transform_2, window_bounds = array<i64: 1, 1, 64>}, {pipeline_mode = #tpu.pipeline_mode<synchronous>, transform_indices = @transform_3, window_bounds = array<i64: 1, 64, 64>}, {pipeline_mode = #tpu.pipeline_mode<synchronous>, transform_indices = @transform_4, window_bounds = array<i64: 1, 1, 64>}, {pipeline_mode = #tpu.pipeline_mode<synchronous>, transform_indices = @transform_5, window_bounds = array<i64: 1, 64, 64>}, {pipeline_mode = #tpu.pipeline_mode<synchronous>, transform_indices = @transform_6, window_bounds = array<i64: 1, 1, 64>}, {pipeline_mode = #tpu.pipeline_mode<synchronous>, transform_indices = @transform_7, window_bounds = array<i64: 1, 64, 128>}, {pipeline_mode = #tpu.pipeline_mode<synchronous>, transform_indices = @transform_8, window_bounds = array<i64: 1, 1, 128>}, {pipeline_mode = #tpu.pipeline_mode<synchronous>, transform_indices = @transform_9, window_bounds = array<i64: 1, 128, 1024>}, {pipeline_mode = #tpu.pipeline_mode<synchronous>, transform_indices = @transform_10, window_bounds = array<i64: 1, 1, 1024>}, {transform_indices = @transform_11, window_bounds = array<i64: 1, 128, 64>}, {transform_indices = @transform_12, window_bounds = array<i64: 1, 1, 1024>}]} {
    %c0 = arith.constant 0 : index
    %c0_0 = arith.constant 0 : index
    %c0_1 = arith.constant 0 : index
    %0 = vector.load %arg2[%c0, %c0_0, %c0_1] : memref<1x128x8xbf16, #tpu.memory_space<vmem>>, vector<1x128x8xbf16>
    %1 = vector.shape_cast %0 : vector<1x128x8xbf16> to vector<128x8xbf16>
    %c0_2 = arith.constant 0 : index
    %c0_3 = arith.constant 0 : index
    %c0_4 = arith.constant 0 : index
    %2 = vector.load %arg3[%c0_2, %c0_3, %c0_4] : memref<1x8x64xbf16, #tpu.memory_space<vmem>>, vector<1x8x64xbf16>
    %3 = vector.shape_cast %2 : vector<1x8x64xbf16> to vector<8x64xbf16>
    %c0_5 = arith.constant 0 : index
    %c0_6 = arith.constant 0 : index
    %c0_7 = arith.constant 0 : index
    %4 = vector.load %arg4[%c0_5, %c0_6, %c0_7] : memref<1x1x64xf32, #tpu.memory_space<vmem>>, vector<1x1x64xf32>
    %5 = vector.shape_cast %4 : vector<1x1x64xf32> to vector<1x64xf32>
    %cst = arith.constant dense<0.000000e+00> : vector<128x64xf32>
    %6 = tpu.matmul %1, %3, %cst {dimension_numbers = #tpu.dot_dimension_numbers<[1], [0], [0], [1], [0, 0, 1, 1], [], []>} : vector<128x8xbf16>, vector<8x64xbf16>, vector<128x64xf32> -> vector<128x64xf32>
    %7 = vector.broadcast %5 : vector<1x64xf32> to vector<128x64xf32>
    %8 = arith.addf %6, %7 : vector<128x64xf32>
    %cst_8 = arith.constant 0.000000e+00 : f32
    %9 = vector.broadcast %cst_8 : f32 to vector<128x64xf32>
    %10 = arith.maximumf %8, %9 : vector<128x64xf32>
    %c0_9 = arith.constant 0 : index
    %c0_10 = arith.constant 0 : index
    %c0_11 = arith.constant 0 : index
    %11 = vector.load %arg5[%c0_9, %c0_10, %c0_11] : memref<1x64x64xbf16, #tpu.memory_space<vmem>>, vector<1x64x64xbf16>
    %12 = vector.shape_cast %11 : vector<1x64x64xbf16> to vector<64x64xbf16>
    %c0_12 = arith.constant 0 : index
    %c0_13 = arith.constant 0 : index
    %c0_14 = arith.constant 0 : index
    %13 = vector.load %arg6[%c0_12, %c0_13, %c0_14] : memref<1x1x64xf32, #tpu.memory_space<vmem>>, vector<1x1x64xf32>
    %14 = vector.shape_cast %13 : vector<1x1x64xf32> to vector<1x64xf32>
    %15 = arith.truncf %10 : vector<128x64xf32> to vector<128x64xbf16>
    %cst_15 = arith.constant dense<0.000000e+00> : vector<128x64xf32>
    %16 = tpu.matmul %15, %12, %cst_15 {dimension_numbers = #tpu.dot_dimension_numbers<[1], [0], [0], [1], [0, 0, 1, 1], [], []>} : vector<128x64xbf16>, vector<64x64xbf16>, vector<128x64xf32> -> vector<128x64xf32>
    %17 = vector.broadcast %14 : vector<1x64xf32> to vector<128x64xf32>
    %18 = arith.addf %16, %17 : vector<128x64xf32>
    %cst_16 = arith.constant 0.000000e+00 : f32
    %19 = vector.broadcast %cst_16 : f32 to vector<128x64xf32>
    %20 = arith.maximumf %18, %19 : vector<128x64xf32>
    %21 = vector.shape_cast %20 : vector<128x64xf32> to vector<1x128x64xf32>
    %22 = arith.truncf %21 : vector<1x128x64xf32> to vector<1x128x64xbf16>
    %c0_17 = arith.constant 0 : index
    %c0_18 = arith.constant 0 : index
    %c0_19 = arith.constant 0 : index
    %23 = vector.load %arg13[%c0_17, %c0_18, %c0_19] : memref<1x128x64xbf16, #tpu.memory_space<vmem>>, vector<1x128x64xbf16>
    tpu.vector_store %arg13[%c0_17, %c0_18, %c0_19], %22 {strides = array<i32>} : memref<1x128x64xbf16, #tpu.memory_space<vmem>>, vector<1x128x64xbf16>,
    %c0_20 = arith.constant 0 : index
    %c0_21 = arith.constant 0 : index
    %c0_22 = arith.constant 0 : index
    %24 = vector.load %arg7[%c0_20, %c0_21, %c0_22] : memref<1x64x64xbf16, #tpu.memory_space<vmem>>, vector<1x64x64xbf16>
    %25 = vector.shape_cast %24 : vector<1x64x64xbf16> to vector<64x64xbf16>
    %c0_23 = arith.constant 0 : index
    %c0_24 = arith.constant 0 : index
    %c0_25 = arith.constant 0 : index
    %26 = vector.load %arg8[%c0_23, %c0_24, %c0_25] : memref<1x1x64xf32, #tpu.memory_space<vmem>>, vector<1x1x64xf32>
    %27 = vector.shape_cast %26 : vector<1x1x64xf32> to vector<1x64xf32>
    %28 = arith.truncf %20 : vector<128x64xf32> to vector<128x64xbf16>
    %cst_26 = arith.constant dense<0.000000e+00> : vector<128x64xf32>
    %29 = tpu.matmul %28, %25, %cst_26 {dimension_numbers = #tpu.dot_dimension_numbers<[1], [0], [0], [1], [0, 0, 1, 1], [], []>} : vector<128x64xbf16>, vector<64x64xbf16>, vector<128x64xf32> -> vector<128x64xf32>
    %30 = vector.broadcast %27 : vector<1x64xf32> to vector<128x64xf32>
    %31 = arith.addf %29, %30 : vector<128x64xf32>
    %cst_27 = arith.constant 0.000000e+00 : f32
    %32 = vector.broadcast %cst_27 : f32 to vector<128x64xf32>
    %33 = arith.maximumf %31, %32 : vector<128x64xf32>
    %c0_28 = arith.constant 0 : index
    %c0_29 = arith.constant 0 : index
    %c0_30 = arith.constant 0 : index
    %34 = vector.load %arg9[%c0_28, %c0_29, %c0_30] : memref<1x64x128xbf16, #tpu.memory_space<vmem>>, vector<1x64x128xbf16>
    %35 = vector.shape_cast %34 : vector<1x64x128xbf16> to vector<64x128xbf16>
    %c0_31 = arith.constant 0 : index
    %c0_32 = arith.constant 0 : index
    %c0_33 = arith.constant 0 : index
    %36 = vector.load %arg10[%c0_31, %c0_32, %c0_33] : memref<1x1x128xf32, #tpu.memory_space<vmem>>, vector<1x1x128xf32>
    %37 = vector.shape_cast %36 : vector<1x1x128xf32> to vector<1x128xf32>
    %38 = arith.truncf %33 : vector<128x64xf32> to vector<128x64xbf16>
    %cst_34 = arith.constant dense<0.000000e+00> : vector<128x128xf32>
    %39 = tpu.matmul %38, %35, %cst_34 {dimension_numbers = #tpu.dot_dimension_numbers<[1], [0], [0], [1], [0, 0, 1, 1], [], []>} : vector<128x64xbf16>, vector<64x128xbf16>, vector<128x128xf32> -> vector<128x128xf32>
    %40 = vector.broadcast %37 : vector<1x128xf32> to vector<128x128xf32>
    %41 = arith.addf %39, %40 : vector<128x128xf32>
    %cst_35 = arith.constant 0.000000e+00 : f32
    %42 = vector.broadcast %cst_35 : f32 to vector<128x128xf32>
    %43 = arith.maximumf %41, %42 : vector<128x128xf32>
    %c0_36 = arith.constant 0 : index
    %c0_37 = arith.constant 0 : index
    %c0_38 = arith.constant 0 : index
    %44 = vector.load %arg11[%c0_36, %c0_37, %c0_38] : memref<1x128x1024xbf16, #tpu.memory_space<vmem>>, vector<1x128x1024xbf16>
    %45 = vector.shape_cast %44 : vector<1x128x1024xbf16> to vector<128x1024xbf16>
    %c0_39 = arith.constant 0 : index
    %c0_40 = arith.constant 0 : index
    %c0_41 = arith.constant 0 : index
    %46 = vector.load %arg12[%c0_39, %c0_40, %c0_41] : memref<1x1x1024xf32, #tpu.memory_space<vmem>>, vector<1x1x1024xf32>
    %47 = vector.shape_cast %46 : vector<1x1x1024xf32> to vector<1x1024xf32>
    %48 = arith.truncf %43 : vector<128x128xf32> to vector<128x128xbf16>
    %cst_42 = arith.constant dense<0.000000e+00> : vector<128x1024xf32>
    %49 = tpu.matmul %48, %45, %cst_42 {dimension_numbers = #tpu.dot_dimension_numbers<[1], [0], [0], [1], [0, 0, 1, 1], [], []>} : vector<128x128xbf16>, vector<128x1024xbf16>, vector<128x1024xf32> -> vector<128x1024xf32>
    %c0_i32 = arith.constant 0 : i32
    %50 = arith.cmpi eq, %arg1, %c0_i32 : i32
    %51 = arith.extui %50 : i1 to i32
    %c0_i32_43 = arith.constant 0 : i32
    %52 = arith.cmpi ne, %51, %c0_i32_43 : i32
    scf.if %52 {
      %cst_53 = arith.constant 0xFF800000 : f32
      %62 = vector.broadcast %cst_53 : f32 to vector<1x1x1024xf32>
      %c0_54 = arith.constant 0 : index
      %c0_55 = arith.constant 0 : index
      %c0_56 = arith.constant 0 : index
      %63 = vector.load %arg14[%c0_54, %c0_55, %c0_56] : memref<1x1x1024xf32, #tpu.memory_space<vmem>>, vector<1x1x1024xf32>
      tpu.vector_store %arg14[%c0_54, %c0_55, %c0_56], %62 {strides = array<i32>} : memref<1x1x1024xf32, #tpu.memory_space<vmem>>, vector<1x1x1024xf32>,
    } else {
    }
    %cst_44 = arith.constant dense<0xFF800000> : vector<1024xf32>
    %53 = vector.multi_reduction <maximumf>, %49, %cst_44 [0] : vector<128x1024xf32> to vector<1024xf32>
    %54 = vector.shape_cast %53 : vector<1024xf32> to vector<1x1024xf32>
    %55 = vector.shape_cast %54 : vector<1x1024xf32> to vector<1x1x1024xf32>
    %c0_45 = arith.constant 0 : index
    %c0_46 = arith.constant 0 : index
    %c0_47 = arith.constant 0 : index
    %56 = vector.load %arg14[%c0_45, %c0_46, %c0_47] : memref<1x1x1024xf32, #tpu.memory_space<vmem>>, vector<1x1x1024xf32>
    %57 = arith.maximumf %56, %55 : vector<1x1x1024xf32>
    %c0_48 = arith.constant 0 : index
    %c0_49 = arith.constant 0 : index
    %c0_50 = arith.constant 0 : index
    %58 = vector.load %arg14[%c0_48, %c0_49, %c0_50] : memref<1x1x1024xf32, #tpu.memory_space<vmem>>, vector<1x1x1024xf32>
    tpu.vector_store %arg14[%c0_48, %c0_49, %c0_50], %57 {strides = array<i32>} : memref<1x1x1024xf32, #tpu.memory_space<vmem>>, vector<1x1x1024xf32>,
    %c0_i32_51 = arith.constant 0 : i32
    %59 = arith.cmpi eq, %arg1, %c0_i32_51 : i32
    %60 = arith.extui %59 : i1 to i32
    %c0_i32_52 = arith.constant 0 : i32
    %61 = arith.cmpi ne, %60, %c0_i32_52 : i32
    scf.if %61 {
      %c0_53 = arith.constant 0 : index
      %c0_54 = arith.constant 0 : index
      %c0_55 = arith.constant 0 : index
      %62 = vector.load %arg14[%c0_53, %c0_54, %c0_55] : memref<1x1x1024xf32, #tpu.memory_space<vmem>>, vector<1x1x1024xf32>
      %63 = vector.shape_cast %47 : vector<1x1024xf32> to vector<1x1x1024xf32>
      %64 = arith.addf %62, %63 : vector<1x1x1024xf32>
      %cst_56 = arith.constant 0.000000e+00 : f32
      %65 = vector.broadcast %cst_56 : f32 to vector<1x1x1024xf32>
      %66 = arith.maximumf %64, %65 : vector<1x1x1024xf32>
      %c0_57 = arith.constant 0 : index
      %c0_58 = arith.constant 0 : index
      %c0_59 = arith.constant 0 : index
      %67 = vector.load %arg14[%c0_57, %c0_58, %c0_59] : memref<1x1x1024xf32, #tpu.memory_space<vmem>>, vector<1x1x1024xf32>
      tpu.vector_store %arg14[%c0_57, %c0_58, %c0_59], %66 {strides = array<i32>} : memref<1x1x1024xf32, #tpu.memory_space<vmem>>, vector<1x1x1024xf32>,
    } else {
    }
    return
  }
  func.func @transform_0(%arg0: i32, %arg1: i32) -> (i32, i32, i32) {
    %c0_i32 = arith.constant 0 : i32
    %c0_i32_0 = arith.constant 0 : i32
    return %arg0, %arg1, %c0_i32 : i32, i32, i32
  }
  func.func @transform_1(%arg0: i32, %arg1: i32) -> (i32, i32, i32) {
    %c0_i32 = arith.constant 0 : i32
    %c0_i32_0 = arith.constant 0 : i32
    %c0_i32_1 = arith.constant 0 : i32
    return %arg0, %c0_i32, %c0_i32_0 : i32, i32, i32
  }
  func.func @transform_2(%arg0: i32, %arg1: i32) -> (i32, i32, i32) {
    %c0_i32 = arith.constant 0 : i32
    %c0_i32_0 = arith.constant 0 : i32
    %c0_i32_1 = arith.constant 0 : i32
    %c0_i32_2 = arith.constant 0 : i32
    return %c0_i32, %c0_i32_0, %c0_i32_1 : i32, i32, i32
  }
  func.func @transform_3(%arg0: i32, %arg1: i32) -> (i32, i32, i32) {
    %c0_i32 = arith.constant 0 : i32
    %c0_i32_0 = arith.constant 0 : i32
    %c0_i32_1 = arith.constant 0 : i32
    %c0_i32_2 = arith.constant 0 : i32
    return %c0_i32, %c0_i32_0, %c0_i32_1 : i32, i32, i32
  }
  func.func @transform_4(%arg0: i32, %arg1: i32) -> (i32, i32, i32) {
    %c0_i32 = arith.constant 0 : i32
    %c0_i32_0 = arith.constant 0 : i32
    %c0_i32_1 = arith.constant 0 : i32
    %c0_i32_2 = arith.constant 0 : i32
    return %c0_i32, %c0_i32_0, %c0_i32_1 : i32, i32, i32
  }
  func.func @transform_5(%arg0: i32, %arg1: i32) -> (i32, i32, i32) {
    %c0_i32 = arith.constant 0 : i32
    %c0_i32_0 = arith.constant 0 : i32
    %c0_i32_1 = arith.constant 0 : i32
    %c0_i32_2 = arith.constant 0 : i32
    return %c0_i32, %c0_i32_0, %c0_i32_1 : i32, i32, i32
  }
  func.func @transform_6(%arg0: i32, %arg1: i32) -> (i32, i32, i32) {
    %c0_i32 = arith.constant 0 : i32
    %c0_i32_0 = arith.constant 0 : i32
    %c0_i32_1 = arith.constant 0 : i32
    %c0_i32_2 = arith.constant 0 : i32
    return %c0_i32, %c0_i32_0, %c0_i32_1 : i32, i32, i32
  }
  func.func @transform_7(%arg0: i32, %arg1: i32) -> (i32, i32, i32) {
    %c0_i32 = arith.constant 0 : i32
    %c0_i32_0 = arith.constant 0 : i32
    %c0_i32_1 = arith.constant 0 : i32
    %c0_i32_2 = arith.constant 0 : i32
    return %c0_i32, %c0_i32_0, %c0_i32_1 : i32, i32, i32
  }
  func.func @transform_8(%arg0: i32, %arg1: i32) -> (i32, i32, i32) {
    %c0_i32 = arith.constant 0 : i32
    %c0_i32_0 = arith.constant 0 : i32
    %c0_i32_1 = arith.constant 0 : i32
    %c0_i32_2 = arith.constant 0 : i32
    return %c0_i32, %c0_i32_0, %c0_i32_1 : i32, i32, i32
  }
  func.func @transform_9(%arg0: i32, %arg1: i32) -> (i32, i32, i32) {
    %c0_i32 = arith.constant 0 : i32
    %c0_i32_0 = arith.constant 0 : i32
    %c0_i32_1 = arith.constant 0 : i32
    %c0_i32_2 = arith.constant 0 : i32
    return %c0_i32, %c0_i32_0, %c0_i32_1 : i32, i32, i32
  }
  func.func @transform_10(%arg0: i32, %arg1: i32) -> (i32, i32, i32) {
    %c0_i32 = arith.constant 0 : i32
    %c0_i32_0 = arith.constant 0 : i32
    %c0_i32_1 = arith.constant 0 : i32
    %c0_i32_2 = arith.constant 0 : i32
    return %c0_i32, %c0_i32_0, %c0_i32_1 : i32, i32, i32
  }
  func.func @transform_11(%arg0: i32, %arg1: i32) -> (i32, i32, i32) {
    %c0_i32 = arith.constant 0 : i32
    %c0_i32_0 = arith.constant 0 : i32
    return %arg0, %arg1, %c0_i32 : i32, i32, i32
  }
  func.func @transform_12(%arg0: i32, %arg1: i32) -> (i32, i32, i32) {
    %c0_i32 = arith.constant 0 : i32
    %c0_i32_0 = arith.constant 0 : i32
    %c0_i32_1 = arith.constant 0 : i32
    return %arg0, %c0_i32, %c0_i32_0 : i32, i32, i32
  }
}

module attributes {stable_mosaic.version = 11 : i64} {
  func.func @_chain_kernel(%arg0: i32, %arg1: i32, %arg2: memref<1x128x64xbf16, #tpu.memory_space<vmem>>, %arg3: memref<1x64x128xbf16, #tpu.memory_space<vmem>>, %arg4: memref<1x1x128xf32, #tpu.memory_space<vmem>>, %arg5: memref<1x128x1024xbf16, #tpu.memory_space<vmem>>, %arg6: memref<1x1x1024xf32, #tpu.memory_space<vmem>>, %arg7: memref<1x1x1024xf32, #tpu.memory_space<vmem>>) attributes {dimension_semantics = [#tpu.dimension_semantics<parallel>, #tpu.dimension_semantics<arbitrary>], iteration_bounds = array<i64: 2, 1>, scalar_prefetch = 0 : i64, scratch_operands = 0 : i64, tpu.core_type = #tpu.core_type<tc>, window_params = [{transform_indices = @transform_0, window_bounds = array<i64: 1, 128, 64>}, {transform_indices = @transform_1, window_bounds = array<i64: 1, 64, 128>}, {pipeline_mode = #tpu.pipeline_mode<synchronous>, transform_indices = @transform_2, window_bounds = array<i64: 1, 1, 128>}, {pipeline_mode = #tpu.pipeline_mode<synchronous>, transform_indices = @transform_3, window_bounds = array<i64: 1, 128, 1024>}, {pipeline_mode = #tpu.pipeline_mode<synchronous>, transform_indices = @transform_4, window_bounds = array<i64: 1, 1, 1024>}, {transform_indices = @transform_5, window_bounds = array<i64: 1, 1, 1024>}]} {
    %c0 = arith.constant 0 : index
    %c0_0 = arith.constant 0 : index
    %c0_1 = arith.constant 0 : index
    %0 = vector.load %arg2[%c0, %c0_0, %c0_1] : memref<1x128x64xbf16, #tpu.memory_space<vmem>>, vector<1x128x64xbf16>
    %1 = vector.shape_cast %0 : vector<1x128x64xbf16> to vector<128x64xbf16>
    %c0_2 = arith.constant 0 : index
    %c0_3 = arith.constant 0 : index
    %c0_4 = arith.constant 0 : index
    %2 = vector.load %arg3[%c0_2, %c0_3, %c0_4] : memref<1x64x128xbf16, #tpu.memory_space<vmem>>, vector<1x64x128xbf16>
    %3 = vector.shape_cast %2 : vector<1x64x128xbf16> to vector<64x128xbf16>
    %c0_5 = arith.constant 0 : index
    %c0_6 = arith.constant 0 : index
    %c0_7 = arith.constant 0 : index
    %4 = vector.load %arg4[%c0_5, %c0_6, %c0_7] : memref<1x1x128xf32, #tpu.memory_space<vmem>>, vector<1x1x128xf32>
    %5 = vector.shape_cast %4 : vector<1x1x128xf32> to vector<1x128xf32>
    %cst = arith.constant dense<0.000000e+00> : vector<128x128xf32>
    %6 = tpu.matmul %1, %3, %cst {dimension_numbers = #tpu.dot_dimension_numbers<[1], [0], [0], [1], [0, 0, 1, 1], [], []>} : vector<128x64xbf16>, vector<64x128xbf16>, vector<128x128xf32> -> vector<128x128xf32>
    %7 = vector.broadcast %5 : vector<1x128xf32> to vector<128x128xf32>
    %8 = arith.addf %6, %7 : vector<128x128xf32>
    %cst_8 = arith.constant 0.000000e+00 : f32
    %9 = vector.broadcast %cst_8 : f32 to vector<128x128xf32>
    %10 = arith.maximumf %8, %9 : vector<128x128xf32>
    %c0_9 = arith.constant 0 : index
    %c0_10 = arith.constant 0 : index
    %c0_11 = arith.constant 0 : index
    %11 = vector.load %arg5[%c0_9, %c0_10, %c0_11] : memref<1x128x1024xbf16, #tpu.memory_space<vmem>>, vector<1x128x1024xbf16>
    %12 = vector.shape_cast %11 : vector<1x128x1024xbf16> to vector<128x1024xbf16>
    %c0_12 = arith.constant 0 : index
    %c0_13 = arith.constant 0 : index
    %c0_14 = arith.constant 0 : index
    %13 = vector.load %arg6[%c0_12, %c0_13, %c0_14] : memref<1x1x1024xf32, #tpu.memory_space<vmem>>, vector<1x1x1024xf32>
    %14 = vector.shape_cast %13 : vector<1x1x1024xf32> to vector<1x1024xf32>
    %15 = arith.truncf %10 : vector<128x128xf32> to vector<128x128xbf16>
    %cst_15 = arith.constant dense<0.000000e+00> : vector<128x1024xf32>
    %16 = tpu.matmul %15, %12, %cst_15 {dimension_numbers = #tpu.dot_dimension_numbers<[1], [0], [0], [1], [0, 0, 1, 1], [], []>} : vector<128x128xbf16>, vector<128x1024xbf16>, vector<128x1024xf32> -> vector<128x1024xf32>
    %c0_i32 = arith.constant 0 : i32
    %17 = arith.cmpi eq, %arg1, %c0_i32 : i32
    %18 = arith.extui %17 : i1 to i32
    %c0_i32_16 = arith.constant 0 : i32
    %19 = arith.cmpi ne, %18, %c0_i32_16 : i32
    scf.if %19 {
      %cst_26 = arith.constant 0xFF800000 : f32
      %29 = vector.broadcast %cst_26 : f32 to vector<1x1x1024xf32>
      %c0_27 = arith.constant 0 : index
      %c0_28 = arith.constant 0 : index
      %c0_29 = arith.constant 0 : index
      %30 = vector.load %arg7[%c0_27, %c0_28, %c0_29] : memref<1x1x1024xf32, #tpu.memory_space<vmem>>, vector<1x1x1024xf32>
      tpu.vector_store %arg7[%c0_27, %c0_28, %c0_29], %29 {strides = array<i32>} : memref<1x1x1024xf32, #tpu.memory_space<vmem>>, vector<1x1x1024xf32>,
    } else {
    }
    %cst_17 = arith.constant dense<0xFF800000> : vector<1024xf32>
    %20 = vector.multi_reduction <maximumf>, %16, %cst_17 [0] : vector<128x1024xf32> to vector<1024xf32>
    %21 = vector.shape_cast %20 : vector<1024xf32> to vector<1x1024xf32>
    %22 = vector.shape_cast %21 : vector<1x1024xf32> to vector<1x1x1024xf32>
    %c0_18 = arith.constant 0 : index
    %c0_19 = arith.constant 0 : index
    %c0_20 = arith.constant 0 : index
    %23 = vector.load %arg7[%c0_18, %c0_19, %c0_20] : memref<1x1x1024xf32, #tpu.memory_space<vmem>>, vector<1x1x1024xf32>
    %24 = arith.maximumf %23, %22 : vector<1x1x1024xf32>
    %c0_21 = arith.constant 0 : index
    %c0_22 = arith.constant 0 : index
    %c0_23 = arith.constant 0 : index
    %25 = vector.load %arg7[%c0_21, %c0_22, %c0_23] : memref<1x1x1024xf32, #tpu.memory_space<vmem>>, vector<1x1x1024xf32>
    tpu.vector_store %arg7[%c0_21, %c0_22, %c0_23], %24 {strides = array<i32>} : memref<1x1x1024xf32, #tpu.memory_space<vmem>>, vector<1x1x1024xf32>,
    %c0_i32_24 = arith.constant 0 : i32
    %26 = arith.cmpi eq, %arg1, %c0_i32_24 : i32
    %27 = arith.extui %26 : i1 to i32
    %c0_i32_25 = arith.constant 0 : i32
    %28 = arith.cmpi ne, %27, %c0_i32_25 : i32
    scf.if %28 {
      %c0_26 = arith.constant 0 : index
      %c0_27 = arith.constant 0 : index
      %c0_28 = arith.constant 0 : index
      %29 = vector.load %arg7[%c0_26, %c0_27, %c0_28] : memref<1x1x1024xf32, #tpu.memory_space<vmem>>, vector<1x1x1024xf32>
      %30 = vector.shape_cast %14 : vector<1x1024xf32> to vector<1x1x1024xf32>
      %31 = arith.addf %29, %30 : vector<1x1x1024xf32>
      %c0_29 = arith.constant 0 : index
      %c0_30 = arith.constant 0 : index
      %c0_31 = arith.constant 0 : index
      %32 = vector.load %arg7[%c0_29, %c0_30, %c0_31] : memref<1x1x1024xf32, #tpu.memory_space<vmem>>, vector<1x1x1024xf32>
      tpu.vector_store %arg7[%c0_29, %c0_30, %c0_31], %31 {strides = array<i32>} : memref<1x1x1024xf32, #tpu.memory_space<vmem>>, vector<1x1x1024xf32>,
    } else {
    }
    return
  }
  func.func @transform_0(%arg0: i32, %arg1: i32) -> (i32, i32, i32) {
    %c0_i32 = arith.constant 0 : i32
    %c0_i32_0 = arith.constant 0 : i32
    return %arg0, %arg1, %c0_i32 : i32, i32, i32
  }
  func.func @transform_1(%arg0: i32, %arg1: i32) -> (i32, i32, i32) {
    %c0_i32 = arith.constant 0 : i32
    %c0_i32_0 = arith.constant 0 : i32
    %c0_i32_1 = arith.constant 0 : i32
    return %arg0, %c0_i32, %c0_i32_0 : i32, i32, i32
  }
  func.func @transform_2(%arg0: i32, %arg1: i32) -> (i32, i32, i32) {
    %c0_i32 = arith.constant 0 : i32
    %c0_i32_0 = arith.constant 0 : i32
    %c0_i32_1 = arith.constant 0 : i32
    %c0_i32_2 = arith.constant 0 : i32
    return %c0_i32, %c0_i32_0, %c0_i32_1 : i32, i32, i32
  }
  func.func @transform_3(%arg0: i32, %arg1: i32) -> (i32, i32, i32) {
    %c0_i32 = arith.constant 0 : i32
    %c0_i32_0 = arith.constant 0 : i32
    %c0_i32_1 = arith.constant 0 : i32
    %c0_i32_2 = arith.constant 0 : i32
    return %c0_i32, %c0_i32_0, %c0_i32_1 : i32, i32, i32
  }
  func.func @transform_4(%arg0: i32, %arg1: i32) -> (i32, i32, i32) {
    %c0_i32 = arith.constant 0 : i32
    %c0_i32_0 = arith.constant 0 : i32
    %c0_i32_1 = arith.constant 0 : i32
    %c0_i32_2 = arith.constant 0 : i32
    return %c0_i32, %c0_i32_0, %c0_i32_1 : i32, i32, i32
  }
  func.func @transform_5(%arg0: i32, %arg1: i32) -> (i32, i32, i32) {
    %c0_i32 = arith.constant 0 : i32
    %c0_i32_0 = arith.constant 0 : i32
    %c0_i32_1 = arith.constant 0 : i32
    return %arg0, %c0_i32, %c0_i32_0 : i32, i32, i32
  }
}

</mosaic_0001>

<bundles_post_ra>
// kernel: encoder_forward.3
= control target key start
LH: loop header
LB: loop body
LE: loop exit
PB: predicated region body
PF: predicated region fallthrough
CT: control target
= control target key end

     0   :  { %12 = vsyncpa [#allocation3], 0  ;;  %s2829_s0 = inlined_call_operand.vmem [shape: bf16[2,128,8], index: 0, kind: input, shape index: {}]   ;;  %s2830_s1 = inlined_call_operand.vmem [shape: bf16[1,8,64], index: 1, kind: input, shape index: {}]   ;;  %s2831_s2 = inlined_call_operand.hbm [shape: f32[1,1,64], index: 2, kind: input, shape index: {}]   ;;  %s2832_s3 = inlined_call_operand.vmem [shape: bf16[1,64,128], index: 3, kind: input, shape index: {}]   ;;  %s2833_s4 = inlined_call_operand.hbm [shape: f32[1,1,128], index: 4, kind: input, shape index: {}]   ;;  %s2834_s5 = inlined_call_operand.vmem [shape: bf16[1,128,1024], index: 5, kind: input, shape index: {}]   ;;  %s2835_s6 = inlined_call_operand.hbm [shape: f32[1,1,1024], index: 6, kind: input, shape index: {}]   ;;  %s2836_s7 = inlined_call_operand.vmem [shape: f32[2,1,1024], index: 7, kind: output, shape index: {}]  }
   0x1   :  { %13 = vsyncpa [#allocation5], 0  ;;  %s2326_s24 = smov 0   ;;  %s2328_s25 = smov 0  }
   0x2   :  { %s2330_s26 = smov 0  }
   0x3 LB: > { %s2281_s27 = smov [#allocation4]   ;;  %s1920_s29 = sadd.s32 4294967295, %s2279_s26   ;;  %s2279_s26 = sphi %s2330_s26, %s19_s26   ;;  %s2275_s25 = sphi %s2328_s25, %s2849_s25   ;;  %s2271_s24 = sphi %s2326_s24, %s2848_s24  }
   0x4   : > { %s246_s28 = sshll.u32 %s2281_s27, 4  ;;  %p1922_p0 = scmp.ge.s32.totalorder %s2279_s26, 1  ;;  %s247_s28 = int_to_ptr.vmem [resolvable:$true] %s246_s28 }
   0x5   : > { %p216_p1 = scmp.lt.s32.totalorder %s2279_s26, 3  ;;  %p2344_p2 = scmp.eq.s32.totalorder %s1920_s29, 0 }
   0x6   : > { %s31_s9 = sadd.s32 1, %s2275_s25  ;;  %s2282_s12 = smov [#allocation2]  }
   0x7   : > { %s2840_s30 = scalar_select %p2344_p2, 1, 0 }
   0x8   : > { %p2348_p3 = pnand %p1922_p0, %p216_p1  ;;  %p2361_p6 = scmp.ge.s32.totalorder %s31_s9, 2 }
   0x9   : > { %s232_s13 = sshll.u32 %s2282_s12, 4  ;;  %s2165_s16 = scalar_lea.hbm %s2833_s4, 16  ;;  %s2365_s13 = int_to_ptr.vmem [resolvable:$true] %s232_s13 }
   0xa   : > { %s2841_s8 = scalar_select %p2348_p3, 1, 0 }
   0xb   : > { %p2107_p4 = pneg %p2348_p3  ;;  %p2166_p7 = scmp.ne.s32.totalorder %s2833_s4, %s2165_s16 }
   0xc   : > { %s2843_s11 = scalar_select %p2361_p6, 1, 0 }
   0xd   : > { %p2357_p5 = pnand %p2344_p2, %p2107_p4  ;;  %p2172_p11 = scmp.lt.u32.totalorder %s2165_s16, %s2833_s4 }
   0xf   : > { %p2375_p8 = pneg %p2357_p5 }
  0x11   : > { %p2168_p9 = pnand %p2375_p8, %p2166_p7 }
  0x13   : > { %p2169_p10 = pneg %p2168_p9 }
  0x15   : > { %p2174_p12 = pnand %p2172_p11, %p2169_p10 }
  0x17   : > { %2177 = shalt.err (!%p2174_p12)
}
  0x18   : > { %s2178_s22 = scalar_lea.vmem %s247_s28, 16  ;;  %s2185_s23 = scalar_lea.vmem %s247_s28, 32 }
  0x19   : > { %p2179_p13 = scmp.ne.s32.totalorder %s247_s28, %s2178_s22  ;;  %p2186_p4 = scmp.lt.s32.totalorder %s247_s28, %s247_s28 }
  0x1a   : > { %p2187_p2 = scmp.lt.s32.totalorder %s2185_s23, %s2178_s22 }
  0x1b   : > { %p2181_p0 = pnand %p2179_p13, %p2375_p8 }
  0x1c   : > { %p2188_p3 = por %p2187_p2, %p2186_p4 }
  0x1d   : > { %p2182_p1 = pneg %p2181_p0 }
  0x1f   : > { %p2189_p6 = pnand %p2188_p3, %p2182_p1 }
  0x21   : > { %2192 = shalt.err (!%p2189_p6)
}
  0x22   : > { %2113 = dma.hbm_to_vmem [thread:$0]  (!%p2357_p5), %s2833_s4, 16, %s247_s28, [#allocation5]  }
  0x23   : > { %p2845_p7 = scmp.ne.s32.totalorder %s2843_s11, 0  ;;  %s2193_s15 = scalar_lea.hbm %s2831_s2, 16 }
  0x24   : > { %p2194_p2 = scmp.ne.s32.totalorder %s2831_s2, %s2193_s15  ;;  %p2200_p9 = scmp.lt.u32.totalorder %s2193_s15, %s2831_s2 }
  0x25   : > { %s2851_s9 = smov (%p2845_p7, %s31_s9), 0 }
  0x26   : > { %p2196_p3 = pnand %p2194_p2, %p2375_p8 }
  0x28   : > { %p2197_p6 = pneg %p2196_p3 }
  0x2a   : > { %p2202_p10 = pnand %p2200_p9, %p2197_p6 }
  0x2c   : > { %2205 = shalt.err (!%p2202_p10)
}
  0x2d   : > { %s2206_s28 = scalar_lea.vmem %s2365_s13, 16  ;;  %s2213_s11 = scalar_lea.vmem %s2365_s13, 32 }
  0x2e   : > { %p2207_p11 = scmp.ne.s32.totalorder %s2365_s13, %s2206_s28  ;;  %p2214_p0 = scmp.lt.s32.totalorder %s2365_s13, %s2365_s13 }
  0x2f   : > { %p2215_p1 = scmp.lt.s32.totalorder %s2213_s11, %s2206_s28 }
  0x30   : > { %p2209_p12 = pnand %p2207_p11, %p2375_p8 }
  0x31   : > { %p2216_p4 = por %p2215_p1, %p2214_p0 }
  0x32   : > { %p2210_p13 = pneg %p2209_p12 }
  0x34   : > { %p2217_p7 = pnand %p2216_p4, %p2210_p13 }
  0x36   : > { %2220 = shalt.err (!%p2217_p7)
}
  0x37   : > { %2110 = dma.hbm_to_vmem [thread:$0]  (!%p2357_p5), %s2831_s2, 16, %s2365_s13, [#allocation3]  }
  0x38   : > { %s2283_s23 = smov [#allocation6]   ;;  %s2221_s14 = scalar_lea.hbm %s2835_s6, 128 }
  0x39   : > { %s260_s27 = sshll.u32 %s2283_s23, 4  ;;  %p2222_p2 = scmp.ne.s32.totalorder %s2835_s6, %s2221_s14  ;;  %s261_s27 = int_to_ptr.vmem [resolvable:$true] %s260_s27 }
  0x3a   : > { %p2228_p9 = scmp.lt.u32.totalorder %s2221_s14, %s2835_s6 }
  0x3b   : > { %p2224_p3 = pnand %p2222_p2, %p2375_p8 }
  0x3d   : > { %p2225_p6 = pneg %p2224_p3 }
  0x3f   : > { %p2230_p10 = pnand %p2228_p9, %p2225_p6 }
  0x41   : > { %2233 = shalt.err (!%p2230_p10)
}
  0x42   : > { %s2234_s13 = scalar_lea.vmem %s261_s27, 128  ;;  %p2242_p0 = scmp.lt.s32.totalorder %s261_s27, %s261_s27 }
  0x43   : > { %p2235_p11 = scmp.ne.s32.totalorder %s261_s27, %s2234_s13  ;;  %p2243_p1 = scmp.lt.s32.totalorder %s2234_s13, %s2234_s13 }
  0x45   : > { %p2237_p12 = pnand %p2235_p11, %p2375_p8  ;;  %p2244_p4 = por %p2243_p1, %p2242_p0 }
  0x47   : > { %p2238_p13 = pneg %p2237_p12 }
  0x49   : > { %p2245_p7 = pnand %p2244_p4, %p2238_p13 }
  0x4b   : > { %2248 = shalt.err (!%p2245_p7)
}
  0x4c   : > { %2116 = dma.hbm_to_vmem [thread:$0]  (!%p2357_p5), %s2835_s6, 128, %s261_s27, [#allocation5]  }
  0x4d   : > { %p2846_p2 = scmp.ne.s32.totalorder %s2841_s8, 0 }
  0x4e   : > { %p2847_p3 = scmp.ne.s32.totalorder (!%p2846_p2), %s2840_s30, 0 }
  0x4f   : > { %286 = sbr.rel (%p2846_p2) target bundleno = 903 (0x387), region = 48 }
  0x56   : > { %2262 = dma.done.wait (%p2847_p3), [#allocation3], 16  }
  0x57   : > { %2264 = vsyncadd (%p2847_p3), [#allocation3], 4294967280 }
  0x58   : > { %2266 = dma.done.wait (%p2847_p3), [#allocation5], 144  }
  0x59   : > { %2268 = vsyncadd (%p2847_p3), [#allocation5], 4294967152  ;;  %p330_p8 = scmp.lt.s32.totalorder %s2271_s24, 1  ;;  %vm433_vm0 = vcmask 1043456   ;;  %vm408_vm1 = vcmask 64512   ;;  %v2161_v7 = vld [vmem:[%s2832_s3] sm:$0xff]  }
  0x5a   : > { %v360_v0 = vld [vmem:[%s2830_s1] sm:$0xf]  ;;  %v2162_v8 = vld [vmem:[%s2832_s3 + $0x8] sm:$0xff]   ;;  %2070 = vmatprep.subr.bf16.mxu1 %v2161_v7  ;;  %v2163_v12 = vld [vmem:[%s2832_s3 + $0x10] sm:$0xff]   ;;  %vm597_vm2 = vcmask 523264  }
  0x5b   : > { %s2853_s24 = smov (!%p330_p8, %s2271_s24), 1  ;;  %2094 = vmatprep.subr.msk.bf16.mxu0 %vm433_vm0, %v360_v0  ;;  %v435_v1 = vsel %vm433_vm0, %v360_v0, 0  ;;  %2071 = vmatpush3.bf16.msra.mxu1 %v2161_v7  ;;  %v2164_v13 = vld [vmem:[%s2832_s3 + $0x18] sm:$0xff]   ;;  %v735_v14 = vld [vmem:[%s2834_s5] sm:$0xff]  ;;  %v2487_v16 = vld [vmem:[%s2834_s5 + $0x8] sm:$0xff] }
  0x5c   : > { %s2030_s8 = sshll.u32 %s2853_s24, 6  ;;  %2053 = vmatpush3.bf16.msra.mxu0 %v435_v1  ;;  %2072 = vmatprep.subr.bf16.mxu1 %v2162_v8  ;;  %v739_v15 = vld [vmem:[%s2834_s5 + $0x20] sm:$0xff]  ;;  %v2492_v19 = vld [vmem:[%s2834_s5 + $0x28] sm:$0xff]  ;;  %s1933_s29 = sshll.u32 %s2853_s24, 3 }
  0x5d   : > { %s337_s11 = scalar_lea.vmem %s2829_s0, %s2030_s8  ;;  %v1964_v17 = vcombine.low %v735_v14, %v739_v15  ;;  %v1965_v18 = vcombine.high %v735_v14, %v739_v15  ;;  %v743_v20 = vld [vmem:[%s2834_s5 + $0x40] sm:$0xff]  ;;  %v1966_v22 = vcombine.low %v2487_v16, %v2492_v19  ;;  %v1967_v23 = vcombine.high %v2487_v16, %v2492_v19  ;;  %v744_v55 = vld [vmem:[%s2834_s5 + $0x48] sm:$0xff]  ;;  %s342_s15 = scalar_lea.vmem %s2836_s7, %s1933_s29 }
  0x5e   : > { %v2153_v2 = vld [vmem:[%s337_s11] sm:$0xff]   ;;  %v2154_v3 = vld [vmem:[%s337_s11 + $0x8] sm:$0xff]   ;;  %v2155_v4 = vld [vmem:[%s337_s11 + $0x10] sm:$0xff]  }
  0x5f   : > { %2054 = vmatprep.mubr.msk.bf16.mxu0 %vm408_vm1, %v2153_v2  ;;  %v2156_v5 = vld [vmem:[%s337_s11 + $0x18] sm:$0xff]   ;;  %v2157_v6 = vld [vmem:[%s337_s11 + $0x20] sm:$0xff]   ;;  %2073 = vmatpush3.bf16.msra.mxu1 %v2162_v8  ;;  %v2158_v9 = vld [vmem:[%s337_s11 + $0x28] sm:$0xff]  }
  0x60   : > { %2055 = vmatmul.mubr.msk.bf16.vlgmr.msra.gmra.mrb[0].mxu0 %vm408_vm1, %v2154_v3  ;;  %v2159_v10 = vld [vmem:[%s337_s11 + $0x30] sm:$0xff]   ;;  %v2160_v11 = vld [vmem:[%s337_s11 + $0x38] sm:$0xff]   ;;  %2074 = vmatprep.subr.bf16.mxu1 %v2163_v12  ;;  %v747_v21 = vld [vmem:[%s2834_s5 + $0x60] sm:$0xff] }
  0x61   : > { %2058 = vmatprep.mubr.msk.bf16.mxu0 %vm408_vm1, %v2155_v4  ;;  %v1973_v24 = vcombine.high %v743_v20, %v747_v21  ;;  %v751_v25 = vld [vmem:[%s2834_s5 + $0x80] sm:$0xff]  ;;  %1128 = vmatprep.subr.bf16.mxu0 %v1965_v18  ;;  %v1972_v27 = vcombine.low %v743_v20, %v747_v21  ;;  %v748_v56 = vld [vmem:[%s2834_s5 + $0x68] sm:$0xff] }
  0x62   : > { %v755_v26 = vld [vmem:[%s2834_s5 + $0xa0] sm:$0xff]  ;;  %1129 = vmatpush1.bf16.msra.mxu0 %v1964_v17  ;;  %v1975_v62 = vcombine.high %v744_v55, %v748_v56  ;;  %v752_v1 = vld [vmem:[%s2834_s5 + $0x88] sm:$0xff]  ;;  %v1974_v8 = vcombine.low %v744_v55, %v748_v56 }
  0x63   : > { %2075 = vmatpush3.bf16.msra.mxu1 %v2163_v12  ;;  %1130 = vmatprep.subr.bf16.mxu0 %v1973_v24  ;;  %v1981_v28 = vcombine.high %v751_v25, %v755_v26  ;;  %v759_v29 = vld [vmem:[%s2834_s5 + $0xc0] sm:$0xff]  ;;  %v1980_v31 = vcombine.low %v751_v25, %v755_v26  ;;  %v756_v2 = vld [vmem:[%s2834_s5 + $0xa8] sm:$0xff] }
  0x64   : > { %2076 = vmatprep.subr.bf16.mxu1 %v2164_v13  ;;  %v763_v30 = vld [vmem:[%s2834_s5 + $0xe0] sm:$0xff]  ;;  %v760_v12 = vld [vmem:[%s2834_s5 + $0xc8] sm:$0xff]  ;;  %v1982_v18 = vcombine.low %v752_v1, %v756_v2 }
  0x65   : > { %v1989_v32 = vcombine.high %v759_v29, %v763_v30  ;;  %v767_v33 = vld [vmem:[%s2834_s5 + $0x100] sm:$0xff]  ;;  %v1988_v35 = vcombine.low %v759_v29, %v763_v30  ;;  %v772_v24 = vld [vmem:[%s2834_s5 + $0x128] sm:$0xff] }
  0x66   : > { %1131 = vmatpush1.bf16.msra.mxu0 %v1972_v27  ;;  %v771_v34 = vld [vmem:[%s2834_s5 + $0x120] sm:$0xff] }
  0x67   : > { %2077 = vmatpush3.bf16.msra.mxu1 %v2164_v13  ;;  %1132 = vmatprep.subr.bf16.mxu0 %v1981_v28  ;;  %v1997_v36 = vcombine.high %v767_v33, %v771_v34  ;;  %v775_v37 = vld [vmem:[%s2834_s5 + $0x140] sm:$0xff]  ;;  %v1996_v39 = vcombine.low %v767_v33, %v771_v34  ;;  %v764_v13 = vld [vmem:[%s2834_s5 + $0xe8] sm:$0xff] }
  0x68   : > { %2059 = vmatmul.mubr.msk.bf16.gmra.mrb[4].mxu0 %vm408_vm1, %v2156_v5  ;;  %1241 = vmatprep.subr.bf16.mxu1 %v1967_v23  ;;  %v779_v38 = vld [vmem:[%s2834_s5 + $0x160] sm:$0xff]  ;;  %v1991_v20 = vcombine.high %v760_v12, %v764_v13  ;;  %v768_v23 = vld [vmem:[%s2834_s5 + $0x108] sm:$0xff]  ;;  %v1990_v30 = vcombine.low %v760_v12, %v764_v13  ;;  %v742_v13 = vld [vmem:[%s2834_s5 + $0x38] sm:$0xff] }
  0x69   : > { %2062 = vmatprep.mubr.msk.bf16.mxu0 %vm408_vm1, %v2157_v6  ;;  %v2005_v40 = vcombine.high %v775_v37, %v779_v38  ;;  %v2004_v41 = vcombine.low %v775_v37, %v779_v38  ;;  %v2528_v42 = vld [vmem:[#allocation2] ss:$0 sm:$0xff]  ;;  %v776_v34 = vld [vmem:[%s2834_s5 + $0x148] sm:$0xff] }
  0x6a   : > { %1133 = vmatpush1.bf16.msra.mxu0 %v1980_v31  ;;  %v783_v56 = vld [vmem:[%s2834_s5 + $0x180] sm:$0xff] }
  0x6b   : > { %1134 = vmatprep.subr.bf16.mxu0 %v1989_v32  ;;  %v1999_v32 = vcombine.high %v768_v23, %v772_v24 }
  0x6e   : > { %1135 = vmatpush1.bf16.msra.mxu0 %v1988_v35  ;;  %v780_v35 = vld [vmem:[%s2834_s5 + $0x168] sm:$0xff] }
  0x6f   : > { %1136 = vmatprep.subr.bf16.mxu0 %v1997_v36 }
  0x70   : > { %2063 = vmatmul.mubr.msk.bf16.gmra.mrb[8].mxu0 %vm408_vm1, %v2158_v9 }
  0x71   : > { %2066 = vmatprep.mubr.msk.bf16.mxu0 %vm408_vm1, %v2159_v10  ;;  %v1983_v10 = vcombine.high %v752_v1, %v756_v2  ;;  %v792_v1 = vld [vmem:[%s2834_s5 + $0x1c8] sm:$0xff] }
  0x72   : > { %1137 = vmatpush1.bf16.msra.mxu0 %v1996_v39  ;;  %v1998_v39 = vcombine.low %v768_v23, %v772_v24 }
  0x73   : > { %1138 = vmatprep.subr.bf16.mxu0 %v2005_v40 }
  0x76   : > { %1139 = vmatpush1.bf16.msra.mxu0 %v2004_v41 }
  0x78   : > { %2067 = vmatmul.mubr.msk.bf16.gmra.mrb[12].mxu0 %vm408_vm1, %v2160_v11 }
 0x133   : > { %v2056_v43 = vpop.f32.mrb[0].mxu0 }
 0x134   : > { %v480_v44 = vadd.f32 %v2056_v43, %v2528_v42  ;;  %v471_v45 = vpop.f32.mrb[1].mxu0  ;;  %v2007_v43 = vcombine.high %v776_v34, %v780_v35 }
 0x135   : > { %v472_v46 = vadd.f32 %v2528_v42, %v471_v45  ;;  %v2057_v47 = vpop.f32.mrb[2].mxu0 }
 0x136   : > { %v483_v48 = vadd.f32 %v2057_v47, %v2528_v42  ;;  %v474_v49 = vpop.f32.mrb[3].mxu0  ;;  %v536_v51 = vmax.f32 %v480_v44, 0.0 }
 0x137   : > { %v475_v50 = vadd.f32 %v2528_v42, %v474_v49  ;;  %v534_v53 = vmax.f32 %v472_v46, 0.0 }
 0x138   : > { %v537_v52 = vmax.f32 %v483_v48, 0.0 }
 0x139   : > { %v535_v54 = vmax.f32 %v475_v50, 0.0 }
 0x13a   : > { %v560_v57 = vpack.c.bf16 %v537_v52, %v536_v51  ;;  %v2006_v51 = vcombine.low %v776_v34, %v780_v35 }
 0x13b   : > { %v2060_v58 = vpop.f32.mrb[4].mxu0  ;;  %v559_v59 = vpack.c.bf16 %v535_v54, %v534_v53 }
 0x13c   : > { %v496_v60 = vadd.f32 %v2060_v58, %v2528_v42  ;;  %v487_v61 = vpop.f32.mrb[5].mxu0 }
 0x13d   : > { %v488_v63 = vadd.f32 %v2528_v42, %v487_v61  ;;  %2078 = vmatprep.mubr.msk.bf16.mxu1 %vm597_vm2, %v559_v59  ;;  %v2061_v0 = vpop.f32.mrb[6].mxu0  ;;  %v788_v59 = vld [vmem:[%s2834_s5 + $0x1a8] sm:$0xff] }
 0x13e   : > { %v540_v3 = vmax.f32 %v496_v60, 0.0  ;;  %v499_v4 = vadd.f32 %v2061_v0, %v2528_v42  ;;  %2079 = vmatmul.mubr.msk.bf16.vlgmr.msra.gmra.mrb[0].mxu1 %vm597_vm2, %v560_v57  ;;  %v490_v5 = vpop.f32.mrb[7].mxu0  ;;  %v784_v57 = vld [vmem:[%s2834_s5 + $0x188] sm:$0xff]  ;;  %v795_v0 = vld [vmem:[%s2834_s5 + $0x1e0] sm:$0xff] }
 0x13f   : > { %v538_v6 = vmax.f32 %v488_v63, 0.0  ;;  %v491_v7 = vadd.f32 %v2528_v42, %v490_v5  ;;  %1242 = vmatpush1.bf16.msra.mxu1 %v1966_v22  ;;  %v2014_v61 = vcombine.low %v784_v57, %v788_v59  ;;  %v791_v63 = vld [vmem:[%s2834_s5 + $0x1c0] sm:$0xff] }
 0x140   : > { %v541_v9 = vmax.f32 %v499_v4, 0.0  ;;  %1243 = vmatprep.subr.bf16.mxu1 %v1975_v62  ;;  %v2015_v62 = vcombine.high %v784_v57, %v788_v59  ;;  %v2021_v2 = vcombine.high %v791_v63, %v795_v0  ;;  %v2020_v4 = vcombine.low %v791_v63, %v795_v0  ;;  %v762_v59 = vld [vmem:[%s2834_s5 + $0xd8] sm:$0xff] }
 0x141   : > { %v539_v11 = vmax.f32 %v491_v7, 0.0  ;;  %v2284_v7 = vmov 0  }
 0x142   : > { %v562_v14 = vpack.c.bf16 %v541_v9, %v540_v3  ;;  %v796_v3 = vld [vmem:[%s2834_s5 + $0x1e8] sm:$0xff]  ;;  %1160 = vmatprep.mubr.bf16.mxu0 %v2284_v7  ;;  %v741_v9 = vld [vmem:[%s2834_s5 + $0x30] sm:$0xff] }
 0x143   : > { %v561_v15 = vpack.c.bf16 %v539_v11, %v538_v6  ;;  %v2064_v17 = vpop.f32.mrb[8].mxu0  ;;  %1244 = vmatpush1.bf16.msra.mxu1 %v1974_v8  ;;  %v2022_v5 = vcombine.low %v792_v1, %v796_v3  ;;  %v2023_v6 = vcombine.high %v792_v1, %v796_v3  ;;  %v737_v8 = vld [vmem:[%s2834_s5 + $0x10] sm:$0xff] }
 0x144   : > { %v512_v16 = vadd.f32 %v2064_v17, %v2528_v42  ;;  %v503_v19 = vpop.f32.mrb[9].mxu0  ;;  %1245 = vmatprep.subr.bf16.mxu1 %v1983_v10  ;;  %v738_v10 = vld [vmem:[%s2834_s5 + $0x18] sm:$0xff]  ;;  %v1968_v11 = vcombine.low %v737_v8, %v741_v9  ;;  %v1969_v12 = vcombine.high %v737_v8, %v741_v9  ;;  %v2625_v17 = vld [vmem:[#allocation4] ss:$0 sm:$0xff] }
 0x145   : > { %2082 = vmatprep.mubr.msk.bf16.mxu1 %vm597_vm2, %v561_v15  ;;  %v504_v21 = vadd.f32 %v2528_v42, %v503_v19  ;;  %v2065_v22 = vpop.f32.mrb[10].mxu0  ;;  %v1971_v15 = vcombine.high %v738_v10, %v742_v13 }
 0x146   : > { %2083 = vmatmul.mubr.msk.bf16.gmra.mrb[4].mxu1 %vm597_vm2, %v562_v14  ;;  %v544_v25 = vmax.f32 %v512_v16, 0.0  ;;  %v515_v26 = vadd.f32 %v2065_v22, %v2528_v42  ;;  %v506_v27 = vpop.f32.mrb[11].mxu0  ;;  %v1970_v14 = vcombine.low %v738_v10, %v742_v13  ;;  %v773_v10 = vld [vmem:[%s2834_s5 + $0x130] sm:$0xff] }
 0x147   : > { %v542_v28 = vmax.f32 %v504_v21, 0.0  ;;  %v507_v29 = vadd.f32 %v2528_v42, %v506_v27  ;;  %1246 = vmatpush1.bf16.msra.mxu1 %v1982_v18  ;;  %v745_v27 = vld [vmem:[%s2834_s5 + $0x50] sm:$0xff] }
 0x148   : > { %v545_v31 = vmax.f32 %v515_v26, 0.0  ;;  %1247 = vmatprep.subr.bf16.mxu1 %v1991_v20 }
 0x149   : > { %v543_v33 = vmax.f32 %v507_v29, 0.0 }
 0x14a   : > { %v564_v36 = vpack.c.bf16 %v545_v31, %v544_v25  ;;  %v746_v31 = vld [vmem:[%s2834_s5 + $0x58] sm:$0xff] }
 0x14b   : > { %v563_v37 = vpack.c.bf16 %v543_v33, %v542_v28  ;;  %v2068_v38 = vpop.f32.mrb[12].mxu0  ;;  %1248 = vmatpush1.bf16.msra.mxu1 %v1990_v30  ;;  %v749_v30 = vld [vmem:[%s2834_s5 + $0x70] sm:$0xff] }
 0x14c   : > { %v528_v40 = vadd.f32 %v2068_v38, %v2528_v42  ;;  %v519_v41 = vpop.f32.mrb[13].mxu0  ;;  %1249 = vmatprep.subr.bf16.mxu1 %v1999_v32  ;;  %v750_v32 = vld [vmem:[%s2834_s5 + $0x78] sm:$0xff] }
 0x14d   : > { %2086 = vmatprep.mubr.msk.bf16.mxu1 %vm597_vm2, %v563_v37  ;;  %v520_v44 = vadd.f32 %v2528_v42, %v519_v41  ;;  %v2069_v45 = vpop.f32.mrb[14].mxu0  ;;  %v757_v41 = vld [vmem:[%s2834_s5 + $0xb0] sm:$0xff] }
 0x14e   : > { %2087 = vmatmul.mubr.msk.bf16.gmra.mrb[8].mxu1 %vm597_vm2, %v564_v36  ;;  %v548_v46 = vmax.f32 %v528_v40, 0.0  ;;  %v531_v47 = vadd.f32 %v2069_v45, %v2528_v42  ;;  %v522_v48 = vpop.f32.mrb[15].mxu0  ;;  %v753_v36 = vld [vmem:[%s2834_s5 + $0x90] sm:$0xff]  ;;  %v1979_v40 = vcombine.high %v746_v31, %v750_v32 }
 0x14f   : > { %v546_v49 = vmax.f32 %v520_v44, 0.0  ;;  %v523_v50 = vadd.f32 %v2528_v42, %v522_v48  ;;  %1250 = vmatpush1.bf16.msra.mxu1 %v1998_v39  ;;  %v787_v42 = vld [vmem:[%s2834_s5 + $0x1a0] sm:$0xff]  ;;  %v1977_v39 = vcombine.high %v745_v27, %v749_v30  ;;  %v758_v44 = vld [vmem:[%s2834_s5 + $0xb8] sm:$0xff]  ;;  %v1984_v0 = vcombine.low %v753_v36, %v757_v41 }
 0x150   : > { %v549_v52 = vmax.f32 %v531_v47, 0.0  ;;  %1251 = vmatprep.subr.bf16.mxu1 %v2007_v43  ;;  %v2013_v58 = vcombine.high %v783_v56, %v787_v42  ;;  %v2012_v60 = vcombine.low %v783_v56, %v787_v42  ;;  %v754_v43 = vld [vmem:[%s2834_s5 + $0x98] sm:$0xff]  ;;  %v761_v42 = vld [vmem:[%s2834_s5 + $0xd0] sm:$0xff] }
 0x151   : > { %v547_v53 = vmax.f32 %v523_v50, 0.0  ;;  %v1976_v50 = vcombine.low %v745_v27, %v749_v30  ;;  %v1986_v1 = vcombine.low %v754_v43, %v758_v44  ;;  %v778_v27 = vld [vmem:[%s2834_s5 + $0x158] sm:$0xff] }
 0x152   : > { %v566_v54 = vpack.c.bf16 %v549_v52, %v548_v46  ;;  %1140 = vmatprep.subr.bf16.mxu0 %v2013_v58  ;;  %v765_v58 = vld [vmem:[%s2834_s5 + $0xf0] sm:$0xff] }
 0x153   : > { %v565_v55 = vpack.c.bf16 %v547_v53, %v546_v49  ;;  %1252 = vmatpush1.bf16.msra.mxu1 %v2006_v51  ;;  %1141 = vmatpush1.bf16.msra.mxu0 %v2012_v60  ;;  %v1978_v51 = vcombine.low %v746_v31, %v750_v32  ;;  %v766_v60 = vld [vmem:[%s2834_s5 + $0xf8] sm:$0xff] }
 0x154   : > { %1253 = vmatprep.subr.bf16.mxu1 %v2015_v62  ;;  %1142 = vmatprep.subr.bf16.mxu0 %v2021_v2 }
 0x155   : > { %2090 = vmatprep.mubr.msk.bf16.mxu1 %vm597_vm2, %v565_v55  ;;  %v1987_v55 = vcombine.high %v754_v43, %v758_v44  ;;  %v789_v44 = vld [vmem:[%s2834_s5 + $0x1b0] sm:$0xff] }
 0x156   : > { %2091 = vmatmul.mubr.msk.bf16.gmra.mrb[12].mxu1 %vm597_vm2, %v566_v54  ;;  %v1985_v54 = vcombine.high %v753_v36, %v757_v41 }
 0x157   : > { %1254 = vmatpush1.bf16.msra.mxu1 %v2014_v61  ;;  %1143 = vmatpush1.bf16.msra.mxu0 %v2020_v4  ;;  %v1993_v4 = vcombine.high %v761_v42, %v765_v58 }
 0x158   : > { %1255 = vmatprep.subr.bf16.mxu1 %v2023_v6  ;;  %1273 = vmatprep.mubr.bf16.mxu1 %v2284_v7  ;;  %v769_v6 = vld [vmem:[%s2834_s5 + $0x110] sm:$0xff] }
 0x159   : > { %1354 = vmatprep.subr.bf16.mxu0 %v1969_v12  ;;  %v774_v12 = vld [vmem:[%s2834_s5 + $0x138] sm:$0xff]  ;;  %v2000_v32 = vcombine.low %v769_v6, %v773_v10 }
 0x15b   : > { %1256 = vmatpush1.bf16.msra.mxu1 %v2022_v5  ;;  %v1995_v5 = vcombine.high %v762_v59, %v766_v60 }
 0x15c   : > { %1467 = vmatprep.subr.bf16.mxu1 %v1971_v15 }
 0x211   : > { %v2080_v18 = vpop.f32.mrb[0].mxu1 }
 0x212   : > { %v665_v16 = vadd.f32 %v2080_v18, %v2625_v17  ;;  %v656_v19 = vpop.f32.mrb[1].mxu1 }
 0x213   : > { %v657_v20 = vadd.f32 %v2625_v17, %v656_v19  ;;  %v2081_v21 = vpop.f32.mrb[2].mxu1  ;;  %v1992_v19 = vcombine.low %v761_v42, %v765_v58  ;;  %v793_v42 = vld [vmem:[%s2834_s5 + $0x1d0] sm:$0xff] }
 0x214   : > { %v668_v22 = vadd.f32 %v2081_v21, %v2625_v17  ;;  %v659_v23 = vpop.f32.mrb[3].mxu1  ;;  %v721_v25 = vmax.f32 %v665_v16, 0.0  ;;  %v797_v58 = vld [vmem:[%s2834_s5 + $0x1f0] sm:$0xff] }
 0x215   : > { %v660_v24 = vadd.f32 %v2625_v17, %v659_v23  ;;  %v719_v28 = vmax.f32 %v657_v20, 0.0  ;;  %v1994_v20 = vcombine.low %v762_v59, %v766_v60  ;;  %v798_v59 = vld [vmem:[%s2834_s5 + $0x1f8] sm:$0xff] }
 0x216   : > { %v722_v26 = vmax.f32 %v668_v22, 0.0  ;;  %v2001_v22 = vcombine.high %v769_v6, %v773_v10 }
 0x217   : > { %v720_v29 = vmax.f32 %v660_v24, 0.0  ;;  %v777_v24 = vld [vmem:[%s2834_s5 + $0x150] sm:$0xff] }
 0x218   : > { %v2643_v33 = vpack.c.bf16 %v722_v26, %v721_v25  ;;  %v781_v26 = vld [vmem:[%s2834_s5 + $0x170] sm:$0xff] }
 0x219   : > { %v2645_v34 = vpack.c.bf16 %v720_v29, %v719_v28  ;;  %v2084_v35 = vpop.f32.mrb[4].mxu1  ;;  %v782_v28 = vld [vmem:[%s2834_s5 + $0x178] sm:$0xff] }
 0x21a   : > { %v681_v37 = vadd.f32 %v2084_v35, %v2625_v17  ;;  %v672_v38 = vpop.f32.mrb[5].mxu1 }
 0x21b   : > { %v673_v45 = vadd.f32 %v2625_v17, %v672_v38  ;;  %1161 = vmatmul.mubr.bf16.vlgmr.msra.gmra.mrb[16].mxu0 %v2645_v34  ;;  %1274 = vmatmul.mubr.bf16.vlgmr.msra.gmra.mrb[16].mxu1 %v2645_v34  ;;  %v2085_v46 = vpop.f32.mrb[6].mxu1  ;;  %v2009_v38 = vcombine.high %v777_v24, %v781_v26 }
 0x21c   : > { %v725_v47 = vmax.f32 %v681_v37, 0.0  ;;  %1355 = vmatpush1.bf16.msra.mxu0 %v1968_v11  ;;  %1468 = vmatpush1.bf16.msra.mxu1 %v1970_v14  ;;  %v684_v48 = vadd.f32 %v2085_v46, %v2625_v17  ;;  %v675_v49 = vpop.f32.mrb[7].mxu1  ;;  %v770_v11 = vld [vmem:[%s2834_s5 + $0x118] sm:$0xff] }
 0x21d   : > { %v723_v52 = vmax.f32 %v673_v45, 0.0  ;;  %v676_v53 = vadd.f32 %v2625_v17, %v675_v49  ;;  %1170 = vmatprep.mubr.bf16.mxu0 %v2284_v7  ;;  %1283 = vmatprep.mubr.bf16.mxu1 %v2284_v7  ;;  %v2003_v23 = vcombine.high %v770_v11, %v774_v12  ;;  %v2002_v35 = vcombine.low %v770_v11, %v774_v12  ;;  %v786_v45 = vld [vmem:[%s2834_s5 + $0x198] sm:$0xff] }
 0x21e   : > { %v726_v56 = vmax.f32 %v684_v48, 0.0  ;;  %1356 = vmatprep.subr.bf16.mxu0 %v1977_v39  ;;  %1469 = vmatprep.subr.bf16.mxu1 %v1979_v40  ;;  %v2011_v39 = vcombine.high %v778_v27, %v782_v28  ;;  %v785_v40 = vld [vmem:[%s2834_s5 + $0x190] sm:$0xff]  ;;  %v790_v46 = vld [vmem:[%s2834_s5 + $0x1b8] sm:$0xff] }
 0x21f   : > { %v724_v57 = vmax.f32 %v676_v53, 0.0  ;;  %v2010_v53 = vcombine.low %v778_v27, %v782_v28 }
 0x220   : > { %v2679_v61 = vpack.c.bf16 %v726_v56, %v725_v47  ;;  %1357 = vmatpush1.bf16.msra.mxu0 %v1976_v50  ;;  %1470 = vmatpush1.bf16.msra.mxu1 %v1978_v51  ;;  %v2019_v56 = vcombine.high %v786_v45, %v790_v46 }
 0x221   : > { %v2681_v62 = vpack.c.bf16 %v724_v57, %v723_v52  ;;  %v2088_v63 = vpop.f32.mrb[8].mxu1  ;;  %1358 = vmatprep.subr.bf16.mxu0 %v1985_v54  ;;  %1471 = vmatprep.subr.bf16.mxu1 %v1987_v55  ;;  %v2008_v52 = vcombine.low %v777_v24, %v781_v26  ;;  %v2017_v55 = vcombine.high %v785_v40, %v789_v44 }
 0x222   : > { %v697_v2 = vadd.f32 %v2088_v63, %v2625_v17  ;;  %v688_v3 = vpop.f32.mrb[9].mxu1 }
 0x223   : > { %1171 = vmatmul.mubr.bf16.gmra.mrb[20].mxu0 %v2643_v33  ;;  %1284 = vmatmul.mubr.bf16.gmra.mrb[20].mxu1 %v2643_v33  ;;  %v689_v8 = vadd.f32 %v2625_v17, %v688_v3  ;;  %v2089_v9 = vpop.f32.mrb[10].mxu1 }
 0x224   : > { %v729_v13 = vmax.f32 %v697_v2, 0.0  ;;  %1180 = vmatprep.mubr.bf16.mxu0 %v2284_v7  ;;  %1293 = vmatprep.mubr.bf16.mxu1 %v2284_v7  ;;  %v700_v14 = vadd.f32 %v2089_v9, %v2625_v17  ;;  %v691_v15 = vpop.f32.mrb[11].mxu1  ;;  %v2025_v2 = vcombine.high %v793_v42, %v797_v58 }
 0x225   : > { %v727_v18 = vmax.f32 %v689_v8, 0.0  ;;  %1359 = vmatpush1.bf16.msra.mxu0 %v1984_v0  ;;  %1472 = vmatpush1.bf16.msra.mxu1 %v1986_v1  ;;  %v692_v16 = vadd.f32 %v2625_v17, %v691_v15  ;;  %v2016_v0 = vcombine.low %v785_v40, %v789_v44  ;;  %v2018_v1 = vcombine.low %v786_v45, %v790_v46 }
 0x226   : > { %v730_v21 = vmax.f32 %v700_v14, 0.0  ;;  %1360 = vmatprep.subr.bf16.mxu0 %v1993_v4  ;;  %1473 = vmatprep.subr.bf16.mxu1 %v1995_v5  ;;  %v2024_v4 = vcombine.low %v793_v42, %v797_v58 }
 0x227   : > { %v728_v25 = vmax.f32 %v692_v16, 0.0 }
 0x228   : > { %v2715_v29 = vpack.c.bf16 %v730_v21, %v729_v13 }
 0x229   : > { %v2717_v30 = vpack.c.bf16 %v728_v25, %v727_v18  ;;  %1361 = vmatpush1.bf16.msra.mxu0 %v1992_v19  ;;  %1474 = vmatpush1.bf16.msra.mxu1 %v1994_v20  ;;  %v2092_v31 = vpop.f32.mrb[12].mxu1 }
 0x22a   : > { %v713_v36 = vadd.f32 %v2092_v31, %v2625_v17  ;;  %1362 = vmatprep.subr.bf16.mxu0 %v2001_v22  ;;  %1475 = vmatprep.subr.bf16.mxu1 %v2003_v23  ;;  %v704_v37 = vpop.f32.mrb[13].mxu1 }
 0x22b   : > { %1181 = vmatmul.mubr.bf16.gmra.mrb[24].mxu0 %v2681_v62  ;;  %1294 = vmatmul.mubr.bf16.gmra.mrb[24].mxu1 %v2681_v62  ;;  %v705_v41 = vadd.f32 %v2625_v17, %v704_v37  ;;  %v2093_v43 = vpop.f32.mrb[14].mxu1 }
 0x22c   : > { %1190 = vmatprep.mubr.bf16.mxu0 %v2284_v7  ;;  %1303 = vmatprep.mubr.bf16.mxu1 %v2284_v7  ;;  %v733_v47 = vmax.f32 %v713_v36, 0.0  ;;  %v716_v48 = vadd.f32 %v2093_v43, %v2625_v17  ;;  %v707_v49 = vpop.f32.mrb[15].mxu1 }
 0x22d   : > { %v731_v50 = vmax.f32 %v705_v41, 0.0  ;;  %1363 = vmatpush1.bf16.msra.mxu0 %v2000_v32  ;;  %1476 = vmatpush1.bf16.msra.mxu1 %v2002_v35  ;;  %v708_v51 = vadd.f32 %v2625_v17, %v707_v49  ;;  %v794_v17 = vld [vmem:[%s2834_s5 + $0x1d8] sm:$0xff] }
 0x22e   : > { %v734_v54 = vmax.f32 %v716_v48, 0.0  ;;  %1364 = vmatprep.subr.bf16.mxu0 %v2009_v38  ;;  %1477 = vmatprep.subr.bf16.mxu1 %v2011_v39  ;;  %v2027_v3 = vcombine.high %v794_v17, %v798_v59  ;;  %v2026_v5 = vcombine.low %v794_v17, %v798_v59 }
 0x22f   : > { %v732_v57 = vmax.f32 %v708_v51, 0.0 }
 0x230   : > { %v2751_v60 = vpack.c.bf16 %v734_v54, %v733_v47 }
 0x231   : > { %v806_v63 = vpack.c.bf16 %v732_v57, %v731_v50  ;;  %1365 = vmatpush1.bf16.msra.mxu0 %v2008_v52  ;;  %1478 = vmatpush1.bf16.msra.mxu1 %v2010_v53 }
 0x232   : > { %1366 = vmatprep.subr.bf16.mxu0 %v2017_v55  ;;  %1479 = vmatprep.subr.bf16.mxu1 %v2019_v56 }
 0x233   : > { %1191 = vmatmul.mubr.bf16.gmra.mrb[28].mxu0 %v2679_v61  ;;  %1304 = vmatmul.mubr.bf16.gmra.mrb[28].mxu1 %v2679_v61 }
 0x234   : > { %1200 = vmatprep.mubr.bf16.mxu0 %v2284_v7  ;;  %1313 = vmatprep.mubr.bf16.mxu1 %v2284_v7 }
 0x235   : > { %1367 = vmatpush1.bf16.msra.mxu0 %v2016_v0  ;;  %1480 = vmatpush1.bf16.msra.mxu1 %v2018_v1 }
 0x236   : > { %1368 = vmatprep.subr.bf16.mxu0 %v2025_v2  ;;  %1481 = vmatprep.subr.bf16.mxu1 %v2027_v3 }
 0x239   : > { %1369 = vmatpush1.bf16.msra.mxu0 %v2024_v4  ;;  %1482 = vmatpush1.bf16.msra.mxu1 %v2026_v5 }
 0x23b   : > { %1201 = vmatmul.mubr.bf16.gmra.mrb[32].mxu0 %v2717_v30  ;;  %1314 = vmatmul.mubr.bf16.gmra.mrb[32].mxu1 %v2717_v30 }
 0x23c   : > { %1210 = vmatprep.mubr.bf16.mxu0 %v2284_v7  ;;  %1323 = vmatprep.mubr.bf16.mxu1 %v2284_v7 }
 0x243   : > { %1211 = vmatmul.mubr.bf16.gmra.mrb[36].mxu0 %v2715_v29  ;;  %1324 = vmatmul.mubr.bf16.gmra.mrb[36].mxu1 %v2715_v29 }
 0x244   : > { %1220 = vmatprep.mubr.bf16.mxu0 %v2284_v7  ;;  %1333 = vmatprep.mubr.bf16.mxu1 %v2284_v7 }
 0x24b   : > { %1221 = vmatmul.mubr.bf16.gmra.mrb[40].mxu0 %v806_v63  ;;  %1334 = vmatmul.mubr.bf16.gmra.mrb[40].mxu1 %v806_v63 }
 0x24c   : > { %1230 = vmatprep.mubr.bf16.mxu0 %v2284_v7  ;;  %1343 = vmatprep.mubr.bf16.mxu1 %v2284_v7 }
 0x253   : > { %1231 = vmatmul.mubr.bf16.gmra.mrb[44].mxu0 %v2751_v60  ;;  %1344 = vmatmul.mubr.bf16.gmra.mrb[44].mxu1 %v2751_v60 }
 0x254   : > { %1386 = vmatprep.mubr.bf16.mxu0 %v2284_v7  ;;  %1499 = vmatprep.mubr.bf16.mxu1 %v2284_v7 }
 0x25b   : > { %1387 = vmatmul.mubr.bf16.vlgmr.msra.gmra.mrb[48].mxu0 %v2645_v34  ;;  %1500 = vmatmul.mubr.bf16.vlgmr.msra.gmra.mrb[48].mxu1 %v2645_v34 }
 0x25c   : > { %1396 = vmatprep.mubr.bf16.mxu0 %v2284_v7  ;;  %1509 = vmatprep.mubr.bf16.mxu1 %v2284_v7 }
 0x263   : > { %1397 = vmatmul.mubr.bf16.gmra.mrb[52].mxu0 %v2643_v33  ;;  %1510 = vmatmul.mubr.bf16.gmra.mrb[52].mxu1 %v2643_v33 }
 0x264   : > { %1406 = vmatprep.mubr.bf16.mxu0 %v2284_v7  ;;  %1519 = vmatprep.mubr.bf16.mxu1 %v2284_v7 }
 0x26b   : > { %1407 = vmatmul.mubr.bf16.gmra.mrb[56].mxu0 %v2681_v62  ;;  %1520 = vmatmul.mubr.bf16.gmra.mrb[56].mxu1 %v2681_v62 }
 0x26c   : > { %1416 = vmatprep.mubr.bf16.mxu0 %v2284_v7  ;;  %1529 = vmatprep.mubr.bf16.mxu1 %v2284_v7 }
 0x273   : > { %1417 = vmatmul.mubr.bf16.gmra.mrb[60].mxu0 %v2679_v61  ;;  %1530 = vmatmul.mubr.bf16.gmra.mrb[60].mxu1 %v2679_v61 }
 0x274   : > { %1426 = vmatprep.mubr.bf16.mxu0 %v2284_v7  ;;  %1539 = vmatprep.mubr.bf16.mxu1 %v2284_v7 }
 0x27b   : > { %1427 = vmatmul.mubr.bf16.gmra.mrb[64].mxu0 %v2717_v30  ;;  %1540 = vmatmul.mubr.bf16.gmra.mrb[64].mxu1 %v2717_v30 }
 0x27c   : > { %1436 = vmatprep.mubr.bf16.mxu0 %v2284_v7  ;;  %1549 = vmatprep.mubr.bf16.mxu1 %v2284_v7 }
 0x283   : > { %1437 = vmatmul.mubr.bf16.gmra.mrb[68].mxu0 %v2715_v29  ;;  %1550 = vmatmul.mubr.bf16.gmra.mrb[68].mxu1 %v2715_v29 }
 0x284   : > { %1446 = vmatprep.mubr.bf16.mxu0 %v2284_v7  ;;  %1559 = vmatprep.mubr.bf16.mxu1 %v2284_v7 }
 0x28b   : > { %1447 = vmatmul.mubr.bf16.gmra.mrb[72].mxu0 %v806_v63  ;;  %1560 = vmatmul.mubr.bf16.gmra.mrb[72].mxu1 %v806_v63 }
 0x28c   : > { %1456 = vmatprep.mubr.bf16.mxu0 %v2284_v7  ;;  %1569 = vmatprep.mubr.bf16.mxu1 %v2284_v7 }
 0x293   : > { %1457 = vmatmul.mubr.bf16.gmra.mrb[76].mxu0 %v2751_v60  ;;  %1570 = vmatmul.mubr.bf16.gmra.mrb[76].mxu1 %v2751_v60 }
 0x2ee   : > { %v1162_v33 = vpop.f32.mrb[16].mxu0  ;;  %v1275_v34 = vpop.f32.mrb[16].mxu1 }
 0x2ef   : > { %v1164_v61 = vpop.f32.mrb[17].mxu0  ;;  %v1277_v62 = vpop.f32.mrb[17].mxu1 }
 0x2f0   : > { %v1166_v6 = vpop.f32.mrb[18].mxu0  ;;  %v1279_v8 = vpop.f32.mrb[18].mxu1 }
 0x2f1   : > { %v1585_v9 = vmax.f32 %v1162_v33, %v1166_v6  ;;  %v1627_v10 = vmax.f32 %v1275_v34, %v1279_v8  ;;  %v1168_v11 = vpop.f32.mrb[19].mxu0  ;;  %v1281_v12 = vpop.f32.mrb[19].mxu1 }
 0x2f2   : > { %v1606_v13 = vmax.f32 %v1164_v61, %v1168_v11  ;;  %v1648_v14 = vmax.f32 %v1277_v62, %v1281_v12 }
 0x2f6   : > { %v1172_v15 = vpop.f32.mrb[20].mxu0  ;;  %v1285_v18 = vpop.f32.mrb[20].mxu1 }
 0x2f7   : > { %v1586_v16 = vmax.f32 %v1585_v9, %v1172_v15  ;;  %v1628_v7 = vmax.f32 %v1627_v10, %v1285_v18  ;;  %v1174_v19 = vpop.f32.mrb[21].mxu0  ;;  %v1287_v20 = vpop.f32.mrb[21].mxu1 }
 0x2f8   : > { %v1607_v21 = vmax.f32 %v1606_v13, %v1174_v19  ;;  %v1649_v22 = vmax.f32 %v1648_v14, %v1287_v20  ;;  %v1176_v23 = vpop.f32.mrb[22].mxu0  ;;  %v1289_v24 = vpop.f32.mrb[22].mxu1 }
 0x2f9   : > { %v1587_v25 = vmax.f32 %v1586_v16, %v1176_v23  ;;  %v1629_v26 = vmax.f32 %v1628_v7, %v1289_v24  ;;  %v1178_v27 = vpop.f32.mrb[23].mxu0  ;;  %v1291_v28 = vpop.f32.mrb[23].mxu1 }
 0x2fa   : > { %v1608_v29 = vmax.f32 %v1607_v21, %v1178_v27  ;;  %v1650_v30 = vmax.f32 %v1649_v22, %v1291_v28 }
 0x2fe   : > { %v1182_v31 = vpop.f32.mrb[24].mxu0  ;;  %v1295_v32 = vpop.f32.mrb[24].mxu1 }
 0x2ff   : > { %v1588_v35 = vmax.f32 %v1587_v25, %v1182_v31  ;;  %v1630_v36 = vmax.f32 %v1629_v26, %v1295_v32  ;;  %v1184_v37 = vpop.f32.mrb[25].mxu0  ;;  %v1297_v38 = vpop.f32.mrb[25].mxu1 }
 0x300   : > { %v1609_v39 = vmax.f32 %v1608_v29, %v1184_v37  ;;  %v1651_v40 = vmax.f32 %v1650_v30, %v1297_v38  ;;  %v1186_v41 = vpop.f32.mrb[26].mxu0  ;;  %v1299_v43 = vpop.f32.mrb[26].mxu1 }
 0x301   : > { %v1589_v44 = vmax.f32 %v1588_v35, %v1186_v41  ;;  %v1631_v45 = vmax.f32 %v1630_v36, %v1299_v43  ;;  %v1188_v46 = vpop.f32.mrb[27].mxu0  ;;  %v1301_v47 = vpop.f32.mrb[27].mxu1 }
 0x302   : > { %v1610_v48 = vmax.f32 %v1609_v39, %v1188_v46  ;;  %v1652_v49 = vmax.f32 %v1651_v40, %v1301_v47 }
 0x306   : > { %v1192_v50 = vpop.f32.mrb[28].mxu0  ;;  %v1305_v51 = vpop.f32.mrb[28].mxu1 }
 0x307   : > { %v1590_v52 = vmax.f32 %v1589_v44, %v1192_v50  ;;  %v1632_v53 = vmax.f32 %v1631_v45, %v1305_v51  ;;  %v1194_v54 = vpop.f32.mrb[29].mxu0  ;;  %v1307_v55 = vpop.f32.mrb[29].mxu1 }
 0x308   : > { %v1611_v56 = vmax.f32 %v1610_v48, %v1194_v54  ;;  %v1653_v42 = vmax.f32 %v1652_v49, %v1307_v55  ;;  %v1196_v57 = vpop.f32.mrb[30].mxu0  ;;  %v1309_v58 = vpop.f32.mrb[30].mxu1 }
 0x309   : > { %v1591_v17 = vmax.f32 %v1590_v52, %v1196_v57  ;;  %v1633_v59 = vmax.f32 %v1632_v53, %v1309_v58  ;;  %v1198_v60 = vpop.f32.mrb[31].mxu0  ;;  %v1311_v63 = vpop.f32.mrb[31].mxu1 }
 0x30a   : > { %v1612_v0 = vmax.f32 %v1611_v56, %v1198_v60  ;;  %v1654_v1 = vmax.f32 %v1653_v42, %v1311_v63 }
 0x30e   : > { %v1202_v2 = vpop.f32.mrb[32].mxu0  ;;  %v1315_v3 = vpop.f32.mrb[32].mxu1 }
 0x30f   : > { %v1592_v4 = vmax.f32 %v1591_v17, %v1202_v2  ;;  %v1634_v5 = vmax.f32 %v1633_v59, %v1315_v3  ;;  %v1204_v33 = vpop.f32.mrb[33].mxu0  ;;  %v1317_v34 = vpop.f32.mrb[33].mxu1 }
 0x310   : > { %v1613_v61 = vmax.f32 %v1612_v0, %v1204_v33  ;;  %v1655_v62 = vmax.f32 %v1654_v1, %v1317_v34  ;;  %v1206_v6 = vpop.f32.mrb[34].mxu0  ;;  %v1319_v8 = vpop.f32.mrb[34].mxu1  ;;  %v1769_v34 = vlaneseq }
 0x311   : > { %v1593_v9 = vmax.f32 %v1592_v4, %v1206_v6  ;;  %v1635_v10 = vmax.f32 %v1634_v5, %v1319_v8  ;;  %v1208_v11 = vpop.f32.mrb[35].mxu0  ;;  %v1321_v12 = vpop.f32.mrb[35].mxu1  ;;  %v2285_v5 = vmov 1966171168  }
 0x312   : > { %v1614_v13 = vmax.f32 %v1613_v61, %v1208_v11  ;;  %v1656_v14 = vmax.f32 %v1655_v62, %v1321_v12  ;;  %v1767_v33 = vunpack.c.l.s4 %v2285_v5 }
 0x316   : > { %v1212_v15 = vpop.f32.mrb[36].mxu0  ;;  %v1325_v18 = vpop.f32.mrb[36].mxu1 }
 0x317   : > { %v1594_v16 = vmax.f32 %v1593_v9, %v1212_v15  ;;  %v1636_v7 = vmax.f32 %v1635_v10, %v1325_v18  ;;  %v1214_v19 = vpop.f32.mrb[37].mxu0  ;;  %v1327_v20 = vpop.f32.mrb[37].mxu1 }
 0x318   : > { %v1615_v21 = vmax.f32 %v1614_v13, %v1214_v19  ;;  %v1657_v22 = vmax.f32 %v1656_v14, %v1327_v20  ;;  %v1216_v23 = vpop.f32.mrb[38].mxu0  ;;  %v1329_v24 = vpop.f32.mrb[38].mxu1 }
 0x319   : > { %v1595_v25 = vmax.f32 %v1594_v16, %v1216_v23  ;;  %v1637_v26 = vmax.f32 %v1636_v7, %v1329_v24  ;;  %v1218_v27 = vpop.f32.mrb[39].mxu0  ;;  %v1331_v28 = vpop.f32.mrb[39].mxu1  ;;  %v1768_v16 = vunpack.c.0.s8 %v1767_v33  ;;  %v1770_v7 = vshrl.u32 %v1769_v34, 7 }
 0x31a   : > { %v1616_v29 = vmax.f32 %v1615_v21, %v1218_v27  ;;  %v1658_v30 = vmax.f32 %v1657_v22, %v1331_v28 }
 0x31e   : > { %v1222_v31 = vpop.f32.mrb[40].mxu0  ;;  %v1335_v32 = vpop.f32.mrb[40].mxu1 }
 0x31f   : > { %v1596_v35 = vmax.f32 %v1595_v25, %v1222_v31  ;;  %v1638_v36 = vmax.f32 %v1637_v26, %v1335_v32  ;;  %v1224_v37 = vpop.f32.mrb[41].mxu0  ;;  %v1337_v38 = vpop.f32.mrb[41].mxu1 }
 0x320   : > { %v1617_v39 = vmax.f32 %v1616_v29, %v1224_v37  ;;  %v1659_v40 = vmax.f32 %v1658_v30, %v1337_v38  ;;  %v1226_v41 = vpop.f32.mrb[42].mxu0  ;;  %v1339_v43 = vpop.f32.mrb[42].mxu1 }
 0x321   : > { %v1597_v44 = vmax.f32 %v1596_v35, %v1226_v41  ;;  %v1639_v45 = vmax.f32 %v1638_v36, %v1339_v43  ;;  %v1228_v46 = vpop.f32.mrb[43].mxu0  ;;  %v1341_v47 = vpop.f32.mrb[43].mxu1  ;;  %v2799_v41 = vsub.s32 %v1768_v16, %v1770_v7 }
 0x322   : > { %v1618_v48 = vmax.f32 %v1617_v39, %v1228_v46  ;;  %v1660_v49 = vmax.f32 %v1659_v40, %v1341_v47 }
 0x326   : > { %v1232_v50 = vpop.f32.mrb[44].mxu0  ;;  %v1345_v51 = vpop.f32.mrb[44].mxu1 }
 0x327   : > { %v1598_v52 = vmax.f32 %v1597_v44, %v1232_v50  ;;  %v1640_v53 = vmax.f32 %v1639_v45, %v1345_v51  ;;  %v1234_v54 = vpop.f32.mrb[45].mxu0  ;;  %v1347_v55 = vpop.f32.mrb[45].mxu1 }
 0x328   : > { %v1619_v56 = vmax.f32 %v1618_v48, %v1234_v54  ;;  %v1661_v42 = vmax.f32 %v1660_v49, %v1347_v55  ;;  %v1236_v57 = vpop.f32.mrb[46].mxu0  ;;  %v1349_v58 = vpop.f32.mrb[46].mxu1 }
 0x329   : > { %v1599_v17 = vmax.f32 %v1598_v52, %v1236_v57  ;;  %v1641_v59 = vmax.f32 %v1640_v53, %v1349_v58  ;;  %v1238_v60 = vpop.f32.mrb[47].mxu0  ;;  %v1351_v63 = vpop.f32.mrb[47].mxu1 }
 0x32a   : > { %v1620_v0 = vmax.f32 %v1619_v56, %v1238_v60  ;;  %v1662_v1 = vmax.f32 %v1661_v42, %v1351_v63 }
 0x32b   : > { %v1600_v2 = vrot.slane %v1599_v17, 4  ;;  %v1642_v3 = vrot.slane %v1641_v59, 4 }
 0x32c   : > { %v1621_v4 = vrot.slane %v1620_v0, 4  ;;  %v1663_v61 = vrot.slane %v1662_v1, 4 }
 0x32d   : > { %v1601_v62 = vmax.f32 %v1599_v17, %v1600_v2  ;;  %v1643_v6 = vmax.f32 %v1641_v59, %v1642_v3 }
 0x32e   : > { %v1622_v8 = vmax.f32 %v1620_v0, %v1621_v4  ;;  %v1664_v9 = vmax.f32 %v1662_v1, %v1663_v61  ;;  %v1388_v10 = vpop.f32.mrb[48].mxu0  ;;  %v1501_v11 = vpop.f32.mrb[48].mxu1 }
 0x32f   : > { %v1602_v12 = vrot.slane %v1601_v62, 2  ;;  %v1644_v13 = vrot.slane %v1643_v6, 2  ;;  %v1390_v14 = vpop.f32.mrb[49].mxu0  ;;  %v1503_v15 = vpop.f32.mrb[49].mxu1 }
 0x330   : > { %v1623_v18 = vrot.slane %v1622_v8, 2  ;;  %v1665_v19 = vrot.slane %v1664_v9, 2  ;;  %v1392_v20 = vpop.f32.mrb[50].mxu0  ;;  %v1505_v21 = vpop.f32.mrb[50].mxu1 }
 0x331   : > { %v1603_v22 = vmax.f32 %v1601_v62, %v1602_v12  ;;  %v1645_v23 = vmax.f32 %v1643_v6, %v1644_v13  ;;  %v1669_v24 = vmax.f32 %v1388_v10, %v1392_v20  ;;  %v1711_v25 = vmax.f32 %v1501_v11, %v1505_v21  ;;  %v1394_v26 = vpop.f32.mrb[51].mxu0  ;;  %v1507_v27 = vpop.f32.mrb[51].mxu1 }
 0x332   : > { %v1624_v28 = vmax.f32 %v1622_v8, %v1623_v18  ;;  %v1666_v29 = vmax.f32 %v1664_v9, %v1665_v19  ;;  %v1690_v30 = vmax.f32 %v1390_v14, %v1394_v26  ;;  %v1732_v31 = vmax.f32 %v1503_v15, %v1507_v27 }
 0x333   : > { %v1604_v32 = vrot.slane %v1603_v22, 1  ;;  %v1646_v35 = vrot.slane %v1645_v23, 1 }
 0x334   : > { %v1625_v36 = vrot.slane %v1624_v28, 1  ;;  %v1667_v37 = vrot.slane %v1666_v29, 1 }
 0x335   : > { %v1605_v38 = vmax.f32 %v1603_v22, %v1604_v32  ;;  %v1647_v39 = vmax.f32 %v1645_v23, %v1646_v35 }
 0x336   : > { %v1626_v40 = vmax.f32 %v1624_v28, %v1625_v36  ;;  %v1668_v43 = vmax.f32 %v1666_v29, %v1667_v37  ;;  %v1398_v44 = vpop.f32.mrb[52].mxu0  ;;  %v1511_v45 = vpop.f32.mrb[52].mxu1 }
 0x337   : > { %v1670_v46 = vmax.f32 %v1669_v24, %v1398_v44  ;;  %v1712_v47 = vmax.f32 %v1711_v25, %v1511_v45  ;;  %v1400_v48 = vpop.f32.mrb[53].mxu0  ;;  %v1513_v49 = vpop.f32.mrb[53].mxu1 }
 0x338   : > { %v1762_v50 = vcombine.low %v1605_v38, %v1626_v40  ;;  %v1763_v51 = vcombine.low %v1647_v39, %v1668_v43  ;;  %v1691_v52 = vmax.f32 %v1690_v30, %v1400_v48  ;;  %v1733_v53 = vmax.f32 %v1732_v31, %v1513_v49  ;;  %v1402_v54 = vpop.f32.mrb[54].mxu0  ;;  %v1515_v55 = vpop.f32.mrb[54].mxu1 }
 0x339   : > { %v1671_v56 = vmax.f32 %v1670_v46, %v1402_v54  ;;  %v1713_v42 = vmax.f32 %v1712_v47, %v1515_v55  ;;  %v1404_v57 = vpop.f32.mrb[55].mxu0  ;;  %v1517_v58 = vpop.f32.mrb[55].mxu1 }
 0x33a   : > { %v2802_v17 = vrot.slane %v1762_v50, %v2799_v41  ;;  %v2805_v59 = vrot.slane %v1763_v51, %v2799_v41  ;;  %v1692_v60 = vmax.f32 %v1691_v52, %v1404_v57  ;;  %v1734_v63 = vmax.f32 %v1733_v53, %v1517_v58 }
 0x33c   : > { %v1794_v0 = vcombine.low %v2802_v17, %v2805_v59 }
 0x33e   : > { %v1408_v1 = vpop.f32.mrb[56].mxu0  ;;  %v1521_v2 = vpop.f32.mrb[56].mxu1 }
 0x33f   : > { %v1672_v3 = vmax.f32 %v1671_v56, %v1408_v1  ;;  %v1714_v4 = vmax.f32 %v1713_v42, %v1521_v2  ;;  %v1410_v5 = vpop.f32.mrb[57].mxu0  ;;  %v1523_v33 = vpop.f32.mrb[57].mxu1 }
 0x340   : > { %v1693_v34 = vmax.f32 %v1692_v60, %v1410_v5  ;;  %v1735_v61 = vmax.f32 %v1734_v63, %v1523_v33  ;;  %v1412_v62 = vpop.f32.mrb[58].mxu0  ;;  %v1525_v6 = vpop.f32.mrb[58].mxu1 }
 0x341   : > { %v1673_v8 = vmax.f32 %v1672_v3, %v1412_v62  ;;  %v1715_v9 = vmax.f32 %v1714_v4, %v1525_v6  ;;  %v1414_v10 = vpop.f32.mrb[59].mxu0  ;;  %v1527_v11 = vpop.f32.mrb[59].mxu1 }
 0x342   : > { %v1694_v12 = vmax.f32 %v1693_v34, %v1414_v10  ;;  %v1736_v13 = vmax.f32 %v1735_v61, %v1527_v11 }
 0x346   : > { %v1418_v14 = vpop.f32.mrb[60].mxu0  ;;  %v1531_v15 = vpop.f32.mrb[60].mxu1 }
 0x347   : > { %v1674_v18 = vmax.f32 %v1673_v8, %v1418_v14  ;;  %v1716_v16 = vmax.f32 %v1715_v9, %v1531_v15  ;;  %v1420_v7 = vpop.f32.mrb[61].mxu0  ;;  %v1533_v19 = vpop.f32.mrb[61].mxu1 }
 0x348   : > { %v1695_v20 = vmax.f32 %v1694_v12, %v1420_v7  ;;  %v1737_v21 = vmax.f32 %v1736_v13, %v1533_v19  ;;  %v1422_v22 = vpop.f32.mrb[62].mxu0  ;;  %v1535_v23 = vpop.f32.mrb[62].mxu1 }
 0x349   : > { %v1675_v24 = vmax.f32 %v1674_v18, %v1422_v22  ;;  %v1717_v25 = vmax.f32 %v1716_v16, %v1535_v23  ;;  %v1424_v26 = vpop.f32.mrb[63].mxu0  ;;  %v1537_v27 = vpop.f32.mrb[63].mxu1 }
 0x34a   : > { %v1696_v28 = vmax.f32 %v1695_v20, %v1424_v26  ;;  %v1738_v29 = vmax.f32 %v1737_v21, %v1537_v27 }
 0x34e   : > { %v1428_v30 = vpop.f32.mrb[64].mxu0  ;;  %v1541_v31 = vpop.f32.mrb[64].mxu1 }
 0x34f   : > { %v1676_v32 = vmax.f32 %v1675_v24, %v1428_v30  ;;  %v1718_v35 = vmax.f32 %v1717_v25, %v1541_v31  ;;  %v1430_v36 = vpop.f32.mrb[65].mxu0  ;;  %v1543_v37 = vpop.f32.mrb[65].mxu1 }
 0x350   : > { %v1697_v38 = vmax.f32 %v1696_v28, %v1430_v36  ;;  %v1739_v39 = vmax.f32 %v1738_v29, %v1543_v37  ;;  %v1432_v40 = vpop.f32.mrb[66].mxu0  ;;  %v1545_v43 = vpop.f32.mrb[66].mxu1 }
 0x351   : > { %v1677_v44 = vmax.f32 %v1676_v32, %v1432_v40  ;;  %v1719_v45 = vmax.f32 %v1718_v35, %v1545_v43  ;;  %v1434_v46 = vpop.f32.mrb[67].mxu0  ;;  %v1547_v47 = vpop.f32.mrb[67].mxu1 }
 0x352   : > { %v1698_v48 = vmax.f32 %v1697_v38, %v1434_v46  ;;  %v1740_v49 = vmax.f32 %v1739_v39, %v1547_v47 }
 0x356   : > { %v1438_v50 = vpop.f32.mrb[68].mxu0  ;;  %v1551_v51 = vpop.f32.mrb[68].mxu1 }
 0x357   : > { %v1678_v52 = vmax.f32 %v1677_v44, %v1438_v50  ;;  %v1720_v53 = vmax.f32 %v1719_v45, %v1551_v51  ;;  %v1440_v54 = vpop.f32.mrb[69].mxu0  ;;  %v1553_v55 = vpop.f32.mrb[69].mxu1 }
 0x358   : > { %v1699_v56 = vmax.f32 %v1698_v48, %v1440_v54  ;;  %v1741_v42 = vmax.f32 %v1740_v49, %v1553_v55  ;;  %v1442_v57 = vpop.f32.mrb[70].mxu0  ;;  %v1555_v58 = vpop.f32.mrb[70].mxu1 }
 0x359   : > { %v1679_v60 = vmax.f32 %v1678_v52, %v1442_v57  ;;  %v1721_v63 = vmax.f32 %v1720_v53, %v1555_v58  ;;  %v1444_v1 = vpop.f32.mrb[71].mxu0  ;;  %v1557_v2 = vpop.f32.mrb[71].mxu1 }
 0x35a   : > { %v1700_v3 = vmax.f32 %v1699_v56, %v1444_v1  ;;  %v1742_v4 = vmax.f32 %v1741_v42, %v1557_v2 }
 0x35e   : > { %v1448_v5 = vpop.f32.mrb[72].mxu0  ;;  %v1561_v33 = vpop.f32.mrb[72].mxu1 }
 0x35f   : > { %v1680_v34 = vmax.f32 %v1679_v60, %v1448_v5  ;;  %v1722_v61 = vmax.f32 %v1721_v63, %v1561_v33  ;;  %v1450_v62 = vpop.f32.mrb[73].mxu0  ;;  %v1563_v6 = vpop.f32.mrb[73].mxu1  ;;  %v1802_v33 = vrot.slane %v1794_v0, %v2799_v41 }
 0x360   : > { %v1701_v8 = vmax.f32 %v1700_v3, %v1450_v62  ;;  %v1743_v9 = vmax.f32 %v1742_v4, %v1563_v6  ;;  %v1452_v10 = vpop.f32.mrb[74].mxu0  ;;  %v1565_v11 = vpop.f32.mrb[74].mxu1  ;;  %v799_v62 = vld [vmem:[#allocation6] sm:$0xff] }
 0x361   : > { %v1681_v12 = vmax.f32 %v1680_v34, %v1452_v10  ;;  %v1723_v13 = vmax.f32 %v1722_v61, %v1565_v11  ;;  %v1454_v14 = vpop.f32.mrb[75].mxu0  ;;  %v1567_v15 = vpop.f32.mrb[75].mxu1 }
 0x362   : > { %v1702_v18 = vmax.f32 %v1701_v8, %v1454_v14  ;;  %v1744_v16 = vmax.f32 %v1743_v9, %v1567_v15 }
 0x366   : > { %v1458_v7 = vpop.f32.mrb[76].mxu0  ;;  %v1571_v19 = vpop.f32.mrb[76].mxu1 }
 0x367   : > { %v1682_v20 = vmax.f32 %v1681_v12, %v1458_v7  ;;  %v1724_v21 = vmax.f32 %v1723_v13, %v1571_v19  ;;  %v1460_v22 = vpop.f32.mrb[77].mxu0  ;;  %v1573_v23 = vpop.f32.mrb[77].mxu1 }
 0x368   : > { %v1703_v24 = vmax.f32 %v1702_v18, %v1460_v22  ;;  %v1745_v25 = vmax.f32 %v1744_v16, %v1573_v23  ;;  %v1462_v26 = vpop.f32.mrb[78].mxu0  ;;  %v1575_v27 = vpop.f32.mrb[78].mxu1 }
 0x369   : > { %v1683_v28 = vmax.f32 %v1682_v20, %v1462_v26  ;;  %v1725_v29 = vmax.f32 %v1724_v21, %v1575_v27  ;;  %v1464_v30 = vpop.f32.mrb[79].mxu0  ;;  %v1577_v31 = vpop.f32.mrb[79].mxu1 }
 0x36a   : > { %v1704_v32 = vmax.f32 %v1703_v24, %v1464_v30  ;;  %v1746_v35 = vmax.f32 %v1745_v25, %v1577_v31 }
 0x36b   : > { %v1684_v36 = vrot.slane %v1683_v28, 4  ;;  %v1726_v37 = vrot.slane %v1725_v29, 4 }
 0x36c   : > { %v1705_v38 = vrot.slane %v1704_v32, 4  ;;  %v1747_v39 = vrot.slane %v1746_v35, 4 }
 0x36d   : > { %v1685_v40 = vmax.f32 %v1683_v28, %v1684_v36  ;;  %v1727_v43 = vmax.f32 %v1725_v29, %v1726_v37 }
 0x36e   : > { %v1706_v44 = vmax.f32 %v1704_v32, %v1705_v38  ;;  %v1748_v45 = vmax.f32 %v1746_v35, %v1747_v39 }
 0x36f   : > { %v1686_v46 = vrot.slane %v1685_v40, 2  ;;  %v1728_v47 = vrot.slane %v1727_v43, 2 }
 0x370   : > { %v1707_v48 = vrot.slane %v1706_v44, 2  ;;  %v1749_v49 = vrot.slane %v1748_v45, 2 }
 0x371   : > { %v1687_v50 = vmax.f32 %v1685_v40, %v1686_v46  ;;  %v1729_v51 = vmax.f32 %v1727_v43, %v1728_v47 }
 0x372   : > { %v1708_v52 = vmax.f32 %v1706_v44, %v1707_v48  ;;  %v1750_v53 = vmax.f32 %v1748_v45, %v1749_v49 }
 0x373   : > { %v1688_v54 = vrot.slane %v1687_v50, 1  ;;  %v1730_v55 = vrot.slane %v1729_v51, 1 }
 0x374   : > { %v1709_v56 = vrot.slane %v1708_v52, 1  ;;  %v1751_v42 = vrot.slane %v1750_v53, 1 }
 0x375   : > { %v1689_v57 = vmax.f32 %v1687_v50, %v1688_v54  ;;  %v1731_v58 = vmax.f32 %v1729_v51, %v1730_v55 }
 0x376   : > { %v1710_v60 = vmax.f32 %v1708_v52, %v1709_v56  ;;  %v1752_v63 = vmax.f32 %v1750_v53, %v1751_v42 }
 0x378   : > { %v1764_v1 = vcombine.low %v1689_v57, %v1710_v60  ;;  %v1765_v2 = vcombine.low %v1731_v58, %v1752_v63 }
 0x37a   : > { %v1786_v3 = vrot.slane %v1764_v1, %v2799_v41  ;;  %v1793_v4 = vrot.slane %v1765_v2, %v2799_v41 }
 0x37c   : > { %v1795_v5 = vcombine.low %v1786_v3, %v1793_v4 }
 0x37e   : > { %v1809_v34 = vrot.slane %v1795_v5, %v2799_v41 }
 0x380   : > { %v1810_v61 = vcombine.low %v1802_v33, %v1809_v34 }
 0x382   : > { %v1818_v6 = vadd.f32 %v1810_v61, %v799_v62 }
 0x384   : > { %v1819_v8 = vmax.f32 %v1818_v6, 0.0 }
 0x386   : > { %1820 = vst [vmem:[%s342_s15] sm:$0xff] %v1819_v8 }
 0x387 PF: > { %s19_s26 = sadd.s32 1, %s2279_s26   ;;  %s2848_s24 = smov %s2275_s25 }
 0x388   : > { %p16_p5 = scmp.ge.s32.totalorder %s19_s26, 4   ;;  %s2849_s25 = smov %s2851_s9 }
 0x38a   :  { %18 = sbr.rel (!%p16_p5) target bundleno = 3 (0x3), region = 99 }
 0x391   :  { %1840 = vsyncpa [#allocation3], 1 }
 0x392   :  { %1842 = vsyncpa [#allocation3 + $0x1], 1 }
 0x393   :  { %1843 = vsyncpa [#allocation5], 1 }

// kernel: encoder_forward.4
= control target key start
LH: loop header
LB: loop body
LE: loop exit
PB: predicated region body
PF: predicated region fallthrough
CT: control target
= control target key end

     0   :  { %s2971_s21 = smov 0   ;;  %s2973_s22 = smov 0   ;;  %s3484_s0 = inlined_call_operand.vmem [shape: bf16[2,128,8], index: 0, kind: input, shape index: {}]   ;;  %s3485_s1 = inlined_call_operand.vmem [shape: bf16[2,8,64], index: 1, kind: input, shape index: {}]   ;;  %s3486_s2 = inlined_call_operand.vmem [shape: f32[1,1,64], index: 2, kind: input, shape index: {}]   ;;  %s3487_s3 = inlined_call_operand.vmem [shape: bf16[1,64,64], index: 3, kind: input, shape index: {}]   ;;  %s3488_s4 = inlined_call_operand.vmem [shape: f32[1,1,64], index: 4, kind: input, shape index: {}]   ;;  %s3489_s5 = inlined_call_operand.vmem [shape: bf16[1,64,64], index: 5, kind: input, shape index: {}]   ;;  %s3490_s6 = inlined_call_operand.vmem [shape: f32[1,1,64], index: 6, kind: input, shape index: {}]   ;;  %s3491_s7 = inlined_call_operand.vmem [shape: bf16[1,64,128], index: 7, kind: input, shape index: {}]   ;;  %s3492_s8 = inlined_call_operand.vmem [shape: f32[1,1,128], index: 8, kind: input, shape index: {}]   ;;  %s3493_s9 = inlined_call_operand.vmem [shape: bf16[1,128,1024], index: 9, kind: input, shape index: {}]   ;;  %s3494_s10 = inlined_call_operand.vmem [shape: f32[1,1,1024], index: 10, kind: input, shape index: {}]   ;;  %s3495_s11 = inlined_call_operand.vmem [shape: bf16[2,128,64], index: 11, kind: output, shape index: {0}]   ;;  %s3496_s12 = inlined_call_operand.vmem [shape: f32[2,1,1024], index: 12, kind: output, shape index: {1}]  }
   0x1   :  { %s2975_s23 = smov 0  }
   0x2 LB: > { %s35_s24 = sadd.s32 1, %s2898_s22  ;;  %p2534_p0 = scmp.ge.s32.totalorder %s2902_s23, 1  ;;  %s2902_s23 = sphi %s2975_s23, %s23_s23   ;;  %s2898_s22 = sphi %s2973_s22, %s3498_s22   ;;  %s2894_s21 = sphi %s2971_s21, %s3497_s21  }
   0x3   : > { %p37_p1 = scmp.ge.s32.totalorder %s35_s24, 2  ;;  %p395_p2 = scmp.lt.s32.totalorder %s2902_s23, 3 }
   0x5   : > { %s3500_s24 = smov (%p37_p1, %s35_s24), 0  ;;  %p396_p3 = pnand %p2534_p0, %p395_p2 }
   0x6   : > { %p454_p4 = scmp.lt.s32.totalorder (!%p396_p3), %s2894_s21, 1  ;;  %vm571_vm0 = vcmask (!%p396_p3), 1043456   ;;  %vm546_vm1 = vcmask (!%p396_p3), 64512   ;;  %v2868_v0 = vld [vmem:[%s3487_s3] sm:$0xff] (!%p396_p3)   ;;  %v2869_v1 = vld [vmem:[%s3487_s3 + $0x8] sm:$0xff] (!%p396_p3)   ;;  %v2870_v12 = vld [vmem:[%s3487_s3 + $0x10] sm:$0xff] (!%p396_p3)  }
   0x7   : > { %399 = sbr.rel (%p396_p3) target bundleno = 1273 (0x4f9), region = 64  ;;  %2760 = vmatprep.subr.bf16.mxu1 (!%p396_p3), %v2868_v0  ;;  %v2871_v13 = vld [vmem:[%s3487_s3 + $0x18] sm:$0xff] (!%p396_p3)   ;;  %v2872_v14 = vld [vmem:[%s3489_s5] sm:$0xff] (!%p396_p3)   ;;  %v2873_v15 = vld [vmem:[%s3489_s5 + $0x8] sm:$0xff] (!%p396_p3)   ;;  %vm735_vm2 = vcmask (!%p396_p3), 523264   ;;  %vm937_vm3 = vcmask (!%p396_p3), 519168  }
   0x8   : > { %2761 = vmatpush3.bf16.msra.mxu1 (!%p396_p3), %v2868_v0  ;;  %v2874_v16 = vld [vmem:[%s3489_s5 + $0x10] sm:$0xff] (!%p396_p3)   ;;  %v2541_v17 = vld [vmem:[%s3486_s2] ss:$0 sm:$0xff] (!%p396_p3) }
   0x9   : > { %2762 = vmatprep.subr.bf16.mxu1 (!%p396_p3), %v2869_v1 }
   0xc   : > { %2763 = vmatpush3.bf16.msra.mxu1 (!%p396_p3), %v2869_v1 }
   0xd   : > { %2764 = vmatprep.subr.bf16.mxu1 (!%p396_p3), %v2870_v12 }
   0xe   : > { %s3502_s21 = smov (!%p454_p4, %s2894_s21), 1 }
   0xf   : > { %s2679_s29 = sshll.u32 %s3502_s21, 6  ;;  %s2537_s30 = sshll.u32 %s3502_s21, 2 }
  0x10   : > { %s461_s15 = scalar_lea.vmem %s3484_s0, %s2679_s29  ;;  %s466_s18 = scalar_lea.vmem %s3485_s1, %s2537_s30  ;;  %2765 = vmatpush3.bf16.msra.mxu1 %v2870_v12  ;;  %v2877_v12 = vld [vmem:[%s3491_s7 + $0x8] sm:$0xff]  }
  0x11   : > { %v498_v2 = vld [vmem:[%s466_s18] sm:$0xf]  ;;  %v2861_v5 = vld [vmem:[%s461_s15 + $0x8] sm:$0xff]   ;;  %v2862_v6 = vld [vmem:[%s461_s15 + $0x10] sm:$0xff]   ;;  %2766 = vmatprep.subr.bf16.mxu1 %v2871_v13  ;;  %s3066_s17 = scalar_lea.vmem %s3495_s11, %s2679_s29  ;;  %s2540_s14 = sshll.u32 %s3502_s21, 3 }
  0x12   : > { %v2860_v3 = vld [vmem:[%s461_s15] sm:$0xff]   ;;  %2832 = vmatprep.subr.msk.bf16.mxu0 %vm571_vm0, %v498_v2  ;;  %v573_v4 = vsel %vm571_vm0, %v498_v2, 0  ;;  %v2863_v7 = vld [vmem:[%s461_s15 + $0x18] sm:$0xff]   ;;  %v2865_v9 = vld [vmem:[%s461_s15 + $0x28] sm:$0xff]  }
  0x13   : > { %2743 = vmatpush3.bf16.msra.mxu0 %v573_v4  ;;  %2744 = vmatprep.mubr.msk.bf16.mxu0 %vm546_vm1, %v2860_v3  ;;  %v2864_v8 = vld [vmem:[%s461_s15 + $0x20] sm:$0xff]   ;;  %v2866_v10 = vld [vmem:[%s461_s15 + $0x30] sm:$0xff]   ;;  %v2867_v11 = vld [vmem:[%s461_s15 + $0x38] sm:$0xff]  }
  0x14   : > { %2767 = vmatpush3.bf16.msra.mxu1 %v2871_v13  ;;  %2784 = vmatprep.subr.bf16.mxu0 %v2872_v14  ;;  %v2878_v13 = vld [vmem:[%s3491_s7 + $0x10] sm:$0xff]  }
  0x16   : > { %2745 = vmatmul.mubr.msk.bf16.vlgmr.msra.gmra.mrb[0].mxu0 %vm546_vm1, %v2861_v5 }
  0x17   : > { %2748 = vmatprep.mubr.msk.bf16.mxu0 %vm546_vm1, %v2862_v6  ;;  %2785 = vmatpush3.bf16.msra.mxu0 %v2872_v14  ;;  %v3056_v14 = vld [vmem:[%s3488_s4] ss:$0 sm:$0xff] }
  0x18   : > { %2786 = vmatprep.subr.bf16.mxu0 %v2873_v15 }
  0x1b   : > { %2787 = vmatpush3.bf16.msra.mxu0 %v2873_v15 }
  0x1c   : > { %2788 = vmatprep.subr.bf16.mxu0 %v2874_v16 }
  0x1e   : > { %2749 = vmatmul.mubr.msk.bf16.gmra.mrb[4].mxu0 %vm546_vm1, %v2863_v7 }
  0x1f   : > { %2752 = vmatprep.mubr.msk.bf16.mxu0 %vm546_vm1, %v2864_v8  ;;  %2789 = vmatpush3.bf16.msra.mxu0 %v2874_v16 }
  0x26   : > { %2753 = vmatmul.mubr.msk.bf16.gmra.mrb[8].mxu0 %vm546_vm1, %v2865_v9 }
  0x27   : > { %2756 = vmatprep.mubr.msk.bf16.mxu0 %vm546_vm1, %v2866_v10  ;;  %v2875_v10 = vld [vmem:[%s3489_s5 + $0x18] sm:$0xff]  }
  0x28   : > { %2790 = vmatprep.subr.bf16.mxu0 %v2875_v10 }
  0x29   : > { %2791 = vmatpush3.bf16.msra.mxu0 %v2875_v10 }
  0x2e   : > { %2757 = vmatmul.mubr.msk.bf16.gmra.mrb[12].mxu0 %vm546_vm1, %v2867_v11  ;;  %v2876_v11 = vld [vmem:[%s3491_s7] sm:$0xff]  }
  0x2f   : > { %2808 = vmatprep.subr.bf16.mxu1 %v2876_v11 }
  0xe9   : > { %v2746_v18 = vpop.f32.mrb[0].mxu0 }
  0xea   : > { %v618_v19 = vadd.f32 %v2746_v18, %v2541_v17  ;;  %v609_v20 = vpop.f32.mrb[1].mxu0 }
  0xeb   : > { %v610_v21 = vadd.f32 %v2541_v17, %v609_v20  ;;  %v2747_v22 = vpop.f32.mrb[2].mxu0 }
  0xec   : > { %v621_v23 = vadd.f32 %v2747_v22, %v2541_v17  ;;  %v612_v24 = vpop.f32.mrb[3].mxu0  ;;  %v674_v26 = vmax.f32 %v618_v19, 0.0 }
  0xed   : > { %v613_v25 = vadd.f32 %v2541_v17, %v612_v24  ;;  %v672_v28 = vmax.f32 %v610_v21, 0.0 }
  0xee   : > { %v675_v27 = vmax.f32 %v621_v23, 0.0 }
  0xef   : > { %v673_v29 = vmax.f32 %v613_v25, 0.0 }
  0xf0   : > { %v698_v30 = vpack.c.bf16 %v675_v27, %v674_v26 }
  0xf1   : > { %v2750_v31 = vpop.f32.mrb[4].mxu0  ;;  %v697_v32 = vpack.c.bf16 %v673_v29, %v672_v28 }
  0xf2   : > { %v634_v33 = vadd.f32 %v2750_v31, %v2541_v17  ;;  %v625_v34 = vpop.f32.mrb[5].mxu0 }
  0xf3   : > { %v626_v35 = vadd.f32 %v2541_v17, %v625_v34  ;;  %v2751_v36 = vpop.f32.mrb[6].mxu0  ;;  %2768 = vmatprep.mubr.msk.bf16.mxu1 %vm735_vm2, %v697_v32 }
  0xf4   : > { %v678_v37 = vmax.f32 %v634_v33, 0.0  ;;  %v637_v38 = vadd.f32 %v2751_v36, %v2541_v17  ;;  %v628_v39 = vpop.f32.mrb[7].mxu0  ;;  %2769 = vmatmul.mubr.msk.bf16.vlgmr.msra.gmra.mrb[0].mxu1 %vm735_vm2, %v698_v30 }
  0xf5   : > { %v676_v40 = vmax.f32 %v626_v35, 0.0  ;;  %v629_v41 = vadd.f32 %v2541_v17, %v628_v39  ;;  %2809 = vmatpush3.bf16.msra.mxu1 %v2876_v11 }
  0xf6   : > { %v679_v42 = vmax.f32 %v637_v38, 0.0  ;;  %2810 = vmatprep.subr.bf16.mxu1 %v2877_v12 }
  0xf7   : > { %v677_v43 = vmax.f32 %v629_v41, 0.0 }
  0xf8   : > { %v700_v44 = vpack.c.bf16 %v679_v42, %v678_v37 }
  0xf9   : > { %v699_v45 = vpack.c.bf16 %v677_v43, %v676_v40  ;;  %v2754_v46 = vpop.f32.mrb[8].mxu0  ;;  %2811 = vmatpush3.bf16.msra.mxu1 %v2877_v12 }
  0xfa   : > { %v650_v47 = vadd.f32 %v2754_v46, %v2541_v17  ;;  %v641_v48 = vpop.f32.mrb[9].mxu0  ;;  %2812 = vmatprep.subr.bf16.mxu1 %v2878_v13 }
  0xfb   : > { %v642_v49 = vadd.f32 %v2541_v17, %v641_v48  ;;  %2772 = vmatprep.mubr.msk.bf16.mxu1 %vm735_vm2, %v699_v45  ;;  %v2755_v50 = vpop.f32.mrb[10].mxu0 }
  0xfc   : > { %v682_v51 = vmax.f32 %v650_v47, 0.0  ;;  %v653_v52 = vadd.f32 %v2755_v50, %v2541_v17  ;;  %2773 = vmatmul.mubr.msk.bf16.gmra.mrb[4].mxu1 %vm735_vm2, %v700_v44  ;;  %v644_v53 = vpop.f32.mrb[11].mxu0 }
  0xfd   : > { %v680_v54 = vmax.f32 %v642_v49, 0.0  ;;  %v645_v55 = vadd.f32 %v2541_v17, %v644_v53  ;;  %2813 = vmatpush3.bf16.msra.mxu1 %v2878_v13 }
  0xfe   : > { %v683_v56 = vmax.f32 %v653_v52, 0.0 }
  0xff   : > { %v681_v57 = vmax.f32 %v645_v55, 0.0 }
 0x100   : > { %v702_v58 = vpack.c.bf16 %v683_v56, %v682_v51 }
 0x101   : > { %v701_v59 = vpack.c.bf16 %v681_v57, %v680_v54  ;;  %v2758_v60 = vpop.f32.mrb[12].mxu0 }
 0x102   : > { %v666_v61 = vadd.f32 %v2758_v60, %v2541_v17  ;;  %v657_v62 = vpop.f32.mrb[13].mxu0 }
 0x103   : > { %2776 = vmatprep.mubr.msk.bf16.mxu1 %vm735_vm2, %v701_v59  ;;  %v658_v63 = vadd.f32 %v2541_v17, %v657_v62  ;;  %v2759_v0 = vpop.f32.mrb[14].mxu0 }
 0x104   : > { %2777 = vmatmul.mubr.msk.bf16.gmra.mrb[8].mxu1 %vm735_vm2, %v702_v58  ;;  %v686_v1 = vmax.f32 %v666_v61, 0.0  ;;  %v669_v2 = vadd.f32 %v2759_v0, %v2541_v17  ;;  %v660_v3 = vpop.f32.mrb[15].mxu0 }
 0x105   : > { %v684_v4 = vmax.f32 %v658_v63, 0.0  ;;  %v661_v5 = vadd.f32 %v2541_v17, %v660_v3 }
 0x106   : > { %v687_v6 = vmax.f32 %v669_v2, 0.0 }
 0x107   : > { %v685_v7 = vmax.f32 %v661_v5, 0.0 }
 0x108   : > { %v704_v8 = vpack.c.bf16 %v687_v6, %v686_v1 }
 0x109   : > { %v703_v9 = vpack.c.bf16 %v685_v7, %v684_v4 }
 0x10b   : > { %2780 = vmatprep.mubr.msk.bf16.mxu1 %vm735_vm2, %v703_v9 }
 0x10c   : > { %2781 = vmatmul.mubr.msk.bf16.gmra.mrb[12].mxu1 %vm735_vm2, %v704_v8 }
 0x1c7   : > { %v2770_v15 = vpop.f32.mrb[0].mxu1 }
 0x1c8   : > { %v803_v16 = vadd.f32 %v2770_v15, %v3056_v14  ;;  %v794_v17 = vpop.f32.mrb[1].mxu1 }
 0x1c9   : > { %v795_v18 = vadd.f32 %v3056_v14, %v794_v17  ;;  %v2771_v19 = vpop.f32.mrb[2].mxu1 }
 0x1ca   : > { %v859_v20 = vmax.f32 %v803_v16, 0.0  ;;  %v806_v21 = vadd.f32 %v2771_v19, %v3056_v14  ;;  %v797_v22 = vpop.f32.mrb[3].mxu1 }
 0x1cb   : > { %v857_v23 = vmax.f32 %v795_v18, 0.0  ;;  %v798_v24 = vadd.f32 %v3056_v14, %v797_v22 }
 0x1cc   : > { %v2683_v25 = vpack.c.bf16 %v859_v20, %v859_v20  ;;  %v860_v26 = vmax.f32 %v806_v21, 0.0 }
 0x1cd   : > { %v2681_v27 = vpack.c.bf16 %v857_v23, %v857_v23  ;;  %v858_v28 = vmax.f32 %v798_v24, 0.0  ;;  %v1314_v24 = vld [vmem:[%s3493_s9] sm:$0xff] }
 0x1ce   : > { %940 = vst.msk [vmem:[%s3066_s17 + $0x8] sm:$0xf] %vm937_vm3, %v2683_v25  ;;  %v874_v29 = vpack.c.bf16 %v860_v26, %v859_v20  ;;  %v2684_v30 = vpack.c.bf16 %v860_v26, %v860_v26  ;;  %v1318_v25 = vld [vmem:[%s3493_s9 + $0x20] sm:$0xff]  ;;  %v3133_v26 = vld [vmem:[%s3493_s9 + $0x8] sm:$0xff] }
 0x1cf   : > { %938 = vst.msk [vmem:[%s3066_s17] sm:$0xf] %vm937_vm3, %v2681_v27  ;;  %v873_v31 = vpack.c.bf16 %v858_v28, %v857_v23  ;;  %v2682_v32 = vpack.c.bf16 %v858_v28, %v858_v28  ;;  %v2774_v33 = vpop.f32.mrb[4].mxu1  ;;  %v2613_v27 = vcombine.low %v1314_v24, %v1318_v25  ;;  %v2614_v28 = vcombine.high %v1314_v24, %v1318_v25 }
 0x1d0   : > { %941 = vst.msk [vmem:[%s3066_s17 + $0xc] sm:$0xf] %vm937_vm3, %v2684_v30  ;;  %v819_v34 = vadd.f32 %v2774_v33, %v3056_v14  ;;  %v810_v35 = vpop.f32.mrb[5].mxu1  ;;  %v1322_v30 = vld [vmem:[%s3493_s9 + $0x40] sm:$0xff] }
 0x1d1   : > { %939 = vst.msk [vmem:[%s3066_s17 + $0x4] sm:$0xf] %vm937_vm3, %v2682_v32  ;;  %v811_v36 = vadd.f32 %v3056_v14, %v810_v35  ;;  %v2775_v37 = vpop.f32.mrb[6].mxu1  ;;  %2792 = vmatprep.mubr.msk.bf16.mxu0 %vm735_vm2, %v873_v31  ;;  %v1326_v31 = vld [vmem:[%s3493_s9 + $0x60] sm:$0xff]  ;;  %1707 = vmatprep.subr.bf16.mxu0 %v2614_v28 }
 0x1d2   : > { %v863_v38 = vmax.f32 %v819_v34, 0.0  ;;  %v822_v39 = vadd.f32 %v2775_v37, %v3056_v14  ;;  %v813_v40 = vpop.f32.mrb[7].mxu1  ;;  %2793 = vmatmul.mubr.msk.bf16.vlgmr.msra.gmra.mrb[16].mxu0 %vm735_vm2, %v874_v29  ;;  %v3138_v29 = vld [vmem:[%s3493_s9 + $0x28] sm:$0xff]  ;;  %v2622_v34 = vcombine.high %v1322_v30, %v1326_v31  ;;  %v1330_v35 = vld [vmem:[%s3493_s9 + $0x80] sm:$0xff]  ;;  %v2621_v37 = vcombine.low %v1322_v30, %v1326_v31 }
 0x1d3   : > { %v861_v41 = vmax.f32 %v811_v36, 0.0  ;;  %v814_v42 = vadd.f32 %v3056_v14, %v813_v40  ;;  %v2615_v32 = vcombine.low %v3133_v26, %v3138_v29  ;;  %v2616_v33 = vcombine.high %v3133_v26, %v3138_v29  ;;  %v1334_v36 = vld [vmem:[%s3493_s9 + $0xa0] sm:$0xff]  ;;  %1708 = vmatpush1.bf16.msra.mxu0 %v2613_v27 }
 0x1d4   : > { %v2687_v43 = vpack.c.bf16 %v863_v38, %v863_v38  ;;  %v864_v44 = vmax.f32 %v822_v39, 0.0  ;;  %1709 = vmatprep.subr.bf16.mxu0 %v2622_v34  ;;  %v1338_v39 = vld [vmem:[%s3493_s9 + $0xc0] sm:$0xff]  ;;  %v1351_v34 = vld [vmem:[%s3493_s9 + $0x128] sm:$0xff] }
 0x1d5   : > { %v2685_v45 = vpack.c.bf16 %v861_v41, %v861_v41  ;;  %v862_v46 = vmax.f32 %v814_v42, 0.0  ;;  %v1342_v40 = vld [vmem:[%s3493_s9 + $0xe0] sm:$0xff] }
 0x1d6   : > { %944 = vst.msk [vmem:[%s3066_s17 + $0x18] sm:$0xf] %vm937_vm3, %v2687_v43  ;;  %v876_v47 = vpack.c.bf16 %v864_v44, %v863_v38  ;;  %v2688_v48 = vpack.c.bf16 %v864_v44, %v864_v44  ;;  %v2630_v38 = vcombine.high %v1330_v35, %v1334_v36  ;;  %v2638_v42 = vcombine.high %v1338_v39, %v1342_v40  ;;  %v1346_v43 = vld [vmem:[%s3493_s9 + $0x100] sm:$0xff] }
 0x1d7   : > { %942 = vst.msk [vmem:[%s3066_s17 + $0x10] sm:$0xf] %vm937_vm3, %v2685_v45  ;;  %v875_v49 = vpack.c.bf16 %v862_v46, %v861_v41  ;;  %v2686_v50 = vpack.c.bf16 %v862_v46, %v862_v46  ;;  %v2778_v51 = vpop.f32.mrb[8].mxu1  ;;  %1710 = vmatpush1.bf16.msra.mxu0 %v2621_v37  ;;  %v2629_v41 = vcombine.low %v1330_v35, %v1334_v36  ;;  %v1350_v44 = vld [vmem:[%s3493_s9 + $0x120] sm:$0xff] }
 0x1d8   : > { %945 = vst.msk [vmem:[%s3066_s17 + $0x1c] sm:$0xf] %vm937_vm3, %v2688_v48  ;;  %v835_v52 = vadd.f32 %v2778_v51, %v3056_v14  ;;  %v826_v53 = vpop.f32.mrb[9].mxu1  ;;  %1711 = vmatprep.subr.bf16.mxu0 %v2630_v38  ;;  %v2637_v45 = vcombine.low %v1338_v39, %v1342_v40  ;;  %v2646_v46 = vcombine.high %v1346_v43, %v1350_v44  ;;  %v1358_v48 = vld [vmem:[%s3493_s9 + $0x160] sm:$0xff] }
 0x1d9   : > { %943 = vst.msk [vmem:[%s3066_s17 + $0x14] sm:$0xf] %vm937_vm3, %v2686_v50  ;;  %v827_v54 = vadd.f32 %v3056_v14, %v826_v53  ;;  %2796 = vmatprep.mubr.msk.bf16.mxu0 %vm735_vm2, %v875_v49  ;;  %v2779_v55 = vpop.f32.mrb[10].mxu1  ;;  %v2645_v49 = vcombine.low %v1346_v43, %v1350_v44  ;;  %v1355_v44 = vld [vmem:[%s3493_s9 + $0x148] sm:$0xff] }
 0x1da   : > { %v867_v56 = vmax.f32 %v835_v52, 0.0  ;;  %v838_v57 = vadd.f32 %v2779_v55, %v3056_v14  ;;  %2797 = vmatmul.mubr.msk.bf16.gmra.mrb[20].mxu0 %vm735_vm2, %v876_v47  ;;  %v829_v58 = vpop.f32.mrb[11].mxu1  ;;  %v1354_v47 = vld [vmem:[%s3493_s9 + $0x140] sm:$0xff] }
 0x1db   : > { %v865_v59 = vmax.f32 %v827_v54, 0.0  ;;  %v830_v60 = vadd.f32 %v3056_v14, %v829_v58  ;;  %1712 = vmatpush1.bf16.msra.mxu0 %v2629_v41  ;;  %v2654_v50 = vcombine.high %v1354_v47, %v1358_v48  ;;  %v2653_v51 = vcombine.low %v1354_v47, %v1358_v48  ;;  %v3177_v52 = vld [vmem:[%s3490_s6] ss:$0 sm:$0xff] }
 0x1dc   : > { %v2691_v61 = vpack.c.bf16 %v867_v56, %v867_v56  ;;  %v868_v62 = vmax.f32 %v838_v57, 0.0  ;;  %1713 = vmatprep.subr.bf16.mxu0 %v2638_v42 }
 0x1dd   : > { %v2689_v63 = vpack.c.bf16 %v865_v59, %v865_v59  ;;  %v866_v0 = vmax.f32 %v830_v60, 0.0 }
 0x1de   : > { %948 = vst.msk [vmem:[%s3066_s17 + $0x28] sm:$0xf] %vm937_vm3, %v2691_v61  ;;  %v878_v1 = vpack.c.bf16 %v868_v62, %v867_v56  ;;  %v2692_v2 = vpack.c.bf16 %v868_v62, %v868_v62 }
 0x1df   : > { %946 = vst.msk [vmem:[%s3066_s17 + $0x20] sm:$0xf] %vm937_vm3, %v2689_v63  ;;  %v877_v3 = vpack.c.bf16 %v866_v0, %v865_v59  ;;  %v2690_v4 = vpack.c.bf16 %v866_v0, %v866_v0  ;;  %v2782_v5 = vpop.f32.mrb[12].mxu1  ;;  %1714 = vmatpush1.bf16.msra.mxu0 %v2637_v45  ;;  %v1359_v45 = vld [vmem:[%s3493_s9 + $0x168] sm:$0xff] }
 0x1e0   : > { %949 = vst.msk [vmem:[%s3066_s17 + $0x2c] sm:$0xf] %vm937_vm3, %v2692_v2  ;;  %v851_v6 = vadd.f32 %v2782_v5, %v3056_v14  ;;  %v842_v7 = vpop.f32.mrb[13].mxu1  ;;  %1715 = vmatprep.subr.bf16.mxu0 %v2646_v46  ;;  %v1327_v2 = vld [vmem:[%s3493_s9 + $0x68] sm:$0xff] }
 0x1e1   : > { %947 = vst.msk [vmem:[%s3066_s17 + $0x24] sm:$0xf] %vm937_vm3, %v2690_v4  ;;  %2800 = vmatprep.mubr.msk.bf16.mxu0 %vm735_vm2, %v877_v3  ;;  %v843_v8 = vadd.f32 %v3056_v14, %v842_v7  ;;  %v2783_v9 = vpop.f32.mrb[14].mxu1 }
 0x1e2   : > { %2801 = vmatmul.mubr.msk.bf16.gmra.mrb[24].mxu0 %vm735_vm2, %v878_v1  ;;  %v871_v10 = vmax.f32 %v851_v6, 0.0  ;;  %v854_v11 = vadd.f32 %v2783_v9, %v3056_v14  ;;  %v845_v12 = vpop.f32.mrb[15].mxu1  ;;  %v1323_v1 = vld [vmem:[%s3493_s9 + $0x48] sm:$0xff] }
 0x1e3   : > { %v869_v13 = vmax.f32 %v843_v8, 0.0  ;;  %v846_v15 = vadd.f32 %v3056_v14, %v845_v12  ;;  %v2879_v14 = vld [vmem:[%s3491_s7 + $0x18] sm:$0xff]   ;;  %1716 = vmatpush1.bf16.msra.mxu0 %v2645_v49  ;;  %v2624_v8 = vcombine.high %v1323_v1, %v1327_v2  ;;  %v1335_v12 = vld [vmem:[%s3493_s9 + $0xa8] sm:$0xff] }
 0x1e4   : > { %v2695_v16 = vpack.c.bf16 %v871_v10, %v871_v10  ;;  %v872_v17 = vmax.f32 %v854_v11, 0.0  ;;  %2814 = vmatprep.subr.bf16.mxu1 %v2879_v14  ;;  %1717 = vmatprep.subr.bf16.mxu0 %v2654_v50  ;;  %v1331_v11 = vld [vmem:[%s3493_s9 + $0x88] sm:$0xff] }
 0x1e5   : > { %v2693_v18 = vpack.c.bf16 %v869_v13, %v869_v13  ;;  %v870_v19 = vmax.f32 %v846_v15, 0.0  ;;  %2815 = vmatpush3.bf16.msra.mxu1 %v2879_v14  ;;  %v1343_v14 = vld [vmem:[%s3493_s9 + $0xe8] sm:$0xff]  ;;  %v2631_v26 = vcombine.low %v1331_v11, %v1335_v12 }
 0x1e6   : > { %952 = vst.msk [vmem:[%s3066_s17 + $0x38] sm:$0xf] %vm937_vm3, %v2695_v16  ;;  %v880_v20 = vpack.c.bf16 %v872_v17, %v871_v10  ;;  %v2696_v21 = vpack.c.bf16 %v872_v17, %v872_v17  ;;  %1820 = vmatprep.subr.bf16.mxu1 %v2616_v33  ;;  %v2623_v17 = vcombine.low %v1323_v1, %v1327_v2  ;;  %v1347_v33 = vld [vmem:[%s3493_s9 + $0x108] sm:$0xff]  ;;  %v1362_v2 = vld [vmem:[%s3493_s9 + $0x180] sm:$0xff] }
 0x1e7   : > { %950 = vst.msk [vmem:[%s3066_s17 + $0x30] sm:$0xf] %vm937_vm3, %v2693_v18  ;;  %v879_v22 = vpack.c.bf16 %v870_v19, %v869_v13  ;;  %v2694_v23 = vpack.c.bf16 %v870_v19, %v870_v19  ;;  %1718 = vmatpush1.bf16.msra.mxu0 %v2653_v51  ;;  %v2648_v42 = vcombine.high %v1347_v33, %v1351_v34 }
 0x1e8   : > { %953 = vst.msk [vmem:[%s3066_s17 + $0x3c] sm:$0xf] %vm937_vm3, %v2696_v21  ;;  %v2647_v49 = vcombine.low %v1347_v33, %v1351_v34 }
 0x1e9   : > { %951 = vst.msk [vmem:[%s3066_s17 + $0x34] sm:$0xf] %vm937_vm3, %v2694_v23  ;;  %2804 = vmatprep.mubr.msk.bf16.mxu0 %vm735_vm2, %v879_v22  ;;  %v1339_v23 = vld [vmem:[%s3493_s9 + $0xc8] sm:$0xff]  ;;  %s480_s17 = scalar_lea.vmem %s3496_s12, %s2540_s14 }
 0x1ea   : > { %2805 = vmatmul.mubr.msk.bf16.gmra.mrb[28].mxu0 %vm735_vm2, %v880_v20  ;;  %v2632_v20 = vcombine.high %v1331_v11, %v1335_v12  ;;  %v2640_v30 = vcombine.high %v1339_v23, %v1343_v14  ;;  %v2639_v40 = vcombine.low %v1339_v23, %v1343_v14  ;;  %v1371_v11 = vld [vmem:[%s3493_s9 + $0x1c8] sm:$0xff]  ;;  %v1321_v14 = vld [vmem:[%s3493_s9 + $0x38] sm:$0xff] }
 0x2a5   : > { %v2794_v53 = vpop.f32.mrb[16].mxu0 }
 0x2a6   : > { %v1060_v54 = vadd.f32 %v2794_v53, %v3177_v52  ;;  %v1051_v55 = vpop.f32.mrb[17].mxu0  ;;  %v2656_v53 = vcombine.high %v1355_v44, %v1359_v45 }
 0x2a7   : > { %v1052_v56 = vadd.f32 %v3177_v52, %v1051_v55  ;;  %v2795_v57 = vpop.f32.mrb[18].mxu0 }
 0x2a8   : > { %v1063_v58 = vadd.f32 %v2795_v57, %v3177_v52  ;;  %v1054_v59 = vpop.f32.mrb[19].mxu0  ;;  %v1116_v61 = vmax.f32 %v1060_v54, 0.0 }
 0x2a9   : > { %v1055_v60 = vadd.f32 %v3177_v52, %v1054_v59  ;;  %v1114_v63 = vmax.f32 %v1052_v56, 0.0 }
 0x2aa   : > { %v1117_v62 = vmax.f32 %v1063_v58, 0.0 }
 0x2ab   : > { %v1115_v0 = vmax.f32 %v1055_v60, 0.0 }
 0x2ac   : > { %v1140_v3 = vpack.c.bf16 %v1117_v62, %v1116_v61  ;;  %v2655_v61 = vcombine.low %v1355_v44, %v1359_v45 }
 0x2ad   : > { %v1139_v4 = vpack.c.bf16 %v1115_v0, %v1114_v63  ;;  %v2798_v5 = vpop.f32.mrb[20].mxu0 }
 0x2ae   : > { %v1076_v6 = vadd.f32 %v2798_v5, %v3177_v52  ;;  %v1067_v7 = vpop.f32.mrb[21].mxu0  ;;  %v1367_v5 = vld [vmem:[%s3493_s9 + $0x1a8] sm:$0xff] }
 0x2af   : > { %v1068_v9 = vadd.f32 %v3177_v52, %v1067_v7  ;;  %v2799_v10 = vpop.f32.mrb[22].mxu0  ;;  %2816 = vmatprep.mubr.msk.bf16.mxu1 %vm735_vm2, %v1139_v4 }
 0x2b0   : > { %v1079_v13 = vadd.f32 %v2799_v10, %v3177_v52  ;;  %v1070_v15 = vpop.f32.mrb[23].mxu0  ;;  %2817 = vmatmul.mubr.msk.bf16.vlgmr.msra.gmra.mrb[16].mxu1 %vm735_vm2, %v1140_v3  ;;  %v1120_v18 = vmax.f32 %v1076_v6, 0.0  ;;  %v1363_v3 = vld [vmem:[%s3493_s9 + $0x188] sm:$0xff]  ;;  %v1374_v10 = vld [vmem:[%s3493_s9 + $0x1e0] sm:$0xff] }
 0x2b1   : > { %v1071_v16 = vadd.f32 %v3177_v52, %v1070_v15  ;;  %1821 = vmatpush1.bf16.msra.mxu1 %v2615_v32  ;;  %v1118_v21 = vmax.f32 %v1068_v9, 0.0  ;;  %v2663_v7 = vcombine.low %v1363_v3, %v1367_v5  ;;  %v1370_v9 = vld [vmem:[%s3493_s9 + $0x1c0] sm:$0xff] }
 0x2b2   : > { %v1121_v19 = vmax.f32 %v1079_v13, 0.0  ;;  %1822 = vmatprep.subr.bf16.mxu1 %v2624_v8  ;;  %v2664_v8 = vcombine.high %v1363_v3, %v1367_v5  ;;  %v2670_v12 = vcombine.high %v1370_v9, %v1374_v10  ;;  %v1375_v13 = vld [vmem:[%s3493_s9 + $0x1e8] sm:$0xff]  ;;  %v2669_v15 = vcombine.low %v1370_v9, %v1374_v10  ;;  %v1341_v5 = vld [vmem:[%s3493_s9 + $0xd8] sm:$0xff] }
 0x2b3   : > { %v1119_v22 = vmax.f32 %v1071_v16, 0.0  ;;  %v2671_v16 = vcombine.low %v1371_v11, %v1375_v13 }
 0x2b4   : > { %v1142_v24 = vpack.c.bf16 %v1121_v19, %v1120_v18  ;;  %v2904_v18 = vmov 0   ;;  %v1316_v19 = vld [vmem:[%s3493_s9 + $0x10] sm:$0xff] }
 0x2b5   : > { %v1141_v25 = vpack.c.bf16 %v1119_v22, %v1118_v21  ;;  %v2802_v27 = vpop.f32.mrb[24].mxu0  ;;  %1823 = vmatpush1.bf16.msra.mxu1 %v2623_v17  ;;  %v2672_v17 = vcombine.high %v1371_v11, %v1375_v13  ;;  %1739 = vmatprep.mubr.bf16.mxu0 %v2904_v18  ;;  %v1317_v21 = vld [vmem:[%s3493_s9 + $0x18] sm:$0xff] }
 0x2b6   : > { %v1092_v28 = vadd.f32 %v2802_v27, %v3177_v52  ;;  %v1083_v29 = vpop.f32.mrb[25].mxu0  ;;  %1824 = vmatprep.subr.bf16.mxu1 %v2632_v20  ;;  %v1320_v20 = vld [vmem:[%s3493_s9 + $0x30] sm:$0xff]  ;;  %v3277_v27 = vld [vmem:[%s3492_s8] ss:$0 sm:$0xff] }
 0x2b7   : > { %v1084_v31 = vadd.f32 %v3177_v52, %v1083_v29  ;;  %2820 = vmatprep.mubr.msk.bf16.mxu1 %vm735_vm2, %v1141_v25  ;;  %v2803_v32 = vpop.f32.mrb[26].mxu0  ;;  %v2617_v22 = vcombine.low %v1316_v19, %v1320_v20  ;;  %v2618_v23 = vcombine.high %v1316_v19, %v1320_v20  ;;  %v2620_v25 = vcombine.high %v1317_v21, %v1321_v14 }
 0x2b8   : > { %v1124_v35 = vmax.f32 %v1092_v28, 0.0  ;;  %v1095_v36 = vadd.f32 %v2803_v32, %v3177_v52  ;;  %2821 = vmatmul.mubr.msk.bf16.gmra.mrb[20].mxu1 %vm735_vm2, %v1142_v24  ;;  %v1086_v37 = vpop.f32.mrb[27].mxu0  ;;  %v2619_v24 = vcombine.low %v1317_v21, %v1321_v14  ;;  %v1352_v21 = vld [vmem:[%s3493_s9 + $0x130] sm:$0xff] }
 0x2b9   : > { %v1122_v38 = vmax.f32 %v1084_v31, 0.0  ;;  %v1087_v39 = vadd.f32 %v3177_v52, %v1086_v37  ;;  %1825 = vmatpush1.bf16.msra.mxu1 %v2631_v26  ;;  %v1324_v37 = vld [vmem:[%s3493_s9 + $0x50] sm:$0xff] }
 0x2ba   : > { %v1125_v41 = vmax.f32 %v1095_v36, 0.0  ;;  %1826 = vmatprep.subr.bf16.mxu1 %v2640_v30 }
 0x2bb   : > { %v1123_v43 = vmax.f32 %v1087_v39, 0.0 }
 0x2bc   : > { %v1144_v46 = vpack.c.bf16 %v1125_v41, %v1124_v35  ;;  %v1325_v41 = vld [vmem:[%s3493_s9 + $0x58] sm:$0xff] }
 0x2bd   : > { %v1143_v47 = vpack.c.bf16 %v1123_v43, %v1122_v38  ;;  %v2806_v48 = vpop.f32.mrb[28].mxu0  ;;  %1827 = vmatpush1.bf16.msra.mxu1 %v2639_v40  ;;  %v1328_v40 = vld [vmem:[%s3493_s9 + $0x70] sm:$0xff] }
 0x2be   : > { %v1108_v50 = vadd.f32 %v2806_v48, %v3177_v52  ;;  %v1099_v51 = vpop.f32.mrb[29].mxu0  ;;  %1828 = vmatprep.subr.bf16.mxu1 %v2648_v42  ;;  %v1329_v42 = vld [vmem:[%s3493_s9 + $0x78] sm:$0xff] }
 0x2bf   : > { %2824 = vmatprep.mubr.msk.bf16.mxu1 %vm735_vm2, %v1143_v47  ;;  %v1100_v54 = vadd.f32 %v3177_v52, %v1099_v51  ;;  %v2807_v55 = vpop.f32.mrb[30].mxu0  ;;  %v1336_v51 = vld [vmem:[%s3493_s9 + $0xb0] sm:$0xff] }
 0x2c0   : > { %2825 = vmatmul.mubr.msk.bf16.gmra.mrb[24].mxu1 %vm735_vm2, %v1144_v46  ;;  %v1128_v56 = vmax.f32 %v1108_v50, 0.0  ;;  %v1111_v57 = vadd.f32 %v2807_v55, %v3177_v52  ;;  %v1102_v58 = vpop.f32.mrb[31].mxu0  ;;  %v1332_v46 = vld [vmem:[%s3493_s9 + $0x90] sm:$0xff]  ;;  %v2628_v50 = vcombine.high %v1325_v41, %v1329_v42 }
 0x2c1   : > { %v1126_v59 = vmax.f32 %v1100_v54, 0.0  ;;  %v1103_v60 = vadd.f32 %v3177_v52, %v1102_v58  ;;  %1829 = vmatpush1.bf16.msra.mxu1 %v2647_v49  ;;  %v1366_v52 = vld [vmem:[%s3493_s9 + $0x1a0] sm:$0xff]  ;;  %v2626_v49 = vcombine.high %v1324_v37, %v1328_v40  ;;  %v1337_v54 = vld [vmem:[%s3493_s9 + $0xb8] sm:$0xff]  ;;  %v2633_v10 = vcombine.low %v1332_v46, %v1336_v51 }
 0x2c2   : > { %v1129_v62 = vmax.f32 %v1111_v57, 0.0  ;;  %1830 = vmatprep.subr.bf16.mxu1 %v2656_v53  ;;  %v2662_v4 = vcombine.high %v1362_v2, %v1366_v52  ;;  %v2661_v6 = vcombine.low %v1362_v2, %v1366_v52  ;;  %v1333_v53 = vld [vmem:[%s3493_s9 + $0x98] sm:$0xff]  ;;  %v1340_v2 = vld [vmem:[%s3493_s9 + $0xd0] sm:$0xff] }
 0x2c3   : > { %v1127_v63 = vmax.f32 %v1103_v60, 0.0  ;;  %v2627_v60 = vcombine.low %v1325_v41, %v1329_v42  ;;  %v2635_v11 = vcombine.low %v1333_v53, %v1337_v54 }
 0x2c4   : > { %v1146_v0 = vpack.c.bf16 %v1129_v62, %v1128_v56  ;;  %1719 = vmatprep.subr.bf16.mxu0 %v2662_v4  ;;  %v2634_v62 = vcombine.high %v1332_v46, %v1336_v51  ;;  %v1344_v4 = vld [vmem:[%s3493_s9 + $0xf0] sm:$0xff] }
 0x2c5   : > { %v1145_v1 = vpack.c.bf16 %v1127_v63, %v1126_v59  ;;  %1831 = vmatpush1.bf16.msra.mxu1 %v2655_v61  ;;  %1720 = vmatpush1.bf16.msra.mxu0 %v2661_v6  ;;  %v2625_v59 = vcombine.low %v1324_v37, %v1328_v40  ;;  %v2636_v63 = vcombine.high %v1333_v53, %v1337_v54  ;;  %v1345_v6 = vld [vmem:[%s3493_s9 + $0xf8] sm:$0xff]  ;;  %v1368_v54 = vld [vmem:[%s3493_s9 + $0x1b0] sm:$0xff] }
 0x2c6   : > { %1832 = vmatprep.subr.bf16.mxu1 %v2664_v8  ;;  %1721 = vmatprep.subr.bf16.mxu0 %v2670_v12  ;;  %v1357_v37 = vld [vmem:[%s3493_s9 + $0x158] sm:$0xff] }
 0x2c7   : > { %2828 = vmatprep.mubr.msk.bf16.mxu1 %vm735_vm2, %v1145_v1 }
 0x2c8   : > { %2829 = vmatmul.mubr.msk.bf16.gmra.mrb[28].mxu1 %vm735_vm2, %v1146_v0 }
 0x2c9   : > { %1833 = vmatpush1.bf16.msra.mxu1 %v2663_v7  ;;  %1722 = vmatpush1.bf16.msra.mxu0 %v2669_v15  ;;  %v2642_v15 = vcombine.high %v1340_v2, %v1344_v4 }
 0x2ca   : > { %1834 = vmatprep.subr.bf16.mxu1 %v2672_v17  ;;  %1852 = vmatprep.mubr.bf16.mxu1 %v2904_v18  ;;  %v1348_v17 = vld [vmem:[%s3493_s9 + $0x110] sm:$0xff] }
 0x2cb   : > { %1933 = vmatprep.subr.bf16.mxu0 %v2618_v23  ;;  %v1353_v23 = vld [vmem:[%s3493_s9 + $0x138] sm:$0xff]  ;;  %v2649_v42 = vcombine.low %v1348_v17, %v1352_v21 }
 0x2cd   : > { %1835 = vmatpush1.bf16.msra.mxu1 %v2671_v16  ;;  %v2644_v16 = vcombine.high %v1341_v5, %v1345_v6 }
 0x2ce   : > { %2046 = vmatprep.subr.bf16.mxu1 %v2620_v25 }
 0x383   : > { %v2818_v26 = vpop.f32.mrb[16].mxu1 }
 0x384   : > { %v1244_v28 = vadd.f32 %v2818_v26, %v3277_v27  ;;  %v1235_v29 = vpop.f32.mrb[17].mxu1 }
 0x385   : > { %v1236_v30 = vadd.f32 %v3277_v27, %v1235_v29  ;;  %v2819_v31 = vpop.f32.mrb[18].mxu1  ;;  %v2641_v29 = vcombine.low %v1340_v2, %v1344_v4  ;;  %v1376_v4 = vld [vmem:[%s3493_s9 + $0x1f0] sm:$0xff] }
 0x386   : > { %v1247_v32 = vadd.f32 %v2819_v31, %v3277_v27  ;;  %v1238_v33 = vpop.f32.mrb[19].mxu1  ;;  %v1300_v35 = vmax.f32 %v1244_v28, 0.0 }
 0x387   : > { %v1239_v34 = vadd.f32 %v3277_v27, %v1238_v33  ;;  %v1298_v38 = vmax.f32 %v1236_v30, 0.0  ;;  %v2643_v30 = vcombine.low %v1341_v5, %v1345_v6  ;;  %v1377_v5 = vld [vmem:[%s3493_s9 + $0x1f8] sm:$0xff] }
 0x388   : > { %v1301_v36 = vmax.f32 %v1247_v32, 0.0  ;;  %v2650_v32 = vcombine.high %v1348_v17, %v1352_v21 }
 0x389   : > { %v1299_v39 = vmax.f32 %v1239_v34, 0.0  ;;  %v1356_v34 = vld [vmem:[%s3493_s9 + $0x150] sm:$0xff] }
 0x38a   : > { %v3295_v43 = vpack.c.bf16 %v1301_v36, %v1300_v35  ;;  %v1360_v36 = vld [vmem:[%s3493_s9 + $0x170] sm:$0xff] }
 0x38b   : > { %v3297_v44 = vpack.c.bf16 %v1299_v39, %v1298_v38  ;;  %v2822_v45 = vpop.f32.mrb[20].mxu1  ;;  %v1361_v38 = vld [vmem:[%s3493_s9 + $0x178] sm:$0xff] }
 0x38c   : > { %v1260_v47 = vadd.f32 %v2822_v45, %v3277_v27  ;;  %v1251_v48 = vpop.f32.mrb[21].mxu1 }
 0x38d   : > { %v1252_v55 = vadd.f32 %v3277_v27, %v1251_v48  ;;  %v2823_v56 = vpop.f32.mrb[22].mxu1  ;;  %1740 = vmatmul.mubr.bf16.vlgmr.msra.gmra.mrb[32].mxu0 %v3297_v44  ;;  %1853 = vmatmul.mubr.bf16.vlgmr.msra.gmra.mrb[32].mxu1 %v3297_v44  ;;  %v2658_v48 = vcombine.high %v1356_v34, %v1360_v36 }
 0x38e   : > { %v1263_v57 = vadd.f32 %v2823_v56, %v3277_v27  ;;  %1934 = vmatpush1.bf16.msra.mxu0 %v2617_v22  ;;  %2047 = vmatpush1.bf16.msra.mxu1 %v2619_v24  ;;  %v1254_v58 = vpop.f32.mrb[23].mxu1  ;;  %v1304_v0 = vmax.f32 %v1260_v47, 0.0  ;;  %v1349_v22 = vld [vmem:[%s3493_s9 + $0x118] sm:$0xff] }
 0x38f   : > { %v1255_v61 = vadd.f32 %v3277_v27, %v1254_v58  ;;  %1749 = vmatprep.mubr.bf16.mxu0 %v2904_v18  ;;  %1862 = vmatprep.mubr.bf16.mxu1 %v2904_v18  ;;  %v1302_v52 = vmax.f32 %v1252_v55, 0.0  ;;  %v2652_v33 = vcombine.high %v1349_v22, %v1353_v23  ;;  %v2651_v45 = vcombine.low %v1349_v22, %v1353_v23  ;;  %v1365_v55 = vld [vmem:[%s3493_s9 + $0x198] sm:$0xff] }
 0x390   : > { %v1305_v1 = vmax.f32 %v1263_v57, 0.0  ;;  %1935 = vmatprep.subr.bf16.mxu0 %v2626_v49  ;;  %2048 = vmatprep.subr.bf16.mxu1 %v2628_v50  ;;  %v2660_v49 = vcombine.high %v1357_v37, %v1361_v38  ;;  %v1364_v50 = vld [vmem:[%s3493_s9 + $0x190] sm:$0xff]  ;;  %v1369_v56 = vld [vmem:[%s3493_s9 + $0x1b8] sm:$0xff] }
 0x391   : > { %v1303_v3 = vmax.f32 %v1255_v61, 0.0  ;;  %v2668_v2 = vcombine.high %v1365_v55, %v1369_v56 }
 0x392   : > { %v3331_v7 = vpack.c.bf16 %v1305_v1, %v1304_v0  ;;  %1936 = vmatpush1.bf16.msra.mxu0 %v2625_v59  ;;  %2049 = vmatpush1.bf16.msra.mxu1 %v2627_v60  ;;  %v2666_v1 = vcombine.high %v1364_v50, %v1368_v54 }
 0x393   : > { %v3333_v8 = vpack.c.bf16 %v1303_v3, %v1302_v52  ;;  %v2826_v9 = vpop.f32.mrb[24].mxu1  ;;  %1937 = vmatprep.subr.bf16.mxu0 %v2634_v62  ;;  %2050 = vmatprep.subr.bf16.mxu1 %v2636_v63  ;;  %v2657_v62 = vcombine.low %v1356_v34, %v1360_v36  ;;  %v2659_v63 = vcombine.low %v1357_v37, %v1361_v38  ;;  %v1372_v52 = vld [vmem:[%s3493_s9 + $0x1d0] sm:$0xff] }
 0x394   : > { %v1276_v12 = vadd.f32 %v2826_v9, %v3277_v27  ;;  %v1267_v13 = vpop.f32.mrb[25].mxu1 }
 0x395   : > { %v1268_v19 = vadd.f32 %v3277_v27, %v1267_v13  ;;  %1750 = vmatmul.mubr.bf16.gmra.mrb[36].mxu0 %v3295_v43  ;;  %1863 = vmatmul.mubr.bf16.gmra.mrb[36].mxu1 %v3295_v43  ;;  %v2827_v20 = vpop.f32.mrb[26].mxu1 }
 0x396   : > { %v1308_v14 = vmax.f32 %v1276_v12, 0.0  ;;  %v1279_v24 = vadd.f32 %v2827_v20, %v3277_v27  ;;  %v1270_v25 = vpop.f32.mrb[27].mxu1  ;;  %1759 = vmatprep.mubr.bf16.mxu0 %v2904_v18  ;;  %1872 = vmatprep.mubr.bf16.mxu1 %v2904_v18  ;;  %v2674_v12 = vcombine.high %v1372_v52, %v1376_v4 }
 0x397   : > { %v1306_v26 = vmax.f32 %v1268_v19, 0.0  ;;  %v1271_v28 = vadd.f32 %v3277_v27, %v1270_v25  ;;  %1938 = vmatpush1.bf16.msra.mxu0 %v2633_v10  ;;  %2051 = vmatpush1.bf16.msra.mxu1 %v2635_v11  ;;  %v2665_v10 = vcombine.low %v1364_v50, %v1368_v54  ;;  %v2667_v11 = vcombine.low %v1365_v55, %v1369_v56 }
 0x398   : > { %v1309_v31 = vmax.f32 %v1279_v24, 0.0  ;;  %1939 = vmatprep.subr.bf16.mxu0 %v2642_v15  ;;  %2052 = vmatprep.subr.bf16.mxu1 %v2644_v16  ;;  %v2673_v15 = vcombine.low %v1372_v52, %v1376_v4 }
 0x399   : > { %v1307_v35 = vmax.f32 %v1271_v28, 0.0 }
 0x39a   : > { %v3367_v39 = vpack.c.bf16 %v1309_v31, %v1308_v14 }
 0x39b   : > { %v3369_v40 = vpack.c.bf16 %v1307_v35, %v1306_v26  ;;  %v2830_v41 = vpop.f32.mrb[28].mxu1  ;;  %1940 = vmatpush1.bf16.msra.mxu0 %v2641_v29  ;;  %2053 = vmatpush1.bf16.msra.mxu1 %v2643_v30 }
 0x39c   : > { %v1292_v46 = vadd.f32 %v2830_v41, %v3277_v27  ;;  %v1283_v47 = vpop.f32.mrb[29].mxu1  ;;  %1941 = vmatprep.subr.bf16.mxu0 %v2650_v32  ;;  %2054 = vmatprep.subr.bf16.mxu1 %v2652_v33 }
 0x39d   : > { %1760 = vmatmul.mubr.bf16.gmra.mrb[40].mxu0 %v3333_v8  ;;  %1873 = vmatmul.mubr.bf16.gmra.mrb[40].mxu1 %v3333_v8  ;;  %v1284_v51 = vadd.f32 %v3277_v27, %v1283_v47  ;;  %v2831_v53 = vpop.f32.mrb[30].mxu1 }
 0x39e   : > { %v1312_v57 = vmax.f32 %v1292_v46, 0.0  ;;  %1769 = vmatprep.mubr.bf16.mxu0 %v2904_v18  ;;  %1882 = vmatprep.mubr.bf16.mxu1 %v2904_v18  ;;  %v1295_v58 = vadd.f32 %v2831_v53, %v3277_v27  ;;  %v1286_v59 = vpop.f32.mrb[31].mxu1 }
 0x39f   : > { %v1310_v60 = vmax.f32 %v1284_v51, 0.0  ;;  %v1287_v61 = vadd.f32 %v3277_v27, %v1286_v59  ;;  %1942 = vmatpush1.bf16.msra.mxu0 %v2649_v42  ;;  %2055 = vmatpush1.bf16.msra.mxu1 %v2651_v45  ;;  %v1373_v27 = vld [vmem:[%s3493_s9 + $0x1d8] sm:$0xff] }
 0x3a0   : > { %v1313_v0 = vmax.f32 %v1295_v58, 0.0  ;;  %1943 = vmatprep.subr.bf16.mxu0 %v2658_v48  ;;  %2056 = vmatprep.subr.bf16.mxu1 %v2660_v49  ;;  %v2676_v13 = vcombine.high %v1373_v27, %v1377_v5  ;;  %v2675_v16 = vcombine.low %v1373_v27, %v1377_v5 }
 0x3a1   : > { %v1311_v3 = vmax.f32 %v1287_v61, 0.0 }
 0x3a2   : > { %v3403_v6 = vpack.c.bf16 %v1313_v0, %v1312_v57 }
 0x3a3   : > { %v1385_v9 = vpack.c.bf16 %v1311_v3, %v1310_v60  ;;  %1944 = vmatpush1.bf16.msra.mxu0 %v2657_v62  ;;  %2057 = vmatpush1.bf16.msra.mxu1 %v2659_v63 }
 0x3a4   : > { %1945 = vmatprep.subr.bf16.mxu0 %v2666_v1  ;;  %2058 = vmatprep.subr.bf16.mxu1 %v2668_v2 }
 0x3a5   : > { %1770 = vmatmul.mubr.bf16.gmra.mrb[44].mxu0 %v3331_v7  ;;  %1883 = vmatmul.mubr.bf16.gmra.mrb[44].mxu1 %v3331_v7 }
 0x3a6   : > { %1779 = vmatprep.mubr.bf16.mxu0 %v2904_v18  ;;  %1892 = vmatprep.mubr.bf16.mxu1 %v2904_v18 }
 0x3a7   : > { %1946 = vmatpush1.bf16.msra.mxu0 %v2665_v10  ;;  %2059 = vmatpush1.bf16.msra.mxu1 %v2667_v11 }
 0x3a8   : > { %1947 = vmatprep.subr.bf16.mxu0 %v2674_v12  ;;  %2060 = vmatprep.subr.bf16.mxu1 %v2676_v13 }
 0x3ab   : > { %1948 = vmatpush1.bf16.msra.mxu0 %v2673_v15  ;;  %2061 = vmatpush1.bf16.msra.mxu1 %v2675_v16 }
 0x3ad   : > { %1780 = vmatmul.mubr.bf16.gmra.mrb[48].mxu0 %v3369_v40  ;;  %1893 = vmatmul.mubr.bf16.gmra.mrb[48].mxu1 %v3369_v40 }
 0x3ae   : > { %1789 = vmatprep.mubr.bf16.mxu0 %v2904_v18  ;;  %1902 = vmatprep.mubr.bf16.mxu1 %v2904_v18 }
 0x3b5   : > { %1790 = vmatmul.mubr.bf16.gmra.mrb[52].mxu0 %v3367_v39  ;;  %1903 = vmatmul.mubr.bf16.gmra.mrb[52].mxu1 %v3367_v39 }
 0x3b6   : > { %1799 = vmatprep.mubr.bf16.mxu0 %v2904_v18  ;;  %1912 = vmatprep.mubr.bf16.mxu1 %v2904_v18 }
 0x3bd   : > { %1800 = vmatmul.mubr.bf16.gmra.mrb[56].mxu0 %v1385_v9  ;;  %1913 = vmatmul.mubr.bf16.gmra.mrb[56].mxu1 %v1385_v9 }
 0x3be   : > { %1809 = vmatprep.mubr.bf16.mxu0 %v2904_v18  ;;  %1922 = vmatprep.mubr.bf16.mxu1 %v2904_v18 }
 0x3c5   : > { %1810 = vmatmul.mubr.bf16.gmra.mrb[60].mxu0 %v3403_v6  ;;  %1923 = vmatmul.mubr.bf16.gmra.mrb[60].mxu1 %v3403_v6 }
 0x3c6   : > { %1965 = vmatprep.mubr.bf16.mxu0 %v2904_v18  ;;  %2078 = vmatprep.mubr.bf16.mxu1 %v2904_v18 }
 0x3cd   : > { %1966 = vmatmul.mubr.bf16.vlgmr.msra.gmra.mrb[64].mxu0 %v3297_v44  ;;  %2079 = vmatmul.mubr.bf16.vlgmr.msra.gmra.mrb[64].mxu1 %v3297_v44 }
 0x3ce   : > { %1975 = vmatprep.mubr.bf16.mxu0 %v2904_v18  ;;  %2088 = vmatprep.mubr.bf16.mxu1 %v2904_v18 }
 0x3d5   : > { %1976 = vmatmul.mubr.bf16.gmra.mrb[68].mxu0 %v3295_v43  ;;  %2089 = vmatmul.mubr.bf16.gmra.mrb[68].mxu1 %v3295_v43 }
 0x3d6   : > { %1985 = vmatprep.mubr.bf16.mxu0 %v2904_v18  ;;  %2098 = vmatprep.mubr.bf16.mxu1 %v2904_v18 }
 0x3dd   : > { %1986 = vmatmul.mubr.bf16.gmra.mrb[72].mxu0 %v3333_v8  ;;  %2099 = vmatmul.mubr.bf16.gmra.mrb[72].mxu1 %v3333_v8 }
 0x3de   : > { %1995 = vmatprep.mubr.bf16.mxu0 %v2904_v18  ;;  %2108 = vmatprep.mubr.bf16.mxu1 %v2904_v18 }
 0x3e5   : > { %1996 = vmatmul.mubr.bf16.gmra.mrb[76].mxu0 %v3331_v7  ;;  %2109 = vmatmul.mubr.bf16.gmra.mrb[76].mxu1 %v3331_v7 }
 0x3e6   : > { %2005 = vmatprep.mubr.bf16.mxu0 %v2904_v18  ;;  %2118 = vmatprep.mubr.bf16.mxu1 %v2904_v18 }
 0x3ed   : > { %2006 = vmatmul.mubr.bf16.gmra.mrb[80].mxu0 %v3369_v40  ;;  %2119 = vmatmul.mubr.bf16.gmra.mrb[80].mxu1 %v3369_v40 }
 0x3ee   : > { %2015 = vmatprep.mubr.bf16.mxu0 %v2904_v18  ;;  %2128 = vmatprep.mubr.bf16.mxu1 %v2904_v18 }
 0x3f5   : > { %2016 = vmatmul.mubr.bf16.gmra.mrb[84].mxu0 %v3367_v39  ;;  %2129 = vmatmul.mubr.bf16.gmra.mrb[84].mxu1 %v3367_v39 }
 0x3f6   : > { %2025 = vmatprep.mubr.bf16.mxu0 %v2904_v18  ;;  %2138 = vmatprep.mubr.bf16.mxu1 %v2904_v18 }
 0x3fd   : > { %2026 = vmatmul.mubr.bf16.gmra.mrb[88].mxu0 %v1385_v9  ;;  %2139 = vmatmul.mubr.bf16.gmra.mrb[88].mxu1 %v1385_v9 }
 0x3fe   : > { %2035 = vmatprep.mubr.bf16.mxu0 %v2904_v18  ;;  %2148 = vmatprep.mubr.bf16.mxu1 %v2904_v18 }
 0x405   : > { %2036 = vmatmul.mubr.bf16.gmra.mrb[92].mxu0 %v3403_v6  ;;  %2149 = vmatmul.mubr.bf16.gmra.mrb[92].mxu1 %v3403_v6 }
 0x460   : > { %v1741_v43 = vpop.f32.mrb[32].mxu0  ;;  %v1854_v44 = vpop.f32.mrb[32].mxu1 }
 0x461   : > { %v1743_v7 = vpop.f32.mrb[33].mxu0  ;;  %v1856_v8 = vpop.f32.mrb[33].mxu1 }
 0x462   : > { %v1745_v17 = vpop.f32.mrb[34].mxu0  ;;  %v1858_v19 = vpop.f32.mrb[34].mxu1 }
 0x463   : > { %v2164_v20 = vmax.f32 %v1741_v43, %v1745_v17  ;;  %v2206_v21 = vmax.f32 %v1854_v44, %v1858_v19  ;;  %v1747_v22 = vpop.f32.mrb[35].mxu0  ;;  %v1860_v23 = vpop.f32.mrb[35].mxu1 }
 0x464   : > { %v2185_v14 = vmax.f32 %v1743_v7, %v1747_v22  ;;  %v2227_v24 = vmax.f32 %v1856_v8, %v1860_v23 }
 0x468   : > { %v1751_v25 = vpop.f32.mrb[36].mxu0  ;;  %v1864_v26 = vpop.f32.mrb[36].mxu1 }
 0x469   : > { %v2165_v28 = vmax.f32 %v2164_v20, %v1751_v25  ;;  %v2207_v18 = vmax.f32 %v2206_v21, %v1864_v26  ;;  %v1753_v29 = vpop.f32.mrb[37].mxu0  ;;  %v1866_v30 = vpop.f32.mrb[37].mxu1 }
 0x46a   : > { %v2186_v31 = vmax.f32 %v2185_v14, %v1753_v29  ;;  %v2228_v32 = vmax.f32 %v2227_v24, %v1866_v30  ;;  %v1755_v33 = vpop.f32.mrb[38].mxu0  ;;  %v1868_v34 = vpop.f32.mrb[38].mxu1 }
 0x46b   : > { %v2166_v35 = vmax.f32 %v2165_v28, %v1755_v33  ;;  %v2208_v36 = vmax.f32 %v2207_v18, %v1868_v34  ;;  %v1757_v37 = vpop.f32.mrb[39].mxu0  ;;  %v1870_v38 = vpop.f32.mrb[39].mxu1 }
 0x46c   : > { %v2187_v39 = vmax.f32 %v2186_v31, %v1757_v37  ;;  %v2229_v40 = vmax.f32 %v2228_v32, %v1870_v38 }
 0x470   : > { %v1761_v41 = vpop.f32.mrb[40].mxu0  ;;  %v1874_v42 = vpop.f32.mrb[40].mxu1 }
 0x471   : > { %v2167_v45 = vmax.f32 %v2166_v35, %v1761_v41  ;;  %v2209_v46 = vmax.f32 %v2208_v36, %v1874_v42  ;;  %v1763_v47 = vpop.f32.mrb[41].mxu0  ;;  %v1876_v48 = vpop.f32.mrb[41].mxu1 }
 0x472   : > { %v2188_v49 = vmax.f32 %v2187_v39, %v1763_v47  ;;  %v2230_v50 = vmax.f32 %v2229_v40, %v1876_v48  ;;  %v1765_v51 = vpop.f32.mrb[42].mxu0  ;;  %v1878_v53 = vpop.f32.mrb[42].mxu1 }
 0x473   : > { %v2168_v54 = vmax.f32 %v2167_v45, %v1765_v51  ;;  %v2210_v55 = vmax.f32 %v2209_v46, %v1878_v53  ;;  %v1767_v56 = vpop.f32.mrb[43].mxu0  ;;  %v1880_v57 = vpop.f32.mrb[43].mxu1 }
 0x474   : > { %v2189_v58 = vmax.f32 %v2188_v49, %v1767_v56  ;;  %v2231_v59 = vmax.f32 %v2230_v50, %v1880_v57 }
 0x478   : > { %v1771_v60 = vpop.f32.mrb[44].mxu0  ;;  %v1884_v61 = vpop.f32.mrb[44].mxu1 }
 0x479   : > { %v2169_v62 = vmax.f32 %v2168_v54, %v1771_v60  ;;  %v2211_v63 = vmax.f32 %v2210_v55, %v1884_v61  ;;  %v1773_v0 = vpop.f32.mrb[45].mxu0  ;;  %v1886_v1 = vpop.f32.mrb[45].mxu1 }
 0x47a   : > { %v2190_v2 = vmax.f32 %v2189_v58, %v1773_v0  ;;  %v2232_v52 = vmax.f32 %v2231_v59, %v1886_v1  ;;  %v1775_v3 = vpop.f32.mrb[46].mxu0  ;;  %v1888_v4 = vpop.f32.mrb[46].mxu1 }
 0x47b   : > { %v2170_v27 = vmax.f32 %v2169_v62, %v1775_v3  ;;  %v2212_v5 = vmax.f32 %v2211_v63, %v1888_v4  ;;  %v1777_v6 = vpop.f32.mrb[47].mxu0  ;;  %v1890_v9 = vpop.f32.mrb[47].mxu1 }
 0x47c   : > { %v2191_v10 = vmax.f32 %v2190_v2, %v1777_v6  ;;  %v2233_v11 = vmax.f32 %v2232_v52, %v1890_v9 }
 0x480   : > { %v1781_v12 = vpop.f32.mrb[48].mxu0  ;;  %v1894_v13 = vpop.f32.mrb[48].mxu1 }
 0x481   : > { %v2171_v15 = vmax.f32 %v2170_v27, %v1781_v12  ;;  %v2213_v16 = vmax.f32 %v2212_v5, %v1894_v13  ;;  %v1783_v43 = vpop.f32.mrb[49].mxu0  ;;  %v1896_v44 = vpop.f32.mrb[49].mxu1 }
 0x482   : > { %v2192_v7 = vmax.f32 %v2191_v10, %v1783_v43  ;;  %v2234_v8 = vmax.f32 %v2233_v11, %v1896_v44  ;;  %v1785_v17 = vpop.f32.mrb[50].mxu0  ;;  %v1898_v19 = vpop.f32.mrb[50].mxu1  ;;  %v2348_v44 = vlaneseq }
 0x483   : > { %v2172_v20 = vmax.f32 %v2171_v15, %v1785_v17  ;;  %v2214_v21 = vmax.f32 %v2213_v16, %v1898_v19  ;;  %v1787_v22 = vpop.f32.mrb[51].mxu0  ;;  %v1900_v23 = vpop.f32.mrb[51].mxu1  ;;  %v2905_v16 = vmov 1966171168  }
 0x484   : > { %v2193_v14 = vmax.f32 %v2192_v7, %v1787_v22  ;;  %v2235_v24 = vmax.f32 %v2234_v8, %v1900_v23  ;;  %v2346_v43 = vunpack.c.l.s4 %v2905_v16 }
 0x488   : > { %v1791_v25 = vpop.f32.mrb[52].mxu0  ;;  %v1904_v26 = vpop.f32.mrb[52].mxu1 }
 0x489   : > { %v2173_v28 = vmax.f32 %v2172_v20, %v1791_v25  ;;  %v2215_v18 = vmax.f32 %v2214_v21, %v1904_v26  ;;  %v1793_v29 = vpop.f32.mrb[53].mxu0  ;;  %v1906_v30 = vpop.f32.mrb[53].mxu1 }
 0x48a   : > { %v2194_v31 = vmax.f32 %v2193_v14, %v1793_v29  ;;  %v2236_v32 = vmax.f32 %v2235_v24, %v1906_v30  ;;  %v1795_v33 = vpop.f32.mrb[54].mxu0  ;;  %v1908_v34 = vpop.f32.mrb[54].mxu1 }
 0x48b   : > { %v2174_v35 = vmax.f32 %v2173_v28, %v1795_v33  ;;  %v2216_v36 = vmax.f32 %v2215_v18, %v1908_v34  ;;  %v1797_v37 = vpop.f32.mrb[55].mxu0  ;;  %v1910_v38 = vpop.f32.mrb[55].mxu1  ;;  %v2347_v28 = vunpack.c.0.s8 %v2346_v43  ;;  %v2349_v18 = vshrl.u32 %v2348_v44, 7 }
 0x48c   : > { %v2195_v39 = vmax.f32 %v2194_v31, %v1797_v37  ;;  %v2237_v40 = vmax.f32 %v2236_v32, %v1910_v38 }
 0x490   : > { %v1801_v41 = vpop.f32.mrb[56].mxu0  ;;  %v1914_v42 = vpop.f32.mrb[56].mxu1 }
 0x491   : > { %v2175_v45 = vmax.f32 %v2174_v35, %v1801_v41  ;;  %v2217_v46 = vmax.f32 %v2216_v36, %v1914_v42  ;;  %v1803_v47 = vpop.f32.mrb[57].mxu0  ;;  %v1916_v48 = vpop.f32.mrb[57].mxu1 }
 0x492   : > { %v2196_v49 = vmax.f32 %v2195_v39, %v1803_v47  ;;  %v2238_v50 = vmax.f32 %v2237_v40, %v1916_v48  ;;  %v1805_v51 = vpop.f32.mrb[58].mxu0  ;;  %v1918_v53 = vpop.f32.mrb[58].mxu1 }
 0x493   : > { %v2176_v54 = vmax.f32 %v2175_v45, %v1805_v51  ;;  %v2218_v55 = vmax.f32 %v2217_v46, %v1918_v53  ;;  %v1807_v56 = vpop.f32.mrb[59].mxu0  ;;  %v1920_v57 = vpop.f32.mrb[59].mxu1  ;;  %v3451_v51 = vsub.s32 %v2347_v28, %v2349_v18 }
 0x494   : > { %v2197_v58 = vmax.f32 %v2196_v49, %v1807_v56  ;;  %v2239_v59 = vmax.f32 %v2238_v50, %v1920_v57 }
 0x498   : > { %v1811_v60 = vpop.f32.mrb[60].mxu0  ;;  %v1924_v61 = vpop.f32.mrb[60].mxu1 }
 0x499   : > { %v2177_v62 = vmax.f32 %v2176_v54, %v1811_v60  ;;  %v2219_v63 = vmax.f32 %v2218_v55, %v1924_v61  ;;  %v1813_v0 = vpop.f32.mrb[61].mxu0  ;;  %v1926_v1 = vpop.f32.mrb[61].mxu1 }
 0x49a   : > { %v2198_v2 = vmax.f32 %v2197_v58, %v1813_v0  ;;  %v2240_v52 = vmax.f32 %v2239_v59, %v1926_v1  ;;  %v1815_v3 = vpop.f32.mrb[62].mxu0  ;;  %v1928_v4 = vpop.f32.mrb[62].mxu1 }
 0x49b   : > { %v2178_v27 = vmax.f32 %v2177_v62, %v1815_v3  ;;  %v2220_v5 = vmax.f32 %v2219_v63, %v1928_v4  ;;  %v1817_v6 = vpop.f32.mrb[63].mxu0  ;;  %v1930_v9 = vpop.f32.mrb[63].mxu1 }
 0x49c   : > { %v2199_v10 = vmax.f32 %v2198_v2, %v1817_v6  ;;  %v2241_v11 = vmax.f32 %v2240_v52, %v1930_v9 }
 0x49d   : > { %v2179_v12 = vrot.slane %v2178_v27, 4  ;;  %v2221_v13 = vrot.slane %v2220_v5, 4 }
 0x49e   : > { %v2200_v15 = vrot.slane %v2199_v10, 4  ;;  %v2242_v7 = vrot.slane %v2241_v11, 4 }
 0x49f   : > { %v2180_v8 = vmax.f32 %v2178_v27, %v2179_v12  ;;  %v2222_v17 = vmax.f32 %v2220_v5, %v2221_v13 }
 0x4a0   : > { %v2201_v19 = vmax.f32 %v2199_v10, %v2200_v15  ;;  %v2243_v20 = vmax.f32 %v2241_v11, %v2242_v7  ;;  %v1967_v21 = vpop.f32.mrb[64].mxu0  ;;  %v2080_v22 = vpop.f32.mrb[64].mxu1 }
 0x4a1   : > { %v2181_v23 = vrot.slane %v2180_v8, 2  ;;  %v2223_v14 = vrot.slane %v2222_v17, 2  ;;  %v1969_v24 = vpop.f32.mrb[65].mxu0  ;;  %v2082_v25 = vpop.f32.mrb[65].mxu1 }
 0x4a2   : > { %v2202_v26 = vrot.slane %v2201_v19, 2  ;;  %v2244_v29 = vrot.slane %v2243_v20, 2  ;;  %v1971_v30 = vpop.f32.mrb[66].mxu0  ;;  %v2084_v31 = vpop.f32.mrb[66].mxu1 }
 0x4a3   : > { %v2182_v32 = vmax.f32 %v2180_v8, %v2181_v23  ;;  %v2224_v33 = vmax.f32 %v2222_v17, %v2223_v14  ;;  %v2248_v34 = vmax.f32 %v1967_v21, %v1971_v30  ;;  %v2290_v35 = vmax.f32 %v2080_v22, %v2084_v31  ;;  %v1973_v36 = vpop.f32.mrb[67].mxu0  ;;  %v2086_v37 = vpop.f32.mrb[67].mxu1 }
 0x4a4   : > { %v2203_v38 = vmax.f32 %v2201_v19, %v2202_v26  ;;  %v2245_v39 = vmax.f32 %v2243_v20, %v2244_v29  ;;  %v2269_v40 = vmax.f32 %v1969_v24, %v1973_v36  ;;  %v2311_v41 = vmax.f32 %v2082_v25, %v2086_v37 }
 0x4a5   : > { %v2183_v42 = vrot.slane %v2182_v32, 1  ;;  %v2225_v45 = vrot.slane %v2224_v33, 1 }
 0x4a6   : > { %v2204_v46 = vrot.slane %v2203_v38, 1  ;;  %v2246_v47 = vrot.slane %v2245_v39, 1 }
 0x4a7   : > { %v2184_v48 = vmax.f32 %v2182_v32, %v2183_v42  ;;  %v2226_v49 = vmax.f32 %v2224_v33, %v2225_v45 }
 0x4a8   : > { %v2205_v50 = vmax.f32 %v2203_v38, %v2204_v46  ;;  %v2247_v53 = vmax.f32 %v2245_v39, %v2246_v47  ;;  %v1977_v54 = vpop.f32.mrb[68].mxu0  ;;  %v2090_v55 = vpop.f32.mrb[68].mxu1 }
 0x4a9   : > { %v2249_v56 = vmax.f32 %v2248_v34, %v1977_v54  ;;  %v2291_v57 = vmax.f32 %v2290_v35, %v2090_v55  ;;  %v1979_v58 = vpop.f32.mrb[69].mxu0  ;;  %v2092_v59 = vpop.f32.mrb[69].mxu1 }
 0x4aa   : > { %v2341_v60 = vcombine.low %v2184_v48, %v2205_v50  ;;  %v2342_v61 = vcombine.low %v2226_v49, %v2247_v53  ;;  %v2270_v62 = vmax.f32 %v2269_v40, %v1979_v58  ;;  %v2312_v63 = vmax.f32 %v2311_v41, %v2092_v59  ;;  %v1981_v0 = vpop.f32.mrb[70].mxu0  ;;  %v2094_v1 = vpop.f32.mrb[70].mxu1 }
 0x4ab   : > { %v2250_v2 = vmax.f32 %v2249_v56, %v1981_v0  ;;  %v2292_v52 = vmax.f32 %v2291_v57, %v2094_v1  ;;  %v1983_v3 = vpop.f32.mrb[71].mxu0  ;;  %v2096_v4 = vpop.f32.mrb[71].mxu1 }
 0x4ac   : > { %v3454_v27 = vrot.slane %v2341_v60, %v3451_v51  ;;  %v3457_v5 = vrot.slane %v2342_v61, %v3451_v51  ;;  %v2271_v6 = vmax.f32 %v2270_v62, %v1983_v3  ;;  %v2313_v9 = vmax.f32 %v2312_v63, %v2096_v4 }
 0x4ae   : > { %v2373_v10 = vcombine.low %v3454_v27, %v3457_v5 }
 0x4b0   : > { %v1987_v11 = vpop.f32.mrb[72].mxu0  ;;  %v2100_v12 = vpop.f32.mrb[72].mxu1 }
 0x4b1   : > { %v2251_v13 = vmax.f32 %v2250_v2, %v1987_v11  ;;  %v2293_v15 = vmax.f32 %v2292_v52, %v2100_v12  ;;  %v1989_v16 = vpop.f32.mrb[73].mxu0  ;;  %v2102_v43 = vpop.f32.mrb[73].mxu1 }
 0x4b2   : > { %v2272_v44 = vmax.f32 %v2271_v6, %v1989_v16  ;;  %v2314_v7 = vmax.f32 %v2313_v9, %v2102_v43  ;;  %v1991_v8 = vpop.f32.mrb[74].mxu0  ;;  %v2104_v17 = vpop.f32.mrb[74].mxu1 }
 0x4b3   : > { %v2252_v19 = vmax.f32 %v2251_v13, %v1991_v8  ;;  %v2294_v20 = vmax.f32 %v2293_v15, %v2104_v17  ;;  %v1993_v21 = vpop.f32.mrb[75].mxu0  ;;  %v2106_v22 = vpop.f32.mrb[75].mxu1 }
 0x4b4   : > { %v2273_v23 = vmax.f32 %v2272_v44, %v1993_v21  ;;  %v2315_v14 = vmax.f32 %v2314_v7, %v2106_v22 }
 0x4b8   : > { %v1997_v24 = vpop.f32.mrb[76].mxu0  ;;  %v2110_v25 = vpop.f32.mrb[76].mxu1 }
 0x4b9   : > { %v2253_v26 = vmax.f32 %v2252_v19, %v1997_v24  ;;  %v2295_v28 = vmax.f32 %v2294_v20, %v2110_v25  ;;  %v1999_v18 = vpop.f32.mrb[77].mxu0  ;;  %v2112_v29 = vpop.f32.mrb[77].mxu1 }
 0x4ba   : > { %v2274_v30 = vmax.f32 %v2273_v23, %v1999_v18  ;;  %v2316_v31 = vmax.f32 %v2315_v14, %v2112_v29  ;;  %v2001_v32 = vpop.f32.mrb[78].mxu0  ;;  %v2114_v33 = vpop.f32.mrb[78].mxu1 }
 0x4bb   : > { %v2254_v34 = vmax.f32 %v2253_v26, %v2001_v32  ;;  %v2296_v35 = vmax.f32 %v2295_v28, %v2114_v33  ;;  %v2003_v36 = vpop.f32.mrb[79].mxu0  ;;  %v2116_v37 = vpop.f32.mrb[79].mxu1 }
 0x4bc   : > { %v2275_v38 = vmax.f32 %v2274_v30, %v2003_v36  ;;  %v2317_v39 = vmax.f32 %v2316_v31, %v2116_v37 }
 0x4c0   : > { %v2007_v40 = vpop.f32.mrb[80].mxu0  ;;  %v2120_v41 = vpop.f32.mrb[80].mxu1 }
 0x4c1   : > { %v2255_v42 = vmax.f32 %v2254_v34, %v2007_v40  ;;  %v2297_v45 = vmax.f32 %v2296_v35, %v2120_v41  ;;  %v2009_v46 = vpop.f32.mrb[81].mxu0  ;;  %v2122_v47 = vpop.f32.mrb[81].mxu1 }
 0x4c2   : > { %v2276_v48 = vmax.f32 %v2275_v38, %v2009_v46  ;;  %v2318_v49 = vmax.f32 %v2317_v39, %v2122_v47  ;;  %v2011_v50 = vpop.f32.mrb[82].mxu0  ;;  %v2124_v53 = vpop.f32.mrb[82].mxu1 }
 0x4c3   : > { %v2256_v54 = vmax.f32 %v2255_v42, %v2011_v50  ;;  %v2298_v55 = vmax.f32 %v2297_v45, %v2124_v53  ;;  %v2013_v56 = vpop.f32.mrb[83].mxu0  ;;  %v2126_v57 = vpop.f32.mrb[83].mxu1 }
 0x4c4   : > { %v2277_v58 = vmax.f32 %v2276_v48, %v2013_v56  ;;  %v2319_v59 = vmax.f32 %v2318_v49, %v2126_v57 }
 0x4c8   : > { %v2017_v60 = vpop.f32.mrb[84].mxu0  ;;  %v2130_v61 = vpop.f32.mrb[84].mxu1 }
 0x4c9   : > { %v2257_v62 = vmax.f32 %v2256_v54, %v2017_v60  ;;  %v2299_v63 = vmax.f32 %v2298_v55, %v2130_v61  ;;  %v2019_v0 = vpop.f32.mrb[85].mxu0  ;;  %v2132_v1 = vpop.f32.mrb[85].mxu1 }
 0x4ca   : > { %v2278_v2 = vmax.f32 %v2277_v58, %v2019_v0  ;;  %v2320_v52 = vmax.f32 %v2319_v59, %v2132_v1  ;;  %v2021_v3 = vpop.f32.mrb[86].mxu0  ;;  %v2134_v4 = vpop.f32.mrb[86].mxu1 }
 0x4cb   : > { %v2258_v6 = vmax.f32 %v2257_v62, %v2021_v3  ;;  %v2300_v9 = vmax.f32 %v2299_v63, %v2134_v4  ;;  %v2023_v11 = vpop.f32.mrb[87].mxu0  ;;  %v2136_v12 = vpop.f32.mrb[87].mxu1 }
 0x4cc   : > { %v2279_v13 = vmax.f32 %v2278_v2, %v2023_v11  ;;  %v2321_v15 = vmax.f32 %v2320_v52, %v2136_v12 }
 0x4d0   : > { %v2027_v16 = vpop.f32.mrb[88].mxu0  ;;  %v2140_v43 = vpop.f32.mrb[88].mxu1 }
 0x4d1   : > { %v2259_v44 = vmax.f32 %v2258_v6, %v2027_v16  ;;  %v2301_v7 = vmax.f32 %v2300_v9, %v2140_v43  ;;  %v2029_v8 = vpop.f32.mrb[89].mxu0  ;;  %v2142_v17 = vpop.f32.mrb[89].mxu1  ;;  %v2381_v43 = vrot.slane %v2373_v10, %v3451_v51 }
 0x4d2   : > { %v2280_v19 = vmax.f32 %v2279_v13, %v2029_v8  ;;  %v2322_v20 = vmax.f32 %v2321_v15, %v2142_v17  ;;  %v2031_v21 = vpop.f32.mrb[90].mxu0  ;;  %v2144_v22 = vpop.f32.mrb[90].mxu1  ;;  %v1378_v8 = vld [vmem:[%s3494_s10] sm:$0xff] }
 0x4d3   : > { %v2260_v23 = vmax.f32 %v2259_v44, %v2031_v21  ;;  %v2302_v14 = vmax.f32 %v2301_v7, %v2144_v22  ;;  %v2033_v24 = vpop.f32.mrb[91].mxu0  ;;  %v2146_v25 = vpop.f32.mrb[91].mxu1 }
 0x4d4   : > { %v2281_v26 = vmax.f32 %v2280_v19, %v2033_v24  ;;  %v2323_v28 = vmax.f32 %v2322_v20, %v2146_v25 }
 0x4d8   : > { %v2037_v18 = vpop.f32.mrb[92].mxu0  ;;  %v2150_v29 = vpop.f32.mrb[92].mxu1 }
 0x4d9   : > { %v2261_v30 = vmax.f32 %v2260_v23, %v2037_v18  ;;  %v2303_v31 = vmax.f32 %v2302_v14, %v2150_v29  ;;  %v2039_v32 = vpop.f32.mrb[93].mxu0  ;;  %v2152_v33 = vpop.f32.mrb[93].mxu1 }
 0x4da   : > { %v2282_v34 = vmax.f32 %v2281_v26, %v2039_v32  ;;  %v2324_v35 = vmax.f32 %v2323_v28, %v2152_v33  ;;  %v2041_v36 = vpop.f32.mrb[94].mxu0  ;;  %v2154_v37 = vpop.f32.mrb[94].mxu1 }
 0x4db   : > { %v2262_v38 = vmax.f32 %v2261_v30, %v2041_v36  ;;  %v2304_v39 = vmax.f32 %v2303_v31, %v2154_v37  ;;  %v2043_v40 = vpop.f32.mrb[95].mxu0  ;;  %v2156_v41 = vpop.f32.mrb[95].mxu1 }
 0x4dc   : > { %v2283_v42 = vmax.f32 %v2282_v34, %v2043_v40  ;;  %v2325_v45 = vmax.f32 %v2324_v35, %v2156_v41 }
 0x4dd   : > { %v2263_v46 = vrot.slane %v2262_v38, 4  ;;  %v2305_v47 = vrot.slane %v2304_v39, 4 }
 0x4de   : > { %v2284_v48 = vrot.slane %v2283_v42, 4  ;;  %v2326_v49 = vrot.slane %v2325_v45, 4 }
 0x4df   : > { %v2264_v50 = vmax.f32 %v2262_v38, %v2263_v46  ;;  %v2306_v53 = vmax.f32 %v2304_v39, %v2305_v47 }
 0x4e0   : > { %v2285_v54 = vmax.f32 %v2283_v42, %v2284_v48  ;;  %v2327_v55 = vmax.f32 %v2325_v45, %v2326_v49 }
 0x4e1   : > { %v2265_v56 = vrot.slane %v2264_v50, 2  ;;  %v2307_v57 = vrot.slane %v2306_v53, 2 }
 0x4e2   : > { %v2286_v58 = vrot.slane %v2285_v54, 2  ;;  %v2328_v59 = vrot.slane %v2327_v55, 2 }
 0x4e3   : > { %v2266_v60 = vmax.f32 %v2264_v50, %v2265_v56  ;;  %v2308_v61 = vmax.f32 %v2306_v53, %v2307_v57 }
 0x4e4   : > { %v2287_v62 = vmax.f32 %v2285_v54, %v2286_v58  ;;  %v2329_v63 = vmax.f32 %v2327_v55, %v2328_v59 }
 0x4e5   : > { %v2267_v0 = vrot.slane %v2266_v60, 1  ;;  %v2309_v1 = vrot.slane %v2308_v61, 1 }
 0x4e6   : > { %v2288_v2 = vrot.slane %v2287_v62, 1  ;;  %v2330_v52 = vrot.slane %v2329_v63, 1 }
 0x4e7   : > { %v2268_v3 = vmax.f32 %v2266_v60, %v2267_v0  ;;  %v2310_v4 = vmax.f32 %v2308_v61, %v2309_v1 }
 0x4e8   : > { %v2289_v6 = vmax.f32 %v2287_v62, %v2288_v2  ;;  %v2331_v9 = vmax.f32 %v2329_v63, %v2330_v52 }
 0x4ea   : > { %v2343_v11 = vcombine.low %v2268_v3, %v2289_v6  ;;  %v2344_v12 = vcombine.low %v2310_v4, %v2331_v9 }
 0x4ec   : > { %v2365_v13 = vrot.slane %v2343_v11, %v3451_v51  ;;  %v2372_v15 = vrot.slane %v2344_v12, %v3451_v51 }
 0x4ee   : > { %v2374_v16 = vcombine.low %v2365_v13, %v2372_v15 }
 0x4f0   : > { %v2388_v44 = vrot.slane %v2374_v16, %v3451_v51 }
 0x4f2   : > { %v2389_v7 = vcombine.low %v2381_v43, %v2388_v44 }
 0x4f4   : > { %v2397_v17 = vadd.f32 %v2389_v7, %v1378_v8 }
 0x4f6   : > { %v2398_v19 = vmax.f32 %v2397_v17, 0.0 }
 0x4f8   : > { %2399 = vst [vmem:[%s480_s17] sm:$0xff] %v2398_v19 }
 0x4f9 PF: > { %s23_s23 = sadd.s32 1, %s2902_s23   ;;  %s3497_s21 = smov %s2898_s22 }
 0x4fa   : > { %p20_p5 = scmp.ge.s32.totalorder %s23_s23, 4   ;;  %s3498_s22 = smov %s3500_s24 }
 0x4fc   :  { %22 = sbr.rel (!%p20_p5) target bundleno = 2 (0x2), region = 117 }

// kernel: encoder_forward.5
= control target key start
LH: loop header
LB: loop body
LE: loop exit
PB: predicated region body
PF: predicated region fallthrough
CT: control target
= control target key end

     0   :  { %10 = vsyncpa [#allocation3], 0  ;;  %s2522_s0 = inlined_call_operand.vmem [shape: bf16[2,128,64], index: 0, kind: input, shape index: {}]   ;;  %s2523_s1 = inlined_call_operand.vmem [shape: bf16[2,64,128], index: 1, kind: input, shape index: {}]   ;;  %s2524_s2 = inlined_call_operand.vmem [shape: f32[1,1,128], index: 2, kind: input, shape index: {}]   ;;  %s2525_s3 = inlined_call_operand.vmem [shape: bf16[1,128,1024], index: 3, kind: input, shape index: {}]   ;;  %s2526_s4 = inlined_call_operand.vmem [shape: f32[1,1,1024], index: 4, kind: input, shape index: {}]   ;;  %s2527_s5 = inlined_call_operand.hbm [shape: f32[2,1,1024], index: 5, kind: output, shape index: {}]  }
   0x1   :  { %12 = vsyncpa [#allocation3 + $0x1], 0  ;;  %s2028_s18 = smov 0   ;;  %s2030_s19 = smov 0  }
   0x2   :  { %s2032_s20 = smov 0   ;;  %s2034_s21 = smov 0  }
   0x3   :  { %s2036_s22 = smov 0   ;;  %s2038_s23 = smov 0  }
   0x4 LB: > { %s1690_s24 = sadd.s32 4294967295, %s1993_s23   ;;  %s1691_s25 = sadd.s32 4294967294, %s1993_s23   ;;  %s1993_s23 = sphi %s2038_s23, %s18_s23   ;;  %s1989_s22 = sphi %s2036_s22, %s2534_s22   ;;  %s1985_s21 = sphi %s2034_s21, %s2533_s21   ;;  %s1981_s20 = sphi %s2032_s20, %s2532_s20   ;;  %s1977_s19 = sphi %s2030_s19, %s2531_s19   ;;  %s1973_s18 = sphi %s2028_s18, %s2530_s18  }
   0x5   : > { %s30_s26 = sadd.s32 1, %s1989_s22  ;;  %s154_s27 = sadd.s32 1, %s1981_s20 }
   0x6   : > { %p32_p0 = scmp.ge.s32.totalorder %s30_s26, 2  ;;  %p164_p1 = scmp.ne.s32.totalorder %s1981_s20, %s1977_s19 }
   0x7   : > { %p165_p2 = scmp.eq.s32.totalorder %s1690_s24, 1  ;;  %p170_p3 = scmp.ne.s32.totalorder %s1977_s19, %s1973_s18 }
   0x8   : > { %s2536_s26 = smov (%p32_p0, %s30_s26), 0  ;;  %p171_p5 = scmp.eq.s32.totalorder %s1691_s25, 1 }
   0x9   : > { %p2068_p4 = por %p165_p2, %p164_p1  ;;  %s151_s29 = ssub.s32 %s1989_s22, %s2536_s26 }
   0xa   : > { %p1694_p6 = scmp.ge.s32.totalorder %s1993_s23, 1  ;;  %p152_p7 = scmp.eq.s32.totalorder %s151_s29, 0 }
   0xb   : > { %p2075_p8 = por %p171_p5, %p170_p3  ;;  %p219_p9 = scmp.lt.s32.totalorder %s1993_s23, 3 }
   0xc   : > { %s2081_s6 = scalar_select %p152_p7, %s1981_s20, %s154_s27  }
   0xd   : > { %p220_p10 = pnand %p1694_p6, %p219_p9 }
   0xe   : > { %p257_p11 = scmp.lt.s32.totalorder (!%p220_p10), %s1985_s21, 1  ;;  %v505_v0 = vld [vmem:[%s2525_s3] sm:$0xff] (!%p220_p10)  ;;  %vm367_vm0 = vcmask (!%p220_p10), 523264   ;;  %v506_v22 = vld [vmem:[%s2525_s3 + $0x8] sm:$0xff] (!%p220_p10)  ;;  %s253_s14 = sand.u32 (!%p220_p10), 1, %s1977_s19  }
   0xf   : > { %223 = sbr.rel (%p220_p10) target bundleno = 647 (0x287), region = 40  ;;  %v509_v1 = vld [vmem:[%s2525_s3 + $0x20] sm:$0xff] (!%p220_p10)  ;;  %v510_v25 = vld [vmem:[%s2525_s3 + $0x28] sm:$0xff] (!%p220_p10)  ;;  %s1792_s17 = sshll.u32 (!%p220_p10), %s1985_s21, 7 }
  0x10   : > { %v1722_v2 = vcombine.high (!%p220_p10), %v505_v0, %v509_v1  ;;  %v1721_v3 = vcombine.low (!%p220_p10), %v505_v0, %v509_v1  ;;  %v513_v4 = vld [vmem:[%s2525_s3 + $0x40] sm:$0xff] (!%p220_p10)  ;;  %v1724_v27 = vcombine.high (!%p220_p10), %v506_v22, %v510_v25  ;;  %v514_v29 = vld [vmem:[%s2525_s3 + $0x48] sm:$0xff] (!%p220_p10)  ;;  %v1723_v36 = vcombine.low (!%p220_p10), %v506_v22, %v510_v25  ;;  %s2475_s7 = scalar_lea.hbm (!%p220_p10), %s2527_s5, %s1792_s17  ;;  %s1591_s8 = scalar_lea.sflag (!%p220_p10), [#allocation3], %s253_s14 }
  0x11   : > { %v517_v5 = vld [vmem:[%s2525_s3 + $0x60] sm:$0xff] (!%p220_p10)  ;;  %v518_v30 = vld [vmem:[%s2525_s3 + $0x68] sm:$0xff] (!%p220_p10) }
  0x12   : > { %v1730_v6 = vcombine.high (!%p220_p10), %v513_v4, %v517_v5  ;;  %v521_v7 = vld [vmem:[%s2525_s3 + $0x80] sm:$0xff] (!%p220_p10)  ;;  %898 = vmatprep.subr.bf16.mxu1 (!%p220_p10), %v1722_v2  ;;  %v1729_v9 = vcombine.low (!%p220_p10), %v513_v4, %v517_v5  ;;  %v1732_v37 = vcombine.high (!%p220_p10), %v514_v29, %v518_v30  ;;  %v522_v38 = vld [vmem:[%s2525_s3 + $0x88] sm:$0xff] (!%p220_p10)  ;;  %v1731_v40 = vcombine.low (!%p220_p10), %v514_v29, %v518_v30 }
  0x13   : > { %v525_v8 = vld [vmem:[%s2525_s3 + $0xa0] sm:$0xff] (!%p220_p10)  ;;  %899 = vmatpush1.bf16.msra.mxu1 (!%p220_p10), %v1721_v3  ;;  %v526_v39 = vld [vmem:[%s2525_s3 + $0xa8] sm:$0xff] (!%p220_p10) }
  0x14   : > { %900 = vmatprep.subr.bf16.mxu1 (!%p220_p10), %v1730_v6  ;;  %v1738_v10 = vcombine.high (!%p220_p10), %v521_v7, %v525_v8  ;;  %v529_v11 = vld [vmem:[%s2525_s3 + $0xc0] sm:$0xff] (!%p220_p10)  ;;  %v1737_v15 = vcombine.low (!%p220_p10), %v521_v7, %v525_v8  ;;  %v1740_v41 = vcombine.high (!%p220_p10), %v522_v38, %v526_v39  ;;  %v530_v42 = vld [vmem:[%s2525_s3 + $0xc8] sm:$0xff] (!%p220_p10)  ;;  %v1739_v46 = vcombine.low (!%p220_p10), %v522_v38, %v526_v39  ;;  %v520_v38 = vld [vmem:[%s2525_s3 + $0x78] sm:$0xff] (!%p220_p10) }
  0x15   : > { %v533_v12 = vld [vmem:[%s2525_s3 + $0xe0] sm:$0xff] (!%p220_p10)  ;;  %v534_v43 = vld [vmem:[%s2525_s3 + $0xe8] sm:$0xff] (!%p220_p10) }
  0x16   : > { %s258_s15 = scalar_select %p257_p11, %s1985_s21, 1  ;;  %v537_v16 = vld [vmem:[%s2525_s3 + $0x100] sm:$0xff]  ;;  %v1746_v19 = vcombine.high %v529_v11, %v533_v12  ;;  %v1745_v21 = vcombine.low %v529_v11, %v533_v12  ;;  %v1748_v47 = vcombine.high %v530_v42, %v534_v43  ;;  %v538_v48 = vld [vmem:[%s2525_s3 + $0x108] sm:$0xff]  ;;  %v1747_v50 = vcombine.low %v530_v42, %v534_v43  ;;  %v507_v12 = vld [vmem:[%s2525_s3 + $0x10] sm:$0xff] }
  0x17   : > { %901 = vmatpush1.bf16.msra.mxu1 %v1729_v9  ;;  %v541_v17 = vld [vmem:[%s2525_s3 + $0x120] sm:$0xff]  ;;  %v542_v49 = vld [vmem:[%s2525_s3 + $0x128] sm:$0xff]  ;;  %s1997_s21 = smov [#allocation2]  }
  0x18   : > { %s1790_s27 = sshll.u32 %s258_s15, 6  ;;  %s1791_s29 = sshll.u32 %s258_s15, 5  ;;  %902 = vmatprep.subr.bf16.mxu1 %v1738_v10  ;;  %v1754_v23 = vcombine.high %v537_v16, %v541_v17  ;;  %v1753_v26 = vcombine.low %v537_v16, %v541_v17  ;;  %v545_v28 = vld [vmem:[%s2525_s3 + $0x140] sm:$0xff]  ;;  %v1756_v51 = vcombine.high %v538_v48, %v542_v49  ;;  %v546_v52 = vld [vmem:[%s2525_s3 + $0x148] sm:$0xff]  ;;  %v1755_v56 = vcombine.low %v538_v48, %v542_v49  ;;  %v508_v17 = vld [vmem:[%s2525_s3 + $0x18] sm:$0xff] }
  0x19   : > { %s270_s9 = scalar_lea.vmem %s2523_s1, %s1791_s29  ;;  %s2115_s15 = scalar_lea.vmem %s2522_s0, %s1790_s27  ;;  %v549_v31 = vld [vmem:[%s2525_s3 + $0x160] sm:$0xff]  ;;  %v550_v53 = vld [vmem:[%s2525_s3 + $0x168] sm:$0xff] }
  0x1a   : > { %v1903_v13 = vld [vmem:[%s270_s9] sm:$0xff]   ;;  %v1904_v14 = vld [vmem:[%s270_s9 + $0x8] sm:$0xff]   ;;  %v1905_v18 = vld [vmem:[%s270_s9 + $0x10] sm:$0xff]   ;;  %v1762_v33 = vcombine.high %v545_v28, %v549_v31  ;;  %v1761_v34 = vcombine.low %v545_v28, %v549_v31  ;;  %v1764_v57 = vcombine.high %v546_v52, %v550_v53  ;;  %v1763_v58 = vcombine.low %v546_v52, %v550_v53  ;;  %s1919_s11 = sshll.u32 %s1997_s21, 4  ;;  %s1920_s11 = int_to_ptr.vmem [resolvable:$false] %s1919_s11 }
  0x1b   : > { %1805 = vmatprep.subr.bf16.mxu0 %v1903_v13  ;;  %v1907_v20 = vld [vmem:[%s2115_s15] sm:$0xff]   ;;  %903 = vmatpush1.bf16.msra.mxu1 %v1737_v15  ;;  %v1906_v24 = vld [vmem:[%s270_s9 + $0x18] sm:$0xff]   ;;  %v1908_v32 = vld [vmem:[%s2115_s15 + $0x8] sm:$0xff]   ;;  %s1921_s12 = scalar_lea.vmem %s1920_s11, 256 }
  0x1c   : > { %1806 = vmatpush3.bf16.msra.mxu0 %v1903_v13  ;;  %1813 = vmatprep.mubr.msk.bf16.mxu0 %vm367_vm0, %v1907_v20  ;;  %v1909_v35 = vld [vmem:[%s2115_s15 + $0x10] sm:$0xff]   ;;  %v1910_v44 = vld [vmem:[%s2115_s15 + $0x18] sm:$0xff]   ;;  %v1911_v45 = vld [vmem:[%s2115_s15 + $0x20] sm:$0xff]  }
  0x1d   : > { %1807 = vmatprep.subr.bf16.mxu0 %v1904_v14  ;;  %904 = vmatprep.subr.bf16.mxu1 %v1746_v19  ;;  %v1912_v54 = vld [vmem:[%s2115_s15 + $0x28] sm:$0xff]   ;;  %v1913_v55 = vld [vmem:[%s2115_s15 + $0x30] sm:$0xff]   ;;  %v1914_v59 = vld [vmem:[%s2115_s15 + $0x38] sm:$0xff]   ;;  %s1695_s15 = sshll.u32 %s253_s14, 3 }
  0x1e   : > { %v553_v60 = vld [vmem:[%s2525_s3 + $0x180] sm:$0xff]  ;;  %v554_v62 = vld [vmem:[%s2525_s3 + $0x188] sm:$0xff]  ;;  %v511_v13 = vld [vmem:[%s2525_s3 + $0x30] sm:$0xff]  ;;  %s255_s24 = scalar_lea.vmem [#allocation2], %s1695_s15 }
  0x1f   : > { %905 = vmatpush1.bf16.msra.mxu1 %v1745_v21  ;;  %v557_v61 = vld [vmem:[%s2525_s3 + $0x1a0] sm:$0xff]  ;;  %v558_v0 = vld [vmem:[%s2525_s3 + $0x1a8] sm:$0xff]  ;;  %v1725_v15 = vcombine.low %v507_v12, %v511_v13  ;;  %v1726_v16 = vcombine.high %v507_v12, %v511_v13  ;;  %v539_v12 = vld [vmem:[%s2525_s3 + $0x110] sm:$0xff]  ;;  %s1605_s25 = sshll.u32 %s255_s24, 4  ;;  %s2477_s25 = int_to_ptr.vmem [resolvable:$true] %s1605_s25 }
  0x20   : > { %1808 = vmatpush3.bf16.msra.mxu0 %v1904_v14  ;;  %906 = vmatprep.subr.bf16.mxu1 %v1754_v23  ;;  %v1770_v63 = vcombine.high %v553_v60, %v557_v61  ;;  %v1769_v1 = vcombine.low %v553_v60, %v557_v61  ;;  %v1771_v2 = vcombine.low %v554_v62, %v558_v0  ;;  %v561_v4 = vld [vmem:[%s2525_s3 + $0x1c0] sm:$0xff]  ;;  %v562_v6 = vld [vmem:[%s2525_s3 + $0x1c8] sm:$0xff]  ;;  %v1995_v14 = vmov 0   ;;  %v531_v61 = vld [vmem:[%s2525_s3 + $0xd0] sm:$0xff]  ;;  %s1915_s10 = scalar_lea.vmem %s2477_s25, 128  ;;  %p1922_p1 = scmp.lt.s32.totalorder %s2477_s25, %s1920_s11 }
  0x21   : > { %1809 = vmatprep.subr.bf16.mxu0 %v1905_v18  ;;  %v1772_v3 = vcombine.high %v554_v62, %v558_v0  ;;  %v565_v5 = vld [vmem:[%s2525_s3 + $0x1e0] sm:$0xff]  ;;  %v566_v8 = vld [vmem:[%s2525_s3 + $0x1e8] sm:$0xff]  ;;  %930 = vmatprep.mubr.bf16.mxu1 %v1995_v14  ;;  %v535_v62 = vld [vmem:[%s2525_s3 + $0xf0] sm:$0xff]  ;;  %p1916_p12 = scmp.ne.s32.totalorder %s2477_s25, %s1915_s10  ;;  %p1923_p2 = scmp.lt.s32.totalorder %s1921_s12, %s1915_s10 }
  0x22   : > { %v1778_v7 = vcombine.high %v561_v4, %v565_v5  ;;  %v1777_v9 = vcombine.low %v561_v4, %v565_v5  ;;  %v1779_v10 = vcombine.low %v562_v6, %v566_v8  ;;  %v1780_v11 = vcombine.high %v562_v6, %v566_v8  ;;  %v2227_v21 = vld [vmem:[%s2524_s2] ss:$0 sm:$0xff]  ;;  %v532_v0 = vld [vmem:[%s2525_s3 + $0xd8] sm:$0xff]  ;;  %v543_v13 = vld [vmem:[%s2525_s3 + $0x130] sm:$0xff] }
  0x23   : > { %907 = vmatpush1.bf16.msra.mxu1 %v1753_v26  ;;  %v1750_v8 = vcombine.high %v531_v61, %v535_v62  ;;  %p1917_p13 = pnand %p1916_p12, %p2068_p4  ;;  %p1924_p3 = por %p1923_p2, %p1922_p1 }
  0x24   : > { %1810 = vmatpush3.bf16.msra.mxu0 %v1905_v18  ;;  %908 = vmatprep.subr.bf16.mxu1 %v1762_v33  ;;  %v512_v18 = vld [vmem:[%s2525_s3 + $0x38] sm:$0xff]  ;;  %v519_v33 = vld [vmem:[%s2525_s3 + $0x70] sm:$0xff] }
  0x25   : > { %1811 = vmatprep.subr.bf16.mxu0 %v1906_v24  ;;  %v2219_v19 = vcombine.low %v508_v17, %v512_v18  ;;  %v2221_v20 = vcombine.high %v508_v17, %v512_v18  ;;  %p1918_p0 = pneg %p1917_p13 }
  0x27   : > { %909 = vmatpush1.bf16.msra.mxu1 %v1761_v34  ;;  %p1925_p5 = pnand %p1924_p3, %p1918_p0 }
  0x28   : > { %1812 = vmatpush3.bf16.msra.mxu0 %v1906_v24  ;;  %910 = vmatprep.subr.bf16.mxu1 %v1770_v63 }
  0x29   : > { %1011 = vmatprep.subr.bf16.mxu0 %v1724_v27 }
  0x2b   : > { %1814 = vmatmul.mubr.msk.bf16.vlgmr.msra.gmra.mrb[0].mxu0 %vm367_vm0, %v1908_v32  ;;  %911 = vmatpush1.bf16.msra.mxu1 %v1769_v1  ;;  %v515_v32 = vld [vmem:[%s2525_s3 + $0x50] sm:$0xff]  ;;  %v536_v1 = vld [vmem:[%s2525_s3 + $0xf8] sm:$0xff] }
  0x2c   : > { %1817 = vmatprep.mubr.msk.bf16.mxu0 %vm367_vm0, %v1909_v35  ;;  %1012 = vmatpush1.bf16.msra.mxu0 %v1723_v36  ;;  %v1733_v52 = vcombine.low %v515_v32, %v519_v33 }
  0x2d   : > { %1013 = vmatprep.subr.bf16.mxu0 %v1732_v37  ;;  %912 = vmatprep.subr.bf16.mxu1 %v1778_v7  ;;  %v516_v37 = vld [vmem:[%s2525_s3 + $0x58] sm:$0xff] }
  0x2e   : > { %v2259_v48 = vcombine.high %v516_v37, %v520_v38 }
  0x2f   : > { %913 = vmatpush1.bf16.msra.mxu1 %v1777_v9 }
  0x30   : > { %1014 = vmatpush1.bf16.msra.mxu0 %v1731_v40  ;;  %1124 = vmatprep.subr.bf16.mxu1 %v1726_v16 }
  0x31   : > { %1015 = vmatprep.subr.bf16.mxu0 %v1740_v41  ;;  %v1734_v41 = vcombine.high %v515_v32, %v519_v33  ;;  %v551_v32 = vld [vmem:[%s2525_s3 + $0x170] sm:$0xff] }
  0x33   : > { %1818 = vmatmul.mubr.msk.bf16.gmra.mrb[4].mxu0 %vm367_vm0, %v1910_v44  ;;  %v523_v44 = vld [vmem:[%s2525_s3 + $0x90] sm:$0xff] }
  0x34   : > { %1821 = vmatprep.mubr.msk.bf16.mxu0 %vm367_vm0, %v1911_v45  ;;  %1016 = vmatpush1.bf16.msra.mxu0 %v1739_v46  ;;  %v527_v45 = vld [vmem:[%s2525_s3 + $0xb0] sm:$0xff] }
  0x35   : > { %1017 = vmatprep.subr.bf16.mxu0 %v1748_v47 }
  0x38   : > { %1018 = vmatpush1.bf16.msra.mxu0 %v1747_v50 }
  0x39   : > { %1019 = vmatprep.subr.bf16.mxu0 %v1756_v51 }
  0x3b   : > { %1822 = vmatmul.mubr.msk.bf16.gmra.mrb[8].mxu0 %vm367_vm0, %v1912_v54 }
  0x3c   : > { %1825 = vmatprep.mubr.msk.bf16.mxu0 %vm367_vm0, %v1913_v55  ;;  %1020 = vmatpush1.bf16.msra.mxu0 %v1755_v56  ;;  %v1742_v55 = vcombine.high %v523_v44, %v527_v45 }
  0x3d   : > { %1021 = vmatprep.subr.bf16.mxu0 %v1764_v57  ;;  %v2266_v57 = vcombine.low %v516_v37, %v520_v38  ;;  %v1757_v38 = vcombine.low %v539_v12, %v543_v13 }
  0x40   : > { %1022 = vmatpush1.bf16.msra.mxu0 %v1763_v58  ;;  %v524_v58 = vld [vmem:[%s2525_s3 + $0x98] sm:$0xff] }
  0x41   : > { %1023 = vmatprep.subr.bf16.mxu0 %v1772_v3  ;;  %v1741_v3 = vcombine.low %v523_v44, %v527_v45 }
  0x43   : > { %1826 = vmatmul.mubr.msk.bf16.gmra.mrb[12].mxu0 %vm367_vm0, %v1914_v59  ;;  %v528_v59 = vld [vmem:[%s2525_s3 + $0xb8] sm:$0xff] }
  0x44   : > { %1024 = vmatpush1.bf16.msra.mxu0 %v1771_v2  ;;  %1043 = vmatprep.mubr.bf16.mxu0 %v1995_v14  ;;  %v2291_v5 = vcombine.high %v524_v58, %v528_v59  ;;  %v2295_v9 = vcombine.low %v524_v58, %v528_v59 }
  0x45   : > { %1025 = vmatprep.subr.bf16.mxu0 %v1780_v11 }
  0x48   : > { %1026 = vmatpush1.bf16.msra.mxu0 %v1779_v10 }
  0x49   : > { %1237 = vmatprep.subr.bf16.mxu0 %v2221_v20 }
  0xfe   : > { %v1815_v22 = vpop.f32.mrb[0].mxu0 }
  0xff   : > { %v435_v23 = vadd.f32 %v1815_v22, %v2227_v21  ;;  %v426_v24 = vpop.f32.mrb[1].mxu0 }
 0x100   : > { %v427_v25 = vadd.f32 %v2227_v21, %v426_v24  ;;  %v1816_v26 = vpop.f32.mrb[2].mxu0  ;;  %v1749_v24 = vcombine.low %v531_v61, %v535_v62  ;;  %v556_v62 = vld [vmem:[%s2525_s3 + $0x198] sm:$0xff] }
 0x101   : > { %v438_v27 = vadd.f32 %v1816_v26, %v2227_v21  ;;  %v429_v28 = vpop.f32.mrb[3].mxu0  ;;  %v491_v30 = vmax.f32 %v435_v23, 0.0  ;;  %v1758_v26 = vcombine.high %v539_v12, %v543_v13 }
 0x102   : > { %v430_v29 = vadd.f32 %v2227_v21, %v429_v28  ;;  %v489_v34 = vmax.f32 %v427_v25, 0.0  ;;  %v540_v28 = vld [vmem:[%s2525_s3 + $0x118] sm:$0xff] }
 0x103   : > { %v492_v31 = vmax.f32 %v438_v27, 0.0  ;;  %v2314_v27 = vcombine.low %v532_v0, %v536_v1 }
 0x104   : > { %v490_v35 = vmax.f32 %v430_v29, 0.0  ;;  %v544_v29 = vld [vmem:[%s2525_s3 + $0x138] sm:$0xff] }
 0x105   : > { %v2239_v36 = vpack.c.bf16 %v492_v31, %v491_v30  ;;  %v547_v31 = vld [vmem:[%s2525_s3 + $0x150] sm:$0xff]  ;;  %v2343_v45 = vcombine.low %v540_v28, %v544_v29 }
 0x106   : > { %v2247_v39 = vpack.c.bf16 %v490_v35, %v489_v34  ;;  %v1819_v40 = vpop.f32.mrb[4].mxu0  ;;  %v548_v34 = vld [vmem:[%s2525_s3 + $0x158] sm:$0xff]  ;;  %v1766_v44 = vcombine.high %v547_v31, %v551_v32  ;;  %v1765_v58 = vcombine.low %v547_v31, %v551_v32 }
 0x107   : > { %v451_v42 = vadd.f32 %v1819_v40, %v2227_v21  ;;  %v442_v43 = vpop.f32.mrb[5].mxu0  ;;  %v552_v35 = vld [vmem:[%s2525_s3 + $0x178] sm:$0xff] }
 0x108   : > { %931 = vmatmul.mubr.bf16.vlgmr.msra.gmra.mrb[0].mxu1 %v2247_v39  ;;  %1044 = vmatmul.mubr.bf16.vlgmr.msra.gmra.mrb[16].mxu0 %v2247_v39  ;;  %v443_v46 = vadd.f32 %v2227_v21, %v442_v43  ;;  %v1820_v47 = vpop.f32.mrb[6].mxu0  ;;  %v2362_v61 = vcombine.low %v548_v34, %v552_v35 }
 0x109   : > { %1125 = vmatpush1.bf16.msra.mxu1 %v1725_v15  ;;  %v495_v49 = vmax.f32 %v451_v42, 0.0  ;;  %v454_v50 = vadd.f32 %v1820_v47, %v2227_v21  ;;  %v445_v51 = vpop.f32.mrb[7].mxu0  ;;  %940 = vmatprep.mubr.bf16.mxu1 %v1995_v14  ;;  %v2306_v15 = vcombine.high %v532_v0, %v536_v1  ;;  %v560_v0 = vld [vmem:[%s2525_s3 + $0x1b8] sm:$0xff] }
 0x10a   : > { %v493_v53 = vmax.f32 %v443_v46, 0.0  ;;  %v446_v54 = vadd.f32 %v2227_v21, %v445_v51  ;;  %1053 = vmatprep.mubr.bf16.mxu0 %v1995_v14  ;;  %1126 = vmatprep.subr.bf16.mxu1 %v1734_v41  ;;  %v2339_v41 = vcombine.high %v540_v28, %v544_v29  ;;  %v2354_v51 = vcombine.high %v548_v34, %v552_v35 }
 0x10b   : > { %v496_v56 = vmax.f32 %v454_v50, 0.0  ;;  %1238 = vmatpush1.bf16.msra.mxu0 %v2219_v19  ;;  %v559_v50 = vld [vmem:[%s2525_s3 + $0x1b0] sm:$0xff]  ;;  %v1775_v13 = vcombine.low %v556_v62, %v560_v0 }
 0x10c   : > { %v494_v60 = vmax.f32 %v446_v54, 0.0  ;;  %1239 = vmatprep.subr.bf16.mxu0 %v2259_v48 }
 0x10d   : > { %v2281_v63 = vpack.c.bf16 %v496_v56, %v495_v49  ;;  %1127 = vmatpush1.bf16.msra.mxu1 %v1733_v52  ;;  %v555_v49 = vld [vmem:[%s2525_s3 + $0x190] sm:$0xff] }
 0x10e   : > { %v2289_v2 = vpack.c.bf16 %v494_v60, %v493_v53  ;;  %1128 = vmatprep.subr.bf16.mxu1 %v1742_v55  ;;  %v1823_v4 = vpop.f32.mrb[8].mxu0  ;;  %v1774_v60 = vcombine.high %v555_v49, %v559_v50 }
 0x10f   : > { %v467_v6 = vadd.f32 %v1823_v4, %v2227_v21  ;;  %v458_v7 = vpop.f32.mrb[9].mxu0  ;;  %1240 = vmatpush1.bf16.msra.mxu0 %v2266_v57 }
 0x110   : > { %941 = vmatmul.mubr.bf16.gmra.mrb[4].mxu1 %v2239_v36  ;;  %1054 = vmatmul.mubr.bf16.gmra.mrb[20].mxu0 %v2239_v36  ;;  %v459_v10 = vadd.f32 %v2227_v21, %v458_v7  ;;  %v1824_v11 = vpop.f32.mrb[10].mxu0  ;;  %v568_v7 = vld [vmem:[%s2525_s3 + $0x1f8] sm:$0xff] }
 0x111   : > { %950 = vmatprep.mubr.bf16.mxu1 %v1995_v14  ;;  %1063 = vmatprep.mubr.bf16.mxu0 %v1995_v14  ;;  %v499_v16 = vmax.f32 %v467_v6, 0.0  ;;  %v470_v17 = vadd.f32 %v1824_v11, %v2227_v21  ;;  %v461_v18 = vpop.f32.mrb[11].mxu0  ;;  %v564_v6 = vld [vmem:[%s2525_s3 + $0x1d8] sm:$0xff]  ;;  %v1776_v11 = vcombine.high %v556_v62, %v560_v0 }
 0x112   : > { %1129 = vmatpush1.bf16.msra.mxu1 %v1741_v3  ;;  %v497_v22 = vmax.f32 %v459_v10, 0.0  ;;  %v462_v23 = vadd.f32 %v2227_v21, %v461_v18  ;;  %1241 = vmatprep.subr.bf16.mxu0 %v2291_v5  ;;  %v567_v3 = vld [vmem:[%s2525_s3 + $0x1f0] sm:$0xff]  ;;  %v1773_v10 = vcombine.low %v555_v49, %v559_v50  ;;  %v1783_v18 = vcombine.low %v564_v6, %v568_v7 }
 0x113   : > { %v500_v25 = vmax.f32 %v470_v17, 0.0  ;;  %1130 = vmatprep.subr.bf16.mxu1 %v1750_v8  ;;  %1242 = vmatpush1.bf16.msra.mxu0 %v2295_v9 }
 0x114   : > { %v498_v30 = vmax.f32 %v462_v23, 0.0  ;;  %1243 = vmatprep.subr.bf16.mxu0 %v2306_v15 }
 0x115   : > { %v2329_v33 = vpack.c.bf16 %v500_v25, %v499_v16  ;;  %v1784_v16 = vcombine.high %v564_v6, %v568_v7 }
 0x116   : > { %v2337_v37 = vpack.c.bf16 %v498_v30, %v497_v22  ;;  %1131 = vmatpush1.bf16.msra.mxu1 %v1749_v24  ;;  %v1827_v40 = vpop.f32.mrb[12].mxu0 }
 0x117   : > { %1132 = vmatprep.subr.bf16.mxu1 %v1758_v26  ;;  %v483_v42 = vadd.f32 %v1827_v40, %v2227_v21  ;;  %v474_v43 = vpop.f32.mrb[13].mxu0  ;;  %1244 = vmatpush1.bf16.msra.mxu0 %v2314_v27 }
 0x118   : > { %951 = vmatmul.mubr.bf16.gmra.mrb[8].mxu1 %v2289_v2  ;;  %1064 = vmatmul.mubr.bf16.gmra.mrb[24].mxu0 %v2289_v2  ;;  %v475_v46 = vadd.f32 %v2227_v21, %v474_v43  ;;  %v1828_v47 = vpop.f32.mrb[14].mxu0 }
 0x119   : > { %960 = vmatprep.mubr.bf16.mxu1 %v1995_v14  ;;  %1073 = vmatprep.mubr.bf16.mxu0 %v1995_v14  ;;  %v503_v52 = vmax.f32 %v483_v42, 0.0  ;;  %v486_v53 = vadd.f32 %v1828_v47, %v2227_v21  ;;  %v477_v54 = vpop.f32.mrb[15].mxu0 }
 0x11a   : > { %1133 = vmatpush1.bf16.msra.mxu1 %v1757_v38  ;;  %v501_v55 = vmax.f32 %v475_v46, 0.0  ;;  %v478_v56 = vadd.f32 %v2227_v21, %v477_v54  ;;  %1245 = vmatprep.subr.bf16.mxu0 %v2339_v41  ;;  %v563_v21 = vld [vmem:[%s2525_s3 + $0x1d0] sm:$0xff] }
 0x11b   : > { %v504_v59 = vmax.f32 %v486_v53, 0.0  ;;  %1134 = vmatprep.subr.bf16.mxu1 %v1766_v44  ;;  %1246 = vmatpush1.bf16.msra.mxu0 %v2343_v45  ;;  %v1782_v12 = vcombine.high %v563_v21, %v567_v3  ;;  %v1781_v17 = vcombine.low %v563_v21, %v567_v3 }
 0x11c   : > { %v502_v1 = vmax.f32 %v478_v56, 0.0  ;;  %1247 = vmatprep.subr.bf16.mxu0 %v2354_v51 }
 0x11d   : > { %v2377_v4 = vpack.c.bf16 %v504_v59, %v503_v52 }
 0x11e   : > { %v2385_v8 = vpack.c.bf16 %v502_v1, %v501_v55  ;;  %1135 = vmatpush1.bf16.msra.mxu1 %v1765_v58 }
 0x11f   : > { %1136 = vmatprep.subr.bf16.mxu1 %v1774_v60  ;;  %1248 = vmatpush1.bf16.msra.mxu0 %v2362_v61 }
 0x120   : > { %961 = vmatmul.mubr.bf16.gmra.mrb[12].mxu1 %v2281_v63  ;;  %1074 = vmatmul.mubr.bf16.gmra.mrb[28].mxu0 %v2281_v63 }
 0x121   : > { %970 = vmatprep.mubr.bf16.mxu1 %v1995_v14  ;;  %1083 = vmatprep.mubr.bf16.mxu0 %v1995_v14 }
 0x122   : > { %1137 = vmatpush1.bf16.msra.mxu1 %v1773_v10  ;;  %1249 = vmatprep.subr.bf16.mxu0 %v1776_v11 }
 0x123   : > { %1138 = vmatprep.subr.bf16.mxu1 %v1782_v12  ;;  %1250 = vmatpush1.bf16.msra.mxu0 %v1775_v13 }
 0x124   : > { %1251 = vmatprep.subr.bf16.mxu0 %v1784_v16 }
 0x126   : > { %1139 = vmatpush1.bf16.msra.mxu1 %v1781_v17 }
 0x127   : > { %1252 = vmatpush1.bf16.msra.mxu0 %v1783_v18  ;;  %1829 = vmatprep.subr.bf16.mxu1 %v2221_v20 }
 0x128   : > { %971 = vmatmul.mubr.bf16.gmra.mrb[16].mxu1 %v2337_v37  ;;  %1084 = vmatmul.mubr.bf16.gmra.mrb[32].mxu0 %v2337_v37 }
 0x129   : > { %980 = vmatprep.mubr.bf16.mxu1 %v1995_v14  ;;  %1093 = vmatprep.mubr.bf16.mxu0 %v1995_v14 }
 0x130   : > { %981 = vmatmul.mubr.bf16.gmra.mrb[20].mxu1 %v2329_v33  ;;  %1094 = vmatmul.mubr.bf16.gmra.mrb[36].mxu0 %v2329_v33 }
 0x131   : > { %990 = vmatprep.mubr.bf16.mxu1 %v1995_v14  ;;  %1103 = vmatprep.mubr.bf16.mxu0 %v1995_v14 }
 0x138   : > { %991 = vmatmul.mubr.bf16.gmra.mrb[24].mxu1 %v2385_v8  ;;  %1104 = vmatmul.mubr.bf16.gmra.mrb[40].mxu0 %v2385_v8 }
 0x139   : > { %1000 = vmatprep.mubr.bf16.mxu1 %v1995_v14  ;;  %1113 = vmatprep.mubr.bf16.mxu0 %v1995_v14 }
 0x140   : > { %1001 = vmatmul.mubr.bf16.gmra.mrb[28].mxu1 %v2377_v4  ;;  %1114 = vmatmul.mubr.bf16.gmra.mrb[44].mxu0 %v2377_v4 }
 0x141   : > { %1156 = vmatprep.mubr.bf16.mxu1 %v1995_v14  ;;  %1269 = vmatprep.mubr.bf16.mxu0 %v1995_v14 }
 0x148   : > { %1157 = vmatmul.mubr.bf16.vlgmr.msra.gmra.mrb[32].mxu1 %v2247_v39  ;;  %1270 = vmatmul.mubr.bf16.vlgmr.msra.gmra.mrb[48].mxu0 %v2247_v39 }
 0x149   : > { %1837 = vmatpush1.bf16.msra.mxu1 %v2219_v19  ;;  %1166 = vmatprep.mubr.bf16.mxu1 %v1995_v14 }
 0x14a   : > { %1830 = vmatprep.subr.bf16.mxu1 %v2259_v48  ;;  %1279 = vmatprep.mubr.bf16.mxu0 %v1995_v14 }
 0x14d   : > { %1838 = vmatpush1.bf16.msra.mxu1 %v2266_v57 }
 0x14e   : > { %1831 = vmatprep.subr.bf16.mxu1 %v2291_v5 }
 0x150   : > { %1167 = vmatmul.mubr.bf16.gmra.mrb[36].mxu1 %v2239_v36  ;;  %1280 = vmatmul.mubr.bf16.gmra.mrb[52].mxu0 %v2239_v36 }
 0x151   : > { %1176 = vmatprep.mubr.bf16.mxu1 %v1995_v14  ;;  %1289 = vmatprep.mubr.bf16.mxu0 %v1995_v14 }
 0x152   : > { %1839 = vmatpush1.bf16.msra.mxu1 %v2295_v9 }
 0x153   : > { %1832 = vmatprep.subr.bf16.mxu1 %v2306_v15 }
 0x156   : > { %1840 = vmatpush1.bf16.msra.mxu1 %v2314_v27 }
 0x157   : > { %1833 = vmatprep.subr.bf16.mxu1 %v2339_v41 }
 0x158   : > { %1177 = vmatmul.mubr.bf16.gmra.mrb[40].mxu1 %v2289_v2  ;;  %1290 = vmatmul.mubr.bf16.gmra.mrb[56].mxu0 %v2289_v2 }
 0x159   : > { %1186 = vmatprep.mubr.bf16.mxu1 %v1995_v14  ;;  %1299 = vmatprep.mubr.bf16.mxu0 %v1995_v14 }
 0x15a   : > { %1841 = vmatpush1.bf16.msra.mxu1 %v2343_v45 }
 0x15b   : > { %1834 = vmatprep.subr.bf16.mxu1 %v2354_v51 }
 0x15e   : > { %1842 = vmatpush1.bf16.msra.mxu1 %v2362_v61 }
 0x15f   : > { %1835 = vmatprep.subr.bf16.mxu1 %v1776_v11 }
 0x160   : > { %1187 = vmatmul.mubr.bf16.gmra.mrb[44].mxu1 %v2281_v63  ;;  %1300 = vmatmul.mubr.bf16.gmra.mrb[60].mxu0 %v2281_v63 }
 0x161   : > { %1196 = vmatprep.mubr.bf16.mxu1 %v1995_v14  ;;  %1309 = vmatprep.mubr.bf16.mxu0 %v1995_v14 }
 0x162   : > { %1843 = vmatpush1.bf16.msra.mxu1 %v1775_v13 }
 0x163   : > { %1836 = vmatprep.subr.bf16.mxu1 %v1784_v16 }
 0x166   : > { %1844 = vmatpush1.bf16.msra.mxu1 %v1783_v18 }
 0x168   : > { %1197 = vmatmul.mubr.bf16.gmra.mrb[48].mxu1 %v2337_v37  ;;  %1310 = vmatmul.mubr.bf16.gmra.mrb[64].mxu0 %v2337_v37 }
 0x169   : > { %1206 = vmatprep.mubr.bf16.mxu1 %v1995_v14  ;;  %1319 = vmatprep.mubr.bf16.mxu0 %v1995_v14 }
 0x170   : > { %1207 = vmatmul.mubr.bf16.gmra.mrb[52].mxu1 %v2329_v33  ;;  %1320 = vmatmul.mubr.bf16.gmra.mrb[68].mxu0 %v2329_v33 }
 0x171   : > { %1216 = vmatprep.mubr.bf16.mxu1 %v1995_v14  ;;  %1329 = vmatprep.mubr.bf16.mxu0 %v1995_v14 }
 0x178   : > { %1217 = vmatmul.mubr.bf16.gmra.mrb[56].mxu1 %v2385_v8  ;;  %1330 = vmatmul.mubr.bf16.gmra.mrb[72].mxu0 %v2385_v8 }
 0x179   : > { %1226 = vmatprep.mubr.bf16.mxu1 %v1995_v14 }
 0x180   : > { %1227 = vmatmul.mubr.bf16.gmra.mrb[60].mxu1 %v2377_v4 }
 0x181   : > { %1339 = vmatprep.mubr.bf16.mxu1 %v1995_v14 }
 0x188   : > { %1340 = vmatmul.mubr.bf16.vlgmr.msra.gmra.mrb[64].mxu1 %v2377_v4 }
 0x1db   : > { %v932_v19 = vpop.f32.mrb[0].mxu1  ;;  %v1045_v20 = vpop.f32.mrb[16].mxu0 }
 0x1dc   : > { %v934_v36 = vpop.f32.mrb[1].mxu1  ;;  %v1047_v39 = vpop.f32.mrb[17].mxu0 }
 0x1dd   : > { %v936_v48 = vpop.f32.mrb[2].mxu1  ;;  %v1049_v57 = vpop.f32.mrb[18].mxu0 }
 0x1de   : > { %v1355_v63 = vmax.f32 %v932_v19, %v936_v48  ;;  %v1397_v2 = vmax.f32 %v1045_v20, %v1049_v57  ;;  %v938_v5 = vpop.f32.mrb[3].mxu1  ;;  %v1051_v9 = vpop.f32.mrb[19].mxu0 }
 0x1df   : > { %v1376_v15 = vmax.f32 %v934_v36, %v938_v5  ;;  %v1418_v22 = vmax.f32 %v1047_v39, %v1051_v9 }
 0x1e3   : > { %v942_v23 = vpop.f32.mrb[4].mxu1  ;;  %v1055_v24 = vpop.f32.mrb[20].mxu0 }
 0x1e4   : > { %v1356_v25 = vmax.f32 %v1355_v63, %v942_v23  ;;  %v1398_v26 = vmax.f32 %v1397_v2, %v1055_v24  ;;  %v944_v27 = vpop.f32.mrb[5].mxu1  ;;  %v1057_v14 = vpop.f32.mrb[21].mxu0 }
 0x1e5   : > { %v1377_v28 = vmax.f32 %v1376_v15, %v944_v27  ;;  %v1419_v29 = vmax.f32 %v1418_v22, %v1057_v14  ;;  %v946_v30 = vpop.f32.mrb[6].mxu1  ;;  %v1059_v31 = vpop.f32.mrb[22].mxu0 }
 0x1e6   : > { %v1357_v32 = vmax.f32 %v1356_v25, %v946_v30  ;;  %v1399_v33 = vmax.f32 %v1398_v26, %v1059_v31  ;;  %v948_v34 = vpop.f32.mrb[7].mxu1  ;;  %v1061_v35 = vpop.f32.mrb[23].mxu0 }
 0x1e7   : > { %v1378_v37 = vmax.f32 %v1377_v28, %v948_v34  ;;  %v1420_v38 = vmax.f32 %v1419_v29, %v1061_v35 }
 0x1eb   : > { %v952_v40 = vpop.f32.mrb[8].mxu1  ;;  %v1065_v41 = vpop.f32.mrb[24].mxu0 }
 0x1ec   : > { %v1358_v42 = vmax.f32 %v1357_v32, %v952_v40  ;;  %v1400_v43 = vmax.f32 %v1399_v33, %v1065_v41  ;;  %v954_v44 = vpop.f32.mrb[9].mxu1  ;;  %v1067_v45 = vpop.f32.mrb[25].mxu0 }
 0x1ed   : > { %v1379_v46 = vmax.f32 %v1378_v37, %v954_v44  ;;  %v1421_v47 = vmax.f32 %v1420_v38, %v1067_v45  ;;  %v956_v49 = vpop.f32.mrb[10].mxu1  ;;  %v1069_v50 = vpop.f32.mrb[26].mxu0 }
 0x1ee   : > { %v1359_v51 = vmax.f32 %v1358_v42, %v956_v49  ;;  %v1401_v52 = vmax.f32 %v1400_v43, %v1069_v50  ;;  %v958_v53 = vpop.f32.mrb[11].mxu1  ;;  %v1071_v54 = vpop.f32.mrb[27].mxu0 }
 0x1ef   : > { %v1380_v55 = vmax.f32 %v1379_v46, %v958_v53  ;;  %v1422_v56 = vmax.f32 %v1421_v47, %v1071_v54 }
 0x1f3   : > { %v962_v58 = vpop.f32.mrb[12].mxu1  ;;  %v1075_v59 = vpop.f32.mrb[28].mxu0 }
 0x1f4   : > { %v1360_v60 = vmax.f32 %v1359_v51, %v962_v58  ;;  %v1402_v61 = vmax.f32 %v1401_v52, %v1075_v59  ;;  %v964_v62 = vpop.f32.mrb[13].mxu1  ;;  %v1077_v0 = vpop.f32.mrb[29].mxu0 }
 0x1f5   : > { %v1381_v1 = vmax.f32 %v1380_v55, %v964_v62  ;;  %v1423_v21 = vmax.f32 %v1422_v56, %v1077_v0  ;;  %v966_v3 = vpop.f32.mrb[14].mxu1  ;;  %v1079_v4 = vpop.f32.mrb[30].mxu0 }
 0x1f6   : > { %v1361_v6 = vmax.f32 %v1360_v60, %v966_v3  ;;  %v1403_v7 = vmax.f32 %v1402_v61, %v1079_v4  ;;  %v968_v8 = vpop.f32.mrb[15].mxu1  ;;  %v1081_v10 = vpop.f32.mrb[31].mxu0 }
 0x1f7   : > { %v1382_v11 = vmax.f32 %v1381_v1, %v968_v8  ;;  %v1424_v12 = vmax.f32 %v1423_v21, %v1081_v10 }
 0x1fb   : > { %v972_v13 = vpop.f32.mrb[16].mxu1  ;;  %v1085_v16 = vpop.f32.mrb[32].mxu0 }
 0x1fc   : > { %v1362_v17 = vmax.f32 %v1361_v6, %v972_v13  ;;  %v1404_v18 = vmax.f32 %v1403_v7, %v1085_v16  ;;  %v974_v19 = vpop.f32.mrb[17].mxu1  ;;  %v1087_v20 = vpop.f32.mrb[33].mxu0 }
 0x1fd   : > { %v1383_v36 = vmax.f32 %v1382_v11, %v974_v19  ;;  %v1425_v39 = vmax.f32 %v1424_v12, %v1087_v20  ;;  %v976_v48 = vpop.f32.mrb[18].mxu1  ;;  %v1089_v57 = vpop.f32.mrb[34].mxu0  ;;  %v1539_v20 = vlaneseq }
 0x1fe   : > { %v1363_v63 = vmax.f32 %v1362_v17, %v976_v48  ;;  %v1405_v2 = vmax.f32 %v1404_v18, %v1089_v57  ;;  %v978_v5 = vpop.f32.mrb[19].mxu1  ;;  %v1091_v9 = vpop.f32.mrb[35].mxu0  ;;  %v1996_v18 = vmov 1966171168  }
 0x1ff   : > { %v1384_v15 = vmax.f32 %v1383_v36, %v978_v5  ;;  %v1426_v22 = vmax.f32 %v1425_v39, %v1091_v9  ;;  %v1537_v19 = vunpack.c.l.s4 %v1996_v18 }
 0x203   : > { %v982_v23 = vpop.f32.mrb[20].mxu1  ;;  %v1095_v24 = vpop.f32.mrb[36].mxu0 }
 0x204   : > { %v1364_v25 = vmax.f32 %v1363_v63, %v982_v23  ;;  %v1406_v26 = vmax.f32 %v1405_v2, %v1095_v24  ;;  %v984_v27 = vpop.f32.mrb[21].mxu1  ;;  %v1097_v14 = vpop.f32.mrb[37].mxu0 }
 0x205   : > { %v1385_v28 = vmax.f32 %v1384_v15, %v984_v27  ;;  %v1427_v29 = vmax.f32 %v1426_v22, %v1097_v14  ;;  %v986_v30 = vpop.f32.mrb[22].mxu1  ;;  %v1099_v31 = vpop.f32.mrb[38].mxu0 }
 0x206   : > { %v1365_v32 = vmax.f32 %v1364_v25, %v986_v30  ;;  %v1407_v33 = vmax.f32 %v1406_v26, %v1099_v31  ;;  %v988_v34 = vpop.f32.mrb[23].mxu1  ;;  %v1101_v35 = vpop.f32.mrb[39].mxu0  ;;  %v1538_v25 = vunpack.c.0.s8 %v1537_v19  ;;  %v1540_v26 = vshrl.u32 %v1539_v20, 7 }
 0x207   : > { %v1386_v37 = vmax.f32 %v1385_v28, %v988_v34  ;;  %v1428_v38 = vmax.f32 %v1427_v29, %v1101_v35 }
 0x20b   : > { %v992_v40 = vpop.f32.mrb[24].mxu1  ;;  %v1105_v41 = vpop.f32.mrb[40].mxu0 }
 0x20c   : > { %v1366_v42 = vmax.f32 %v1365_v32, %v992_v40  ;;  %v1408_v43 = vmax.f32 %v1407_v33, %v1105_v41  ;;  %v994_v44 = vpop.f32.mrb[25].mxu1  ;;  %v1107_v45 = vpop.f32.mrb[41].mxu0 }
 0x20d   : > { %v1387_v46 = vmax.f32 %v1386_v37, %v994_v44  ;;  %v1429_v47 = vmax.f32 %v1428_v38, %v1107_v45  ;;  %v996_v49 = vpop.f32.mrb[26].mxu1  ;;  %v1109_v50 = vpop.f32.mrb[42].mxu0 }
 0x20e   : > { %v1367_v51 = vmax.f32 %v1366_v42, %v996_v49  ;;  %v1409_v52 = vmax.f32 %v1408_v43, %v1109_v50  ;;  %v998_v53 = vpop.f32.mrb[27].mxu1  ;;  %v1111_v54 = vpop.f32.mrb[43].mxu0  ;;  %v2450_v49 = vsub.s32 %v1538_v25, %v1540_v26 }
 0x20f   : > { %v1388_v55 = vmax.f32 %v1387_v46, %v998_v53  ;;  %v1430_v56 = vmax.f32 %v1429_v47, %v1111_v54 }
 0x213   : > { %v1002_v58 = vpop.f32.mrb[28].mxu1  ;;  %v1115_v59 = vpop.f32.mrb[44].mxu0 }
 0x214   : > { %v1368_v60 = vmax.f32 %v1367_v51, %v1002_v58  ;;  %v1410_v61 = vmax.f32 %v1409_v52, %v1115_v59  ;;  %v1004_v62 = vpop.f32.mrb[29].mxu1  ;;  %v1117_v0 = vpop.f32.mrb[45].mxu0 }
 0x215   : > { %v1389_v1 = vmax.f32 %v1388_v55, %v1004_v62  ;;  %v1431_v21 = vmax.f32 %v1430_v56, %v1117_v0  ;;  %v1006_v3 = vpop.f32.mrb[30].mxu1  ;;  %v1119_v4 = vpop.f32.mrb[46].mxu0 }
 0x216   : > { %v1369_v6 = vmax.f32 %v1368_v60, %v1006_v3  ;;  %v1411_v7 = vmax.f32 %v1410_v61, %v1119_v4  ;;  %v1008_v8 = vpop.f32.mrb[31].mxu1  ;;  %v1121_v10 = vpop.f32.mrb[47].mxu0 }
 0x217   : > { %v1390_v11 = vmax.f32 %v1389_v1, %v1008_v8  ;;  %v1432_v12 = vmax.f32 %v1431_v21, %v1121_v10 }
 0x218   : > { %v1370_v13 = vrot.slane %v1369_v6, 4  ;;  %v1412_v16 = vrot.slane %v1411_v7, 4 }
 0x219   : > { %v1391_v17 = vrot.slane %v1390_v11, 4  ;;  %v1433_v36 = vrot.slane %v1432_v12, 4 }
 0x21a   : > { %v1371_v39 = vmax.f32 %v1369_v6, %v1370_v13  ;;  %v1413_v48 = vmax.f32 %v1411_v7, %v1412_v16 }
 0x21b   : > { %v1392_v57 = vmax.f32 %v1390_v11, %v1391_v17  ;;  %v1434_v63 = vmax.f32 %v1432_v12, %v1433_v36  ;;  %v1158_v2 = vpop.f32.mrb[32].mxu1  ;;  %v1271_v5 = vpop.f32.mrb[48].mxu0 }
 0x21c   : > { %v1372_v9 = vrot.slane %v1371_v39, 2  ;;  %v1414_v15 = vrot.slane %v1413_v48, 2  ;;  %v1160_v22 = vpop.f32.mrb[33].mxu1  ;;  %v1273_v23 = vpop.f32.mrb[49].mxu0 }
 0x21d   : > { %v1393_v24 = vrot.slane %v1392_v57, 2  ;;  %v1435_v27 = vrot.slane %v1434_v63, 2  ;;  %v1162_v14 = vpop.f32.mrb[34].mxu1  ;;  %v1275_v28 = vpop.f32.mrb[50].mxu0 }
 0x21e   : > { %v1373_v29 = vmax.f32 %v1371_v39, %v1372_v9  ;;  %v1415_v30 = vmax.f32 %v1413_v48, %v1414_v15  ;;  %v1439_v31 = vmax.f32 %v1158_v2, %v1162_v14  ;;  %v1481_v32 = vmax.f32 %v1271_v5, %v1275_v28  ;;  %v1164_v33 = vpop.f32.mrb[35].mxu1  ;;  %v1277_v34 = vpop.f32.mrb[51].mxu0 }
 0x21f   : > { %v1394_v35 = vmax.f32 %v1392_v57, %v1393_v24  ;;  %v1436_v37 = vmax.f32 %v1434_v63, %v1435_v27  ;;  %v1460_v38 = vmax.f32 %v1160_v22, %v1164_v33  ;;  %v1502_v40 = vmax.f32 %v1273_v23, %v1277_v34 }
 0x220   : > { %v1374_v41 = vrot.slane %v1373_v29, 1  ;;  %v1416_v42 = vrot.slane %v1415_v30, 1 }
 0x221   : > { %v1395_v43 = vrot.slane %v1394_v35, 1  ;;  %v1437_v44 = vrot.slane %v1436_v37, 1 }
 0x222   : > { %v1375_v45 = vmax.f32 %v1373_v29, %v1374_v41  ;;  %v1417_v46 = vmax.f32 %v1415_v30, %v1416_v42 }
 0x223   : > { %v1396_v47 = vmax.f32 %v1394_v35, %v1395_v43  ;;  %v1438_v50 = vmax.f32 %v1436_v37, %v1437_v44  ;;  %v1168_v51 = vpop.f32.mrb[36].mxu1  ;;  %v1281_v52 = vpop.f32.mrb[52].mxu0 }
 0x224   : > { %v1440_v53 = vmax.f32 %v1439_v31, %v1168_v51  ;;  %v1482_v54 = vmax.f32 %v1481_v32, %v1281_v52  ;;  %v1170_v55 = vpop.f32.mrb[37].mxu1  ;;  %v1283_v56 = vpop.f32.mrb[53].mxu0 }
 0x225   : > { %v1532_v58 = vcombine.low %v1375_v45, %v1396_v47  ;;  %v1533_v59 = vcombine.low %v1417_v46, %v1438_v50  ;;  %v1461_v60 = vmax.f32 %v1460_v38, %v1170_v55  ;;  %v1503_v61 = vmax.f32 %v1502_v40, %v1283_v56  ;;  %v1172_v62 = vpop.f32.mrb[38].mxu1  ;;  %v1285_v0 = vpop.f32.mrb[54].mxu0 }
 0x226   : > { %v1441_v1 = vmax.f32 %v1440_v53, %v1172_v62  ;;  %v1483_v21 = vmax.f32 %v1482_v54, %v1285_v0  ;;  %v1174_v3 = vpop.f32.mrb[39].mxu1  ;;  %v1287_v4 = vpop.f32.mrb[55].mxu0 }
 0x227   : > { %v2453_v6 = vrot.slane %v1532_v58, %v2450_v49  ;;  %v2456_v7 = vrot.slane %v1533_v59, %v2450_v49  ;;  %v1462_v8 = vmax.f32 %v1461_v60, %v1174_v3  ;;  %v1504_v10 = vmax.f32 %v1503_v61, %v1287_v4 }
 0x229   : > { %v1564_v11 = vcombine.low %v2453_v6, %v2456_v7 }
 0x22b   : > { %v1178_v12 = vpop.f32.mrb[40].mxu1  ;;  %v1291_v13 = vpop.f32.mrb[56].mxu0 }
 0x22c   : > { %v1442_v16 = vmax.f32 %v1441_v1, %v1178_v12  ;;  %v1484_v17 = vmax.f32 %v1483_v21, %v1291_v13  ;;  %v1180_v18 = vpop.f32.mrb[41].mxu1  ;;  %v1293_v19 = vpop.f32.mrb[57].mxu0 }
 0x22d   : > { %v1463_v20 = vmax.f32 %v1462_v8, %v1180_v18  ;;  %v1505_v36 = vmax.f32 %v1504_v10, %v1293_v19  ;;  %v1182_v39 = vpop.f32.mrb[42].mxu1  ;;  %v1295_v48 = vpop.f32.mrb[58].mxu0 }
 0x22e   : > { %v1443_v57 = vmax.f32 %v1442_v16, %v1182_v39  ;;  %v1485_v63 = vmax.f32 %v1484_v17, %v1295_v48  ;;  %v1184_v2 = vpop.f32.mrb[43].mxu1  ;;  %v1297_v5 = vpop.f32.mrb[59].mxu0 }
 0x22f   : > { %v1464_v9 = vmax.f32 %v1463_v20, %v1184_v2  ;;  %v1506_v15 = vmax.f32 %v1505_v36, %v1297_v5 }
 0x233   : > { %v1188_v22 = vpop.f32.mrb[44].mxu1  ;;  %v1301_v23 = vpop.f32.mrb[60].mxu0 }
 0x234   : > { %v1444_v24 = vmax.f32 %v1443_v57, %v1188_v22  ;;  %v1486_v25 = vmax.f32 %v1485_v63, %v1301_v23  ;;  %v1190_v26 = vpop.f32.mrb[45].mxu1  ;;  %v1303_v27 = vpop.f32.mrb[61].mxu0 }
 0x235   : > { %v1465_v14 = vmax.f32 %v1464_v9, %v1190_v26  ;;  %v1507_v28 = vmax.f32 %v1506_v15, %v1303_v27  ;;  %v1192_v29 = vpop.f32.mrb[46].mxu1  ;;  %v1305_v30 = vpop.f32.mrb[62].mxu0 }
 0x236   : > { %v1445_v31 = vmax.f32 %v1444_v24, %v1192_v29  ;;  %v1487_v32 = vmax.f32 %v1486_v25, %v1305_v30  ;;  %v1194_v33 = vpop.f32.mrb[47].mxu1  ;;  %v1307_v34 = vpop.f32.mrb[63].mxu0 }
 0x237   : > { %v1466_v35 = vmax.f32 %v1465_v14, %v1194_v33  ;;  %v1508_v37 = vmax.f32 %v1507_v28, %v1307_v34 }
 0x23b   : > { %v1198_v38 = vpop.f32.mrb[48].mxu1  ;;  %v1311_v40 = vpop.f32.mrb[64].mxu0 }
 0x23c   : > { %v1446_v41 = vmax.f32 %v1445_v31, %v1198_v38  ;;  %v1488_v42 = vmax.f32 %v1487_v32, %v1311_v40  ;;  %v1200_v43 = vpop.f32.mrb[49].mxu1  ;;  %v1313_v44 = vpop.f32.mrb[65].mxu0 }
 0x23d   : > { %v1467_v45 = vmax.f32 %v1466_v35, %v1200_v43  ;;  %v1509_v46 = vmax.f32 %v1508_v37, %v1313_v44  ;;  %v1202_v47 = vpop.f32.mrb[50].mxu1  ;;  %v1315_v50 = vpop.f32.mrb[66].mxu0 }
 0x23e   : > { %v1447_v51 = vmax.f32 %v1446_v41, %v1202_v47  ;;  %v1489_v52 = vmax.f32 %v1488_v42, %v1315_v50  ;;  %v1204_v53 = vpop.f32.mrb[51].mxu1  ;;  %v1317_v54 = vpop.f32.mrb[67].mxu0 }
 0x23f   : > { %v1468_v55 = vmax.f32 %v1467_v45, %v1204_v53  ;;  %v1510_v56 = vmax.f32 %v1509_v46, %v1317_v54 }
 0x243   : > { %v1208_v58 = vpop.f32.mrb[52].mxu1  ;;  %v1321_v59 = vpop.f32.mrb[68].mxu0 }
 0x244   : > { %v1448_v60 = vmax.f32 %v1447_v51, %v1208_v58  ;;  %v1490_v61 = vmax.f32 %v1489_v52, %v1321_v59  ;;  %v1210_v62 = vpop.f32.mrb[53].mxu1  ;;  %v1323_v0 = vpop.f32.mrb[69].mxu0 }
 0x245   : > { %v1469_v1 = vmax.f32 %v1468_v55, %v1210_v62  ;;  %v1511_v21 = vmax.f32 %v1510_v56, %v1323_v0  ;;  %v1212_v3 = vpop.f32.mrb[54].mxu1  ;;  %v1325_v4 = vpop.f32.mrb[70].mxu0 }
 0x246   : > { %v1449_v8 = vmax.f32 %v1448_v60, %v1212_v3  ;;  %v1491_v10 = vmax.f32 %v1490_v61, %v1325_v4  ;;  %v1214_v12 = vpop.f32.mrb[55].mxu1  ;;  %v1327_v13 = vpop.f32.mrb[71].mxu0 }
 0x247   : > { %v1470_v16 = vmax.f32 %v1469_v1, %v1214_v12  ;;  %v1512_v17 = vmax.f32 %v1511_v21, %v1327_v13 }
 0x24b   : > { %v1218_v18 = vpop.f32.mrb[56].mxu1  ;;  %v1331_v19 = vpop.f32.mrb[72].mxu0 }
 0x24c   : > { %v1450_v20 = vmax.f32 %v1449_v8, %v1218_v18  ;;  %v1492_v36 = vmax.f32 %v1491_v10, %v1331_v19  ;;  %v1220_v39 = vpop.f32.mrb[57].mxu1  ;;  %v1333_v48 = vpop.f32.mrb[73].mxu0  ;;  %v1572_v19 = vrot.slane %v1564_v11, %v2450_v49 }
 0x24d   : > { %v1471_v57 = vmax.f32 %v1470_v16, %v1220_v39  ;;  %v1513_v63 = vmax.f32 %v1512_v17, %v1333_v48  ;;  %v1222_v2 = vpop.f32.mrb[58].mxu1  ;;  %v1335_v5 = vpop.f32.mrb[74].mxu0  ;;  %v569_v39 = vld [vmem:[%s2526_s4] sm:$0xff] }
 0x24e   : > { %v1451_v9 = vmax.f32 %v1450_v20, %v1222_v2  ;;  %v1493_v15 = vmax.f32 %v1492_v36, %v1335_v5  ;;  %v1224_v22 = vpop.f32.mrb[59].mxu1  ;;  %v1337_v23 = vpop.f32.mrb[75].mxu0 }
 0x24f   : > { %v1472_v24 = vmax.f32 %v1471_v57, %v1224_v22  ;;  %v1514_v25 = vmax.f32 %v1513_v63, %v1337_v23 }
 0x253   : > { %v1228_v26 = vpop.f32.mrb[60].mxu1 }
 0x254   : > { %v1452_v27 = vmax.f32 %v1451_v9, %v1228_v26  ;;  %v1230_v14 = vpop.f32.mrb[61].mxu1 }
 0x255   : > { %v1473_v28 = vmax.f32 %v1472_v24, %v1230_v14  ;;  %v1232_v29 = vpop.f32.mrb[62].mxu1 }
 0x256   : > { %v1453_v30 = vmax.f32 %v1452_v27, %v1232_v29  ;;  %v1234_v31 = vpop.f32.mrb[63].mxu1 }
 0x257   : > { %v1474_v32 = vmax.f32 %v1473_v28, %v1234_v31 }
 0x258   : > { %v1454_v33 = vrot.slane %v1453_v30, 4 }
 0x259   : > { %v1475_v34 = vrot.slane %v1474_v32, 4 }
 0x25a   : > { %v1455_v35 = vmax.f32 %v1453_v30, %v1454_v33 }
 0x25b   : > { %v1476_v37 = vmax.f32 %v1474_v32, %v1475_v34  ;;  %v1341_v38 = vpop.f32.mrb[64].mxu1 }
 0x25c   : > { %v1456_v40 = vrot.slane %v1455_v35, 2  ;;  %v1494_v41 = vmax.f32 %v1493_v15, %v1341_v38  ;;  %v1343_v42 = vpop.f32.mrb[65].mxu1 }
 0x25d   : > { %v1477_v43 = vrot.slane %v1476_v37, 2  ;;  %v1515_v44 = vmax.f32 %v1514_v25, %v1343_v42  ;;  %v1345_v45 = vpop.f32.mrb[66].mxu1 }
 0x25e   : > { %v1457_v46 = vmax.f32 %v1455_v35, %v1456_v40  ;;  %v1495_v47 = vmax.f32 %v1494_v41, %v1345_v45  ;;  %v1347_v50 = vpop.f32.mrb[67].mxu1 }
 0x25f   : > { %v1478_v51 = vmax.f32 %v1476_v37, %v1477_v43  ;;  %v1516_v52 = vmax.f32 %v1515_v44, %v1347_v50 }
 0x260   : > { %v1458_v53 = vrot.slane %v1457_v46, 1  ;;  %v1496_v54 = vrot.slane %v1495_v47, 4 }
 0x261   : > { %v1479_v55 = vrot.slane %v1478_v51, 1  ;;  %v1517_v56 = vrot.slane %v1516_v52, 4 }
 0x262   : > { %v1459_v58 = vmax.f32 %v1457_v46, %v1458_v53  ;;  %v1497_v59 = vmax.f32 %v1495_v47, %v1496_v54 }
 0x263   : > { %v1480_v60 = vmax.f32 %v1478_v51, %v1479_v55  ;;  %v1518_v61 = vmax.f32 %v1516_v52, %v1517_v56 }
 0x264   : > { %v1498_v62 = vrot.slane %v1497_v59, 2 }
 0x265   : > { %v1534_v0 = vcombine.low %v1459_v58, %v1480_v60  ;;  %v1519_v1 = vrot.slane %v1518_v61, 2 }
 0x266   : > { %v1499_v21 = vmax.f32 %v1497_v59, %v1498_v62 }
 0x267   : > { %v1520_v3 = vmax.f32 %v1518_v61, %v1519_v1  ;;  %v1556_v16 = vrot.slane %v1534_v0, %v2450_v49 }
 0x268   : > { %v1500_v4 = vrot.slane %v1499_v21, 1 }
 0x269   : > { %v1521_v8 = vrot.slane %v1520_v3, 1 }
 0x26a   : > { %v1501_v10 = vmax.f32 %v1499_v21, %v1500_v4 }
 0x26b   : > { %v1522_v12 = vmax.f32 %v1520_v3, %v1521_v8 }
 0x26d   : > { %v1535_v13 = vcombine.low %v1501_v10, %v1522_v12 }
 0x26f   : > { %v1563_v17 = vrot.slane %v1535_v13, %v2450_v49 }
 0x271   : > { %v1565_v18 = vcombine.low %v1556_v16, %v1563_v17 }
 0x273   : > { %v1579_v20 = vrot.slane %v1565_v18, %v2450_v49 }
 0x275   : > { %v1580_v36 = vcombine.low %v1572_v19, %v1579_v20 }
 0x277   : > { %v1588_v48 = vadd.f32 %v1580_v36, %v569_v39 }
 0x279   : > { %1589 = vst [vmem:[%s255_s24] sm:$0xff] %v1588_v48 }
 0x27a   : > { %1928 = shalt.err (!%p1925_p5)
}
 0x27b   : > { %s1929_s13 = scalar_lea.hbm %s2475_s7, 128  ;;  %s1933_s9 = scalar_lea.hbm %s2527_s5, 256 }
 0x27c   : > { %p1930_p6 = scmp.ne.s32.totalorder %s2475_s7, %s1929_s13  ;;  %p1934_p10 = scmp.lt.u32.totalorder %s2475_s7, %s2527_s5 }
 0x27d   : > { %p1935_p11 = scmp.lt.u32.totalorder %s1933_s9, %s1929_s13  ;;  %p1937_p13 = scmp.lt.u32.totalorder %s1929_s13, %s2475_s7 }
 0x27e   : > { %p1931_p7 = pnand %p1930_p6, %p2068_p4 }
 0x27f   : > { %p1936_p12 = por %p1935_p11, %p1934_p10 }
 0x280   : > { %p1932_p9 = pneg %p1931_p7 }
 0x281   : > { %p1938_p0 = por %p1937_p13, %p1936_p12 }
 0x283   : > { %p1939_p1 = pnand %p1938_p0, %p1932_p9 }
 0x285   : > { %1942 = shalt.err (!%p1939_p1)
}
 0x286   : > { %1845 = dma.vmem_to_hbm [thread:$0]  (%p2068_p4), %s2477_s25, 128, %s2475_s7, %s1591_s8  }
 0x287 PF: > { %p1851_p2 = scmp.ge.s32.totalorder %s1993_s23, 2  ;;  %s1617_s24 = sand.u32 1, %s1973_s18  }
 0x288   : > { %s1618_s29 = scalar_lea.sflag [#allocation3], %s1617_s24 }
 0x289   : > { %p1848_p3 = pnand %p1851_p2, %p2075_p8 }
 0x28b   : > { %1968 = dma.done.wait (!%p1848_p3), %s1618_s29, 128  }
 0x28c   : > { %1970 = vsyncadd (!%p1848_p3), %s1618_s29, 4294967168  ;;  %s18_s23 = sadd.s32 1, %s1993_s23   ;;  %s2530_s18 = smov %s1977_s19 }
 0x28d   : > { %p15_p5 = scmp.ge.s32.totalorder %s18_s23, 4   ;;  %s2531_s19 = smov %s1981_s20 }
 0x28e   : > { %s2532_s20 = smov %s2081_s6  ;;  %s2533_s21 = smov %s1989_s22 }
 0x28f   : > { %s2534_s22 = smov %s2536_s26  ;;  %17 = sbr.rel (!%p15_p5) target bundleno = 4 (0x4), region = 86 }
 0x296   :  { %1623 = vsyncpa [#allocation3], 1 }
 0x297   :  { %1625 = vsyncpa [#allocation3 + $0x1], 1 }

</bundles_post_ra>
